<compile_context>
chip_gen: v5e
topology: v5e:2x2
jax: 0.10.0
libtpu: 0.0.40
codegen_flags: <defaults>
</compile_context>

<pallas_src>
import functools

import jax
import jax.numpy as jnp
from jax import lax
from jax.experimental import pallas as pl
from jax.experimental.pallas import tpu as pltpu


# -----------------------------------------------------------------------------
# Small in-kernel helpers
# -----------------------------------------------------------------------------
def _roll_minor(x, shift):
    """Circular roll along the last (lane) axis, same semantics as jnp.roll.

    Implemented with static slices + concatenate (known-good Mosaic lowering);
    used for in-kernel im2col shifts and spatial finite differences.
    """
    size = x.shape[-1]
    s = shift % size
    if s == 0:
        return x
    return jnp.concatenate([x[..., size - s:], x[..., :size - s]], axis=-1)


def _conv3x3_lanes(x_bf, masks, w_ref, b_ref, act, W):
    """3x3 SAME conv on channel-major (Cin, N*H*W) bf16 data, fully in VMEM.

    im2col is done in-register: for each of the 9 taps the flattened input is
    circularly shifted along the lane axis and multiplied by a precomputed
    validity mask (zero padding + image boundaries), then a small
    (Cout, Cin) x (Cin, M) MXU matmul accumulates into an f32 register tile.
    """
    cout = w_ref.shape[1]
    m = x_bf.shape[-1]
    acc = jnp.zeros((cout, m), jnp.float32)
    for t in range(9):
        dy, dx = t // 3, t % 3
        shift = (dy - 1) * W + (dx - 1)
        xs = x_bf if shift == 0 else _roll_minor(x_bf, -shift)
        if t != 4:  # center tap is always valid (mask == 1)
            xs = xs * masks[t:t + 1, :]
        acc = acc + jnp.dot(w_ref[t], xs, preferred_element_type=jnp.float32)
    y = acc + b_ref[...]
    if act == "relu":
        y = jnp.maximum(y, 0.0)
    elif act == "softplus":
        y = jnp.maximum(y, 0.0) + jnp.log(1.0 + jnp.exp(-jnp.abs(y)))
    return y


def _full_block(arr):
    ndim = arr.ndim
    return pl.BlockSpec(arr.shape, lambda *_idx, _n=ndim: (0,) * _n)


def _pixel_coords(H, W):
    idx = jnp.arange(H * W)
    ww = (idx % W).astype(jnp.float32).reshape(1, H * W)
    hh = (idx // W).astype(jnp.float32).reshape(1, H * W)
    return ww, hh


def _conv_masks(H, W, n_img, dtype=jnp.bfloat16):
    """Per-tap validity masks (9, n_img*H*W) for the in-kernel im2col."""
    hw = H * W
    idx = jnp.arange(hw)
    hh = idx // W
    ww = idx % W
    rows = []
    for dy in range(3):
        for dx in range(3):
            hs = hh + dy - 1
            ws = ww + dx - 1
            rows.append((hs >= 0) & (hs < H) & (ws >= 0) & (ws < W))
    m_img = jnp.stack(rows, axis=0).astype(dtype)            # (9, hw)
    return jnp.tile(m_img, (1, n_img))                       # (9, n_img*hw)


def _prep_conv_w(w):
    # (3, 3, cin, cout) -> (9, cout, cin) bf16
    k, _, cin, cout = w.shape[0], w.shape[1], w.shape[2], w.shape[3]
    return jnp.transpose(w.reshape(9, cin, cout), (0, 2, 1)).astype(jnp.bfloat16)


def _prep_bias(b):
    return b.reshape(-1, 1).astype(jnp.float32)


def _pick_tile_images(n_img, hw, budget_bytes=4 << 20):
    """Images per grid step: largest divisor of n_img whose activation slab
    stays within a VMEM budget and keeps the lane dim a multiple of 128."""
    per_img_bytes = hw * 16 * 4 * 4  # rough live-activation estimate
    t = max(1, min(n_img, budget_bytes // max(per_img_bytes, 1)))
    while t > 1 and (n_img % t != 0 or (t * hw) % 128 != 0):
        t -= 1
    if (t * hw) % 128 != 0:
        t = n_img  # full-array block is always legal
    return t


# -----------------------------------------------------------------------------
# Pallas kernels
# -----------------------------------------------------------------------------
def _depth_cnn_kernel(x_ref, m_ref, w1_ref, b1_ref, w2_ref, b2_ref, w3_ref,
                      b3_ref, d_ref, *, W):
    """Fused 3-layer depth CNN on a (Cin, tile_images*H*W) lane-dense block."""
    masks = m_ref[...]                                        # (9, M) bf16
    h1 = _conv3x3_lanes(x_ref[...], masks, w1_ref, b1_ref, "relu", W)
    h2 = _conv3x3_lanes(h1.astype(jnp.bfloat16), masks, w2_ref, b2_ref, "relu", W)
    d = _conv3x3_lanes(h2.astype(jnp.bfloat16), masks, w3_ref, b3_ref, "softplus", W)
    d_ref[...] = d + 0.01


def _motion_cnn_kernel(x_ref, m_ref, wc_ref, bc_ref, wres_ref, bres_ref,
                       wrot_ref, brot_ref, wtr_ref, btr_ref, wintr_ref,
                       bintr_ref, rot_ref, tr_ref, intr_ref, res_ref, *, W, HW):
    """Fused motion head: conv + per-image global pool + 3 dense heads +
    residual-translation conv, all in one kernel."""
    masks = m_ref[...]                                        # (9, M) bf16
    feat = _conv3x3_lanes(x_ref[...], masks, wc_ref, bc_ref, "relu", W)  # (8, M)
    n_img = feat.shape[1] // HW
    pooled = jnp.concatenate(
        [jnp.mean(feat[:, n * HW:(n + 1) * HW], axis=1, keepdims=True)
         for n in range(n_img)], axis=1)                      # (8, n_img)
    rot_ref[...] = (jnp.dot(wrot_ref[...], pooled,
                            preferred_element_type=jnp.float32) + brot_ref[...])
    tr_ref[...] = (jnp.dot(wtr_ref[...], pooled,
                           preferred_element_type=jnp.float32) + btr_ref[...])
    intr_ref[...] = (jnp.dot(wintr_ref[...], pooled,
                             preferred_element_type=jnp.float32) + bintr_ref[...])
    res_ref[...] = _conv3x3_lanes(feat.astype(jnp.bfloat16), masks,
                                  wres_ref, bres_ref, "none", W)


def _project_kernel(a_ref, k_ref, d_ref, t_ref, xg_ref, yg_ref,
                    coords_ref, mask_ref, *, H, W):
    """Per-image projection on lane-dense (1, H*W) blocks; 3x3 mats in SMEM."""
    b = pl.program_id(0)
    d = d_ref[0]                                              # (1, HW)
    t = t_ref[0]                                              # (3, HW)
    tx = t[0:1, :]
    ty = t[1:2, :]
    tz = t[2:3, :]
    xg = xg_ref[...]
    yg = yg_ref[...]
    X = xg * d
    Y = yg * d
    Z = d
    a00 = a_ref[b, 0]; a01 = a_ref[b, 1]; a02 = a_ref[b, 2]
    a10 = a_ref[b, 3]; a11 = a_ref[b, 4]; a12 = a_ref[b, 5]
    a20 = a_ref[b, 6]; a21 = a_ref[b, 7]; a22 = a_ref[b, 8]
    k00 = k_ref[b, 0]; k01 = k_ref[b, 1]; k02 = k_ref[b, 2]
    k10 = k_ref[b, 3]; k11 = k_ref[b, 4]; k12 = k_ref[b, 5]
    k20 = k_ref[b, 6]; k21 = k_ref[b, 7]; k22 = k_ref[b, 8]
    ktx = k00 * tx + k01 * ty + k02 * tz
    kty = k10 * tx + k11 * ty + k12 * tz
    ktz = k20 * tx + k21 * ty + k22 * tz
    pu = a00 * X + a01 * Y + a02 * Z + ktx
    pv = a10 * X + a11 * Y + a12 * Z + kty
    pz = a20 * X + a21 * Y + a22 * Z + ktz
    zsafe = jnp.where(pz > 1e-6, pz, jnp.ones_like(pz))
    px = pu / zsafe
    py = pv / zsafe
    valid = ((pz > 1e-6) & (px >= 0.0) & (px <= float(W - 1))
             & (py >= 0.0) & (py <= float(H - 1))).astype(jnp.float32)
    coords_ref[0] = jnp.concatenate([px, py, pz], axis=0)     # (3, HW)
    mask_ref[0] = valid                                       # (1, HW)


def _depth_motion_reg_kernel(d_ref, rgb_ref, res_ref, tr_ref, ww_ref, hh_ref,
                             disp_ref, sc_ref, *, H, W):
    """Fused depth-variance / edge-aware smoothness / motion regularizers."""
    d = d_ref[...]                                            # (N, 1, HW)
    rgb = rgb_ref[...]                                        # (N, 3, HW)
    ww = ww_ref[...]                                          # (1, 1, HW)
    hh = hh_ref[...]
    n_img = d.shape[0]
    ones = jnp.ones((1, 128), jnp.float32)

    # depth variance: 1 / mean_i var(d_i / mean(d_i))
    mean_d = jnp.mean(d, axis=(1, 2), keepdims=True)
    var = jnp.mean(jnp.square(d / mean_d - 1.0), axis=(1, 2), keepdims=True)
    depth_var = 1.0 / (jnp.mean(var) + 1e-12)

    # edge-aware disparity smoothness (finite differences via lane rolls + masks)
    disp = 1.0 / d
    disp_ref[...] = disp
    mean_disp = jnp.mean(disp, axis=(1, 2), keepdims=True)
    dn = disp / (mean_disp + 1e-12)
    mask_dx = (ww < float(W - 1)).astype(jnp.float32)
    mask_dy = (hh < float(H - 1)).astype(jnp.float32)
    ddx = _roll_minor(dn, -1) - dn
    ddy = _roll_minor(dn, -W) - dn
    rgb_dx = jnp.mean(jnp.abs(_roll_minor(rgb, -1) - rgb), axis=1, keepdims=True)
    rgb_dy = jnp.mean(jnp.abs(_roll_minor(rgb, -W) - rgb), axis=1, keepdims=True)
    depth_sm = (jnp.sum(jnp.abs(ddx) * jnp.exp(-rgb_dx) * mask_dx)
                / float(n_img * H * (W - 1))
                + jnp.sum(jnp.abs(ddy) * jnp.exp(-rgb_dy) * mask_dy)
                / float(n_img * (H - 1) * W))

    # motion-field regularizers on the normalized residual translation
    res = res_ref[...]                                        # (N, 3, HW)
    tr = tr_ref[...]
    norm = 3.0 * jnp.mean(jnp.square(tr), axis=(1, 2), keepdims=True)
    m = res / jnp.sqrt(norm + 1e-12)
    is_w0 = (ww < 0.5).astype(jnp.float32)
    is_h0 = (hh < 0.5).astype(jnp.float32)
    # per-image circular rolls (wrap-around smoothness like torch.roll)
    m_px = is_w0 * _roll_minor(m, -(W - 1)) + (1.0 - is_w0) * _roll_minor(m, 1)
    m_py = is_h0 * _roll_minor(m, -(H - 1) * W) + (1.0 - is_h0) * _roll_minor(m, W)
    dx = m - m_px
    dy = m - m_py
    mot_sm = jnp.mean(jnp.sqrt(1e-24 + dx * dx + dy * dy))
    absm = jnp.abs(m)
    mean_abs = jnp.mean(absm, axis=2, keepdims=True)
    mot_sp = jnp.mean(2.0 * mean_abs * jnp.sqrt(absm / (mean_abs + 1e-24) + 1.0))

    sc_ref[...] = jnp.concatenate(
        [depth_var * ones, depth_sm * ones, mot_sm * ones, mot_sp * ones], axis=0)


def _masked_mean_kernel(pz_ref, rsd_ref, cls_ref, ratio_ref, rgb_ref, rrgb_ref,
                        sval_ref, sw_ref, o_ref):
    """Fused weighted-mean reductions for all consistency losses."""
    eps = 1e-12
    ones = jnp.ones((1, 128), jnp.float32)
    closer = cls_ref[...]                                     # (N, 1, HW)
    wsum = jnp.sum(closer)
    depth_err = jnp.sum(jnp.abs(pz_ref[...] - rsd_ref[...]) * closer) / (wsum + eps)
    rgb_err = (jnp.sum(jnp.abs(rgb_ref[...] - rrgb_ref[...]) * closer)
               / (3.0 * wsum + eps))
    sw = sw_ref[...]                                          # (N, 1, S)
    ssim_err = jnp.sum(sval_ref[...] * sw) / (3.0 * jnp.sum(sw) + eps)
    trans_err = jnp.sum(ratio_ref[...] * closer) / (wsum + eps)
    o_ref[...] = jnp.concatenate(
        [depth_err * ones, rgb_err * ones, ssim_err * ones, trans_err * ones],
        axis=0)


# -----------------------------------------------------------------------------
# Kernel wrappers
# -----------------------------------------------------------------------------
def depth_model(params, x_nchw):
    N, Cin, H, W = x_nchw.shape
    HW = H * W
    M = N * HW
    tile_n = _pick_tile_images(N, HW)
    gm = tile_n * HW
    x_cm = jnp.transpose(x_nchw, (1, 0, 2, 3)).reshape(Cin, M).astype(jnp.bfloat16)
    masks = _conv_masks(H, W, N)
    w1, b1 = _prep_conv_w(params['d_w1']), _prep_bias(params['d_b1'])
    w2, b2 = _prep_conv_w(params['d_w2']), _prep_bias(params['d_b2'])
    w3, b3 = _prep_conv_w(params['d_w3']), _prep_bias(params['d_b3'])
    d_flat = pl.pallas_call(
        functools.partial(_depth_cnn_kernel, W=W),
        grid=(M // gm,),
        in_specs=[
            pl.BlockSpec((Cin, gm), lambda i: (0, i)),
            pl.BlockSpec((9, gm), lambda i: (0, i)),
            _full_block(w1), _full_block(b1),
            _full_block(w2), _full_block(b2),
            _full_block(w3), _full_block(b3),
        ],
        out_specs=pl.BlockSpec((1, gm), lambda i: (0, i)),
        out_shape=jax.ShapeDtypeStruct((1, M), jnp.float32),
        compiler_params=pltpu.CompilerParams(dimension_semantics=("parallel",)),
    )(x_cm, masks, w1, b1, w2, b2, w3, b3)
    return jnp.transpose(d_flat.reshape(1, N, H, W), (1, 0, 2, 3))   # (N,1,H,W)


def motion_model(params, pairs_nchw, H, W):
    Nm, Cin, _, _ = pairs_nchw.shape
    HW = H * W
    M = Nm * HW
    x_cm = jnp.transpose(pairs_nchw, (1, 0, 2, 3)).reshape(Cin, M).astype(jnp.bfloat16)
    masks = _conv_masks(H, W, Nm)
    wc, bc = _prep_conv_w(params['m_wc']), _prep_bias(params['m_bc'])
    wres, bres = _prep_conv_w(params['m_wres']), _prep_bias(params['m_bres'])
    wrot, brot = params['m_wrot'].T.astype(jnp.float32), _prep_bias(params['m_brot'])
    wtr, btr = params['m_wtr'].T.astype(jnp.float32), _prep_bias(params['m_btr'])
    wintr, bintr = params['m_wintr'].T.astype(jnp.float32), _prep_bias(params['m_bintr'])
    args = (x_cm, masks, wc, bc, wres, bres, wrot, brot, wtr, btr, wintr, bintr)
    rot_t, tr_t, intr_t, res_cm = pl.pallas_call(
        functools.partial(_motion_cnn_kernel, W=W, HW=HW),
        grid=(1,),
        in_specs=[_full_block(a) for a in args],
        out_specs=(
            pl.BlockSpec((3, Nm), lambda i: (0, 0)),
            pl.BlockSpec((3, Nm), lambda i: (0, 0)),
            pl.BlockSpec((4, Nm), lambda i: (0, 0)),
            pl.BlockSpec((3, M), lambda i: (0, 0)),
        ),
        out_shape=(
            jax.ShapeDtypeStruct((3, Nm), jnp.float32),
            jax.ShapeDtypeStruct((3, Nm), jnp.float32),
            jax.ShapeDtypeStruct((4, Nm), jnp.float32),
            jax.ShapeDtypeStruct((3, M), jnp.float32),
        ),
    )(*args)
    rot = jnp.transpose(rot_t) * 1e-3                         # (Nm, 3)
    trans = (jnp.transpose(tr_t) * 1e-3)[:, :, None, None]    # (Nm, 3, 1, 1)
    intr = build_intrinsics(jnp.transpose(intr_t), H, W)      # (Nm, 3, 3)
    res = jnp.transpose(res_cm.reshape(3, Nm, H, W), (1, 0, 2, 3)) * 1e-3
    return rot, trans, res, intr


def compute_projected_coords(depth, translation, rotation, intrinsics):
    """depth (N,1,H,W), translation (N,3,H,W), rotation (N,3,3), K (N,3,3)."""
    N, _, H, W = depth.shape
    HW = H * W
    # TODO(synk): 3x3 matrix inverse / products kept in plain JAX glue.
    Kinv = jnp.linalg.inv(intrinsics)
    A = jnp.einsum('bij,bjk,bkl->bil', intrinsics, rotation, Kinv)
    A9 = A.reshape(N, 9).astype(jnp.float32)
    K9 = intrinsics.reshape(N, 9).astype(jnp.float32)
    xg, yg = _pixel_coords(H, W)
    coords, mask = pl.pallas_call(
        functools.partial(_project_kernel, H=H, W=W),
        grid=(N,),
        in_specs=[
            pl.BlockSpec(memory_space=pltpu.MemorySpace.SMEM),
            pl.BlockSpec(memory_space=pltpu.MemorySpace.SMEM),
            pl.BlockSpec((1, 1, HW), lambda b: (b, 0, 0)),
            pl.BlockSpec((1, 3, HW), lambda b: (b, 0, 0)),
            pl.BlockSpec((1, HW), lambda b: (0, 0)),
            pl.BlockSpec((1, HW), lambda b: (0, 0)),
        ],
        out_specs=(
            pl.BlockSpec((1, 3, HW), lambda b: (b, 0, 0)),
            pl.BlockSpec((1, 1, HW), lambda b: (b, 0, 0)),
        ),
        out_shape=(
            jax.ShapeDtypeStruct((N, 3, HW), jnp.float32),
            jax.ShapeDtypeStruct((N, 1, HW), jnp.float32),
        ),
        compiler_params=pltpu.CompilerParams(dimension_semantics=("parallel",)),
    )(A9, K9,
      depth.reshape(N, 1, HW).astype(jnp.float32),
      translation.reshape(N, 3, HW).astype(jnp.float32),
      xg, yg)
    return coords, mask


def fused_depth_motion_losses(depth_stack, rgb_stack, residual_translation,
                              translation):
    N, _, H, W = depth_stack.shape
    HW = H * W
    ww, hh = _pixel_coords(H, W)
    args = (
        depth_stack.reshape(N, 1, HW).astype(jnp.float32),
        rgb_stack.reshape(N, 3, HW).astype(jnp.float32),
        residual_translation.reshape(N, 3, HW).astype(jnp.float32),
        translation.reshape(N, 3, HW).astype(jnp.float32),
        ww.reshape(1, 1, HW),
        hh.reshape(1, 1, HW),
    )
    disp, sc = pl.pallas_call(
        functools.partial(_depth_motion_reg_kernel, H=H, W=W),
        grid=(1,),
        in_specs=[_full_block(a) for a in args],
        out_specs=(
            pl.BlockSpec((N, 1, HW), lambda i: (0, 0, 0)),
            pl.BlockSpec((4, 128), lambda i: (0, 0)),
        ),
        out_shape=(
            jax.ShapeDtypeStruct((N, 1, HW), jnp.float32),
            jax.ShapeDtypeStruct((4, 128), jnp.float32),
        ),
    )(*args)
    return disp.reshape(N, 1, H, W), sc


def fused_masked_means(pz, res_depth, closer, ratio, rgb, res_rgb, ssim_val, ssim_w):
    N, H, W = pz.shape
    HW = H * W
    S = ssim_val.shape[2] * ssim_val.shape[3]
    args = (
        pz.reshape(N, 1, HW).astype(jnp.float32),
        res_depth.reshape(N, 1, HW).astype(jnp.float32),
        closer.reshape(N, 1, HW).astype(jnp.float32),
        ratio.reshape(N, 1, HW).astype(jnp.float32),
        rgb.reshape(N, 3, HW).astype(jnp.float32),
        res_rgb.reshape(N, 3, HW).astype(jnp.float32),
        ssim_val.reshape(N, 3, S).astype(jnp.float32),
        ssim_w.reshape(N, 1, S).astype(jnp.float32),
    )
    return pl.pallas_call(
        _masked_mean_kernel,
        grid=(1,),
        in_specs=[_full_block(a) for a in args],
        out_specs=pl.BlockSpec((4, 128), lambda i: (0, 0)),
        out_shape=jax.ShapeDtypeStruct((4, 128), jnp.float32),
    )(*args)


# -----------------------------------------------------------------------------
# Plain-JAX glue (gathers, pooling, tiny 3x3 algebra, parameter setup)
# -----------------------------------------------------------------------------
def bilinear_resample(data, px, py):
    # TODO(synk): data-dependent bilinear gather kept in plain JAX (no clean
    # Pallas TPU gather primitive for arbitrary per-pixel coordinates).
    N, C, H, W = data.shape
    x0 = jnp.floor(px)
    y0 = jnp.floor(py)
    wx1 = px - x0
    wy1 = py - y0
    wx0 = 1.0 - wx1
    wy0 = 1.0 - wy1
    flat = data.reshape(N, C, H * W)

    def gather(xi, yi):
        xi_c = jnp.clip(xi, 0, W - 1).astype(jnp.int32)
        yi_c = jnp.clip(yi, 0, H - 1).astype(jnp.int32)
        idx = (yi_c * W + xi_c).reshape(N, 1, H * W)
        idx = jnp.broadcast_to(idx, (N, C, H * W))
        return jnp.take_along_axis(flat, idx, axis=2).reshape(N, C, H, W)

    v00 = gather(x0, y0)
    v01 = gather(x0 + 1, y0)
    v10 = gather(x0, y0 + 1)
    v11 = gather(x0 + 1, y0 + 1)
    wx0 = wx0[:, None]; wx1 = wx1[:, None]
    wy0 = wy0[:, None]; wy1 = wy1[:, None]
    return v00 * wy0 * wx0 + v01 * wy0 * wx1 + v10 * wy1 * wx0 + v11 * wy1 * wx1


def _avg_pool3x3(t):
    return lax.reduce_window(t, 0.0, lax.add, (1, 1, 3, 3), (1, 1, 1, 1), 'VALID') / 9.0


def weighted_ssim(x, y, weight, c1=1e-4, c2=9e-4):
    # TODO(synk): 3x3 average pooling for SSIM kept in plain JAX (windowed pooling glue).
    w_avg = _avg_pool3x3(weight)
    inv = 1.0 / (w_avg + 1e-8)

    def wavg(t):
        return _avg_pool3x3(t * weight) * inv

    mu_x = wavg(x)
    mu_y = wavg(y)
    sxx = wavg(x * x) - mu_x * mu_x
    syy = wavg(y * y) - mu_y * mu_y
    sxy = wavg(x * y) - mu_x * mu_y
    ssim_n = (2.0 * mu_x * mu_y + c1) * (2.0 * sxy + c2)
    ssim_d = (mu_x * mu_x + mu_y * mu_y + c1) * (sxx + syy + c2)
    err = jnp.clip((1.0 - ssim_n / ssim_d) * 0.5, 0.0, 1.0)
    return err, w_avg


def rotation_from_euler_angles(ang):
    sx, cx = jnp.sin(ang[:, 0]), jnp.cos(ang[:, 0])
    sy, cy = jnp.sin(ang[:, 1]), jnp.cos(ang[:, 1])
    sz, cz = jnp.sin(ang[:, 2]), jnp.cos(ang[:, 2])
    r00 = cz * cy
    r01 = cz * sy * sx - sz * cx
    r02 = cz * sy * cx + sz * sx
    r10 = sz * cy
    r11 = sz * sy * sx + cz * cx
    r12 = sz * sy * cx - cz * sx
    r20 = -sy
    r21 = cy * sx
    r22 = cy * cx
    return jnp.stack([jnp.stack([r00, r01, r02], -1),
                      jnp.stack([r10, r11, r12], -1),
                      jnp.stack([r20, r21, r22], -1)], axis=1)


def build_intrinsics(p, H, W):
    fx = (jax.nn.softplus(p[:, 0]) + 0.5) * W
    fy = (jax.nn.softplus(p[:, 1]) + 0.5) * H
    cx = jax.nn.sigmoid(p[:, 2]) * W
    cy = jax.nn.sigmoid(p[:, 3]) * H
    z = jnp.zeros_like(fx)
    o = jnp.ones_like(fx)
    return jnp.stack([jnp.stack([fx, z, cx], -1),
                      jnp.stack([z, fy, cy], -1),
                      jnp.stack([z, z, o], -1)], axis=1)


def init_params(key):
    ks = jax.random.split(key, 8)
    s = 0.05
    n = lambda k, shp: s * jax.random.normal(k, shp, jnp.float32)
    return {
        'd_w1': n(ks[0], (3, 3, 3, 8)), 'd_b1': jnp.zeros((8,), jnp.float32),
        'd_w2': n(ks[1], (3, 3, 8, 8)), 'd_b2': jnp.zeros((8,), jnp.float32),
        'd_w3': n(ks[2], (3, 3, 8, 1)), 'd_b3': jnp.zeros((1,), jnp.float32),
        'm_wc': n(ks[3], (3, 3, 8, 8)), 'm_bc': jnp.zeros((8,), jnp.float32),
        'm_wrot': n(ks[4], (8, 3)), 'm_brot': jnp.zeros((3,), jnp.float32),
        'm_wtr': n(ks[5], (8, 3)), 'm_btr': jnp.zeros((3,), jnp.float32),
        'm_wintr': n(ks[6], (8, 4)), 'm_bintr': jnp.zeros((4,), jnp.float32),
        'm_wres': n(ks[7], (3, 3, 8, 3)), 'm_bres': jnp.zeros((3,), jnp.float32),
    }


def compute_outputs(params, x, steps, motion_burnin_steps):
    images = [x[('color', -1, 0)], x[('color', 0, 0)]]
    B = images[0].shape[0]
    input_images = [x[('color_augmented', -1, 0)], x[('color_augmented', 0, 0)]]
    input_stack = jnp.concatenate(input_images, axis=0)
    pred_depth = depth_model(params, input_stack)
    pred_depth = [pred_depth[:B], pred_depth[B:]]
    motion_features = [jnp.concatenate((input_images[0], pred_depth[0]), axis=1),
                       jnp.concatenate((input_images[1], pred_depth[1]), axis=1)]
    motion_feature_pairs = jnp.concatenate(motion_features, axis=1)
    flipped_pairs = jnp.concatenate(motion_features[::-1], axis=1)
    input_pairs = jnp.concatenate((motion_feature_pairs, flipped_pairs), axis=0)
    H, W = images[0].shape[2], images[0].shape[3]
    rotation, translation, residual_translation, intrinsics_mat = motion_model(
        params, input_pairs, H, W)
    rotation = rotation_from_euler_angles(rotation)
    rotation = [rotation[:B], rotation[B:]]
    translation = [translation[:B], translation[B:]]
    scale = jnp.clip(2.0 * float(steps) / float(motion_burnin_steps) - 1.0, 0.0, 1.0)
    residual_translation = residual_translation * scale
    residual_translation = [residual_translation[:B], residual_translation[B:]]
    intrinsics_mat = 0.5 * (intrinsics_mat[:B] + intrinsics_mat[B:])
    return {'rgb': images, 'depth': pred_depth, 'rotation': rotation,
            'background_translation': translation,
            'residual_translation': residual_translation,
            'intrinsics': [intrinsics_mat] * 2}


def forward(params, x, loss_weights, steps=15000, motion_burnin_steps=20000):
    outputs = compute_outputs(params, x, steps, motion_burnin_steps)
    losses = {}
    additional_metrics = {}
    rgb_stack = jnp.concatenate(outputs['rgb'], axis=0)
    flipped_rgb_stack = jnp.concatenate(outputs['rgb'][::-1], axis=0)
    depth_stack = jnp.concatenate(outputs['depth'], axis=0)
    flipped_depth_stack = lax.stop_gradient(
        jnp.concatenate(outputs['depth'][::-1], axis=0))

    bg = jnp.concatenate(outputs['background_translation'], axis=0)
    res = jnp.concatenate(outputs['residual_translation'], axis=0)
    bg_f = jnp.concatenate(outputs['background_translation'][::-1], axis=0)
    res_f = jnp.concatenate(outputs['residual_translation'][::-1], axis=0)
    translation = bg + res
    flipped_translation = bg_f + res_f
    outputs['translation'] = translation
    rotation = jnp.concatenate(outputs['rotation'], axis=0)
    flipped_rotation = jnp.concatenate(outputs['rotation'][::-1], axis=0)
    intrinsics = jnp.concatenate(outputs['intrinsics'], axis=0)

    # fused depth-variance / depth-smoothing / motion-regularizer kernel
    disparity, scA = fused_depth_motion_losses(depth_stack, rgb_stack, res, translation)
    losses['depth_variance'] = scA[0, 0]
    losses['depth_smoothing'] = scA[1, 0]
    losses['motion_smoothing'] = scA[2, 0]
    losses['motion_sparsity'] = scA[3, 0]
    outputs['disparity'] = disparity

    coords, proj_mask = compute_projected_coords(
        depth_stack, translation, rotation, intrinsics)
    N, _, H, W = depth_stack.shape
    px = coords[:, 0].reshape(N, H, W)
    py = coords[:, 1].reshape(N, H, W)
    pz = coords[:, 2].reshape(N, H, W)
    mask = proj_mask.reshape(N, H, W)

    rgbd_f = jnp.concatenate([flipped_rgb_stack, flipped_depth_stack], axis=1)
    resampled = bilinear_resample(rgbd_f, px, py)
    res_rgb, res_depth = resampled[:, :3], resampled[:, 3]
    closer = mask * (pz <= res_depth).astype(jnp.float32)
    ssim_val, ssim_w = weighted_ssim(res_rgb, rgb_stack, closer[:, None])

    # translation cycle-consistency ratio field (tiny elementwise glue)
    trans_f_res = bilinear_resample(flipped_translation, px, py)
    rot_trans = jnp.einsum('bij,bjhw->bihw', flipped_rotation, translation)
    residm = rot_trans + trans_f_res
    ratio = (jnp.sum(jnp.square(residm), axis=1)
             / (1e-24 + jnp.sum(jnp.square(translation), axis=1)
                + jnp.sum(jnp.square(trans_f_res), axis=1)))

    # fused masked-mean reductions
    scB = fused_masked_means(pz, res_depth, closer, ratio, rgb_stack, res_rgb,
                             ssim_val, ssim_w)
    losses['depth_consistency'] = scB[0, 0]
    losses['rgb_consistency'] = scB[1, 0]
    losses['ssim'] = scB[2, 0]
    losses['translation_cycle_consistency'] = scB[3, 0]

    # rotation cycle consistency (tiny 3x3 algebra, plain JAX glue)
    eye = jnp.eye(3, dtype=jnp.float32)[None]
    r_unit = jnp.einsum('bij,bjk->bik', flipped_rotation, rotation)
    num = jnp.mean(jnp.square(r_unit - eye), axis=(1, 2))
    d1 = jnp.mean(jnp.square(rotation - eye), axis=(1, 2))
    d2 = jnp.mean(jnp.square(flipped_rotation - eye), axis=(1, 2))
    losses['rotation_cycle_consistency'] = jnp.mean(num / (1e-24 + d1 + d2))

    outputs['frame2rgb_resampled'] = resampled[:, :3]
    outputs['frame2depth_resampled'] = resampled[:, 3]

    for key in list(losses.keys()):
        assert key in loss_weights, f'Key {key} not in loss weights'
        w = loss_weights[key]
        if w == 0:
            additional_metrics[f'raw_{key}'] = losses[key]
        losses[key] = losses[key] * (w * 2.0)
    return losses, additional_metrics, outputs


# -----------------------------------------------------------------------------
if __name__ == "__main__":
    key = jax.random.PRNGKey(0)
    kp, k1, k2, k3, k4 = jax.random.split(key, 5)
    B, H, W = 2, 16, 16
    x = {
        ('color', -1, 0): jax.random.uniform(k1, (B, 3, H, W), jnp.float32),
        ('color', 0, 0): jax.random.uniform(k2, (B, 3, H, W), jnp.float32),
        ('color_augmented', -1, 0): jax.random.uniform(k3, (B, 3, H, W), jnp.float32),
        ('color_augmented', 0, 0): jax.random.uniform(k4, (B, 3, H, W), jnp.float32),
    }
    params = init_params(kp)
    loss_weights = {
        'depth_variance': 0.0,
        'depth_smoothing': 1e-3,
        'rgb_consistency': 1.0,
        'depth_consistency': 0.05,
        'ssim': 3.0,
        'rotation_cycle_consistency': 1e-3,
        'translation_cycle_consistency': 5e-2,
        'motion_smoothing': 1e-3,
        'motion_sparsity': 0.04,
    }
    losses, metrics, outputs = forward(params, x, loss_weights,
                                       steps=15000, motion_burnin_steps=20000)
    jax.block_until_ready((losses, metrics, outputs))
    print("KERNEL_OK")
</pallas_src>

<mosaic_0001>
module attributes {stable_mosaic.version = 11 : i64} {
  func.func @_depth_cnn_kernel(%arg0: i32, %arg1: memref<3x1024xbf16, #tpu.memory_space<vmem>>, %arg2: memref<9x1024xbf16, #tpu.memory_space<vmem>>, %arg3: memref<9x8x3xbf16, #tpu.memory_space<vmem>>, %arg4: memref<8x1xf32, #tpu.memory_space<vmem>>, %arg5: memref<9x8x8xbf16, #tpu.memory_space<vmem>>, %arg6: memref<8x1xf32, #tpu.memory_space<vmem>>, %arg7: memref<9x1x8xbf16, #tpu.memory_space<vmem>>, %arg8: memref<1x1xf32, #tpu.memory_space<vmem>>, %arg9: memref<1x1024xf32, #tpu.memory_space<vmem>>) attributes {dimension_semantics = [#tpu.dimension_semantics<parallel>], iteration_bounds = array<i64: 1>, scalar_prefetch = 0 : i64, scratch_operands = 0 : i64, tpu.core_type = #tpu.core_type<tc>, window_params = [{transform_indices = @transform_0, window_bounds = array<i64: 3, 1024>}, {transform_indices = @transform_1, window_bounds = array<i64: 9, 1024>}, {pipeline_mode = #tpu.pipeline_mode<synchronous>, transform_indices = @transform_2, window_bounds = array<i64: 9, 8, 3>}, {pipeline_mode = #tpu.pipeline_mode<synchronous>, transform_indices = @transform_3, window_bounds = array<i64: 8, 1>}, {pipeline_mode = #tpu.pipeline_mode<synchronous>, transform_indices = @transform_4, window_bounds = array<i64: 9, 8, 8>}, {pipeline_mode = #tpu.pipeline_mode<synchronous>, transform_indices = @transform_5, window_bounds = array<i64: 8, 1>}, {pipeline_mode = #tpu.pipeline_mode<synchronous>, transform_indices = @transform_6, window_bounds = array<i64: 9, 1, 8>}, {pipeline_mode = #tpu.pipeline_mode<synchronous>, transform_indices = @transform_7, window_bounds = array<i64: 1, 1>}, {transform_indices = @transform_8, window_bounds = array<i64: 1, 1024>}]} {
    %c0 = arith.constant 0 : index
    %c0_0 = arith.constant 0 : index
    %0 = vector.load %arg2[%c0, %c0_0] : memref<9x1024xbf16, #tpu.memory_space<vmem>>, vector<9x1024xbf16>
    %c0_1 = arith.constant 0 : index
    %c0_2 = arith.constant 0 : index
    %1 = vector.load %arg1[%c0_1, %c0_2] : memref<3x1024xbf16, #tpu.memory_space<vmem>>, vector<3x1024xbf16>
    %cst = arith.constant 0.000000e+00 : f32
    %2 = vector.broadcast %cst : f32 to vector<8x1024xf32>
    %3 = vector.extract_strided_slice %1 {offsets = [0, 1007], sizes = [3, 17], strides = [1, 1]} : vector<3x1024xbf16> to vector<3x17xbf16>
    %4 = vector.extract_strided_slice %1 {offsets = [0, 0], sizes = [3, 1007], strides = [1, 1]} : vector<3x1024xbf16> to vector<3x1007xbf16>
    %5 = tpu.concatenate %3, %4 in 1 : vector<3x17xbf16>, vector<3x1007xbf16> -> vector<3x1024xbf16>
    %6 = vector.extract_strided_slice %0 {offsets = [0, 0], sizes = [1, 1024], strides = [1, 1]} : vector<9x1024xbf16> to vector<1x1024xbf16>
    %7 = vector.broadcast %6 : vector<1x1024xbf16> to vector<3x1024xbf16>
    %8 = arith.mulf %5, %7 : vector<3x1024xbf16>
    %c0_3 = arith.constant 0 : index
    %c0_4 = arith.constant 0 : index
    %c0_5 = arith.constant 0 : index
    %9 = vector.load %arg3[%c0_3, %c0_4, %c0_5] : memref<9x8x3xbf16, #tpu.memory_space<vmem>>, vector<1x8x3xbf16>
    %10 = vector.shape_cast %9 : vector<1x8x3xbf16> to vector<8x3xbf16>
    %cst_6 = arith.constant dense<0.000000e+00> : vector<8x1024xf32>
    %11 = tpu.matmul %10, %8, %cst_6 {dimension_numbers = #tpu.dot_dimension_numbers<[1], [0], [0], [1], [0, 0, 1, 1], [], []>} : vector<8x3xbf16>, vector<3x1024xbf16>, vector<8x1024xf32> -> vector<8x1024xf32>
    %12 = arith.addf %2, %11 : vector<8x1024xf32>
    %13 = vector.extract_strided_slice %1 {offsets = [0, 1008], sizes = [3, 16], strides = [1, 1]} : vector<3x1024xbf16> to vector<3x16xbf16>
    %14 = vector.extract_strided_slice %1 {offsets = [0, 0], sizes = [3, 1008], strides = [1, 1]} : vector<3x1024xbf16> to vector<3x1008xbf16>
    %15 = tpu.concatenate %13, %14 in 1 : vector<3x16xbf16>, vector<3x1008xbf16> -> vector<3x1024xbf16>
    %16 = vector.extract_strided_slice %0 {offsets = [1, 0], sizes = [1, 1024], strides = [1, 1]} : vector<9x1024xbf16> to vector<1x1024xbf16>
    %17 = vector.broadcast %16 : vector<1x1024xbf16> to vector<3x1024xbf16>
    %18 = arith.mulf %15, %17 : vector<3x1024xbf16>
    %c1 = arith.constant 1 : index
    %c0_7 = arith.constant 0 : index
    %c0_8 = arith.constant 0 : index
    %19 = vector.load %arg3[%c1, %c0_7, %c0_8] : memref<9x8x3xbf16, #tpu.memory_space<vmem>>, vector<1x8x3xbf16>
    %20 = vector.shape_cast %19 : vector<1x8x3xbf16> to vector<8x3xbf16>
    %cst_9 = arith.constant dense<0.000000e+00> : vector<8x1024xf32>
    %21 = tpu.matmul %20, %18, %cst_9 {dimension_numbers = #tpu.dot_dimension_numbers<[1], [0], [0], [1], [0, 0, 1, 1], [], []>} : vector<8x3xbf16>, vector<3x1024xbf16>, vector<8x1024xf32> -> vector<8x1024xf32>
    %22 = arith.addf %12, %21 : vector<8x1024xf32>
    %23 = vector.extract_strided_slice %1 {offsets = [0, 1009], sizes = [3, 15], strides = [1, 1]} : vector<3x1024xbf16> to vector<3x15xbf16>
    %24 = vector.extract_strided_slice %1 {offsets = [0, 0], sizes = [3, 1009], strides = [1, 1]} : vector<3x1024xbf16> to vector<3x1009xbf16>
    %25 = tpu.concatenate %23, %24 in 1 : vector<3x15xbf16>, vector<3x1009xbf16> -> vector<3x1024xbf16>
    %26 = vector.extract_strided_slice %0 {offsets = [2, 0], sizes = [1, 1024], strides = [1, 1]} : vector<9x1024xbf16> to vector<1x1024xbf16>
    %27 = vector.broadcast %26 : vector<1x1024xbf16> to vector<3x1024xbf16>
    %28 = arith.mulf %25, %27 : vector<3x1024xbf16>
    %c2 = arith.constant 2 : index
    %c0_10 = arith.constant 0 : index
    %c0_11 = arith.constant 0 : index
    %29 = vector.load %arg3[%c2, %c0_10, %c0_11] : memref<9x8x3xbf16, #tpu.memory_space<vmem>>, vector<1x8x3xbf16>
    %30 = vector.shape_cast %29 : vector<1x8x3xbf16> to vector<8x3xbf16>
    %cst_12 = arith.constant dense<0.000000e+00> : vector<8x1024xf32>
    %31 = tpu.matmul %30, %28, %cst_12 {dimension_numbers = #tpu.dot_dimension_numbers<[1], [0], [0], [1], [0, 0, 1, 1], [], []>} : vector<8x3xbf16>, vector<3x1024xbf16>, vector<8x1024xf32> -> vector<8x1024xf32>
    %32 = arith.addf %22, %31 : vector<8x1024xf32>
    %33 = vector.extract_strided_slice %1 {offsets = [0, 1023], sizes = [3, 1], strides = [1, 1]} : vector<3x1024xbf16> to vector<3x1xbf16>
    %34 = vector.extract_strided_slice %1 {offsets = [0, 0], sizes = [3, 1023], strides = [1, 1]} : vector<3x1024xbf16> to vector<3x1023xbf16>
    %35 = tpu.concatenate %33, %34 in 1 : vector<3x1xbf16>, vector<3x1023xbf16> -> vector<3x1024xbf16>
    %36 = vector.extract_strided_slice %0 {offsets = [3, 0], sizes = [1, 1024], strides = [1, 1]} : vector<9x1024xbf16> to vector<1x1024xbf16>
    %37 = vector.broadcast %36 : vector<1x1024xbf16> to vector<3x1024xbf16>
    %38 = arith.mulf %35, %37 : vector<3x1024xbf16>
    %c3 = arith.constant 3 : index
    %c0_13 = arith.constant 0 : index
    %c0_14 = arith.constant 0 : index
    %39 = vector.load %arg3[%c3, %c0_13, %c0_14] : memref<9x8x3xbf16, #tpu.memory_space<vmem>>, vector<1x8x3xbf16>
    %40 = vector.shape_cast %39 : vector<1x8x3xbf16> to vector<8x3xbf16>
    %cst_15 = arith.constant dense<0.000000e+00> : vector<8x1024xf32>
    %41 = tpu.matmul %40, %38, %cst_15 {dimension_numbers = #tpu.dot_dimension_numbers<[1], [0], [0], [1], [0, 0, 1, 1], [], []>} : vector<8x3xbf16>, vector<3x1024xbf16>, vector<8x1024xf32> -> vector<8x1024xf32>
    %42 = arith.addf %32, %41 : vector<8x1024xf32>
    %c4 = arith.constant 4 : index
    %c0_16 = arith.constant 0 : index
    %c0_17 = arith.constant 0 : index
    %43 = vector.load %arg3[%c4, %c0_16, %c0_17] : memref<9x8x3xbf16, #tpu.memory_space<vmem>>, vector<1x8x3xbf16>
    %44 = vector.shape_cast %43 : vector<1x8x3xbf16> to vector<8x3xbf16>
    %cst_18 = arith.constant dense<0.000000e+00> : vector<8x1024xf32>
    %45 = tpu.matmul %44, %1, %cst_18 {dimension_numbers = #tpu.dot_dimension_numbers<[1], [0], [0], [1], [0, 0, 1, 1], [], []>} : vector<8x3xbf16>, vector<3x1024xbf16>, vector<8x1024xf32> -> vector<8x1024xf32>
    %46 = arith.addf %42, %45 : vector<8x1024xf32>
    %47 = vector.extract_strided_slice %1 {offsets = [0, 1], sizes = [3, 1023], strides = [1, 1]} : vector<3x1024xbf16> to vector<3x1023xbf16>
    %48 = vector.extract_strided_slice %1 {offsets = [0, 0], sizes = [3, 1], strides = [1, 1]} : vector<3x1024xbf16> to vector<3x1xbf16>
    %49 = tpu.concatenate %47, %48 in 1 : vector<3x1023xbf16>, vector<3x1xbf16> -> vector<3x1024xbf16>
    %50 = vector.extract_strided_slice %0 {offsets = [5, 0], sizes = [1, 1024], strides = [1, 1]} : vector<9x1024xbf16> to vector<1x1024xbf16>
    %51 = vector.broadcast %50 : vector<1x1024xbf16> to vector<3x1024xbf16>
    %52 = arith.mulf %49, %51 : vector<3x1024xbf16>
    %c5 = arith.constant 5 : index
    %c0_19 = arith.constant 0 : index
    %c0_20 = arith.constant 0 : index
    %53 = vector.load %arg3[%c5, %c0_19, %c0_20] : memref<9x8x3xbf16, #tpu.memory_space<vmem>>, vector<1x8x3xbf16>
    %54 = vector.shape_cast %53 : vector<1x8x3xbf16> to vector<8x3xbf16>
    %cst_21 = arith.constant dense<0.000000e+00> : vector<8x1024xf32>
    %55 = tpu.matmul %54, %52, %cst_21 {dimension_numbers = #tpu.dot_dimension_numbers<[1], [0], [0], [1], [0, 0, 1, 1], [], []>} : vector<8x3xbf16>, vector<3x1024xbf16>, vector<8x1024xf32> -> vector<8x1024xf32>
    %56 = arith.addf %46, %55 : vector<8x1024xf32>
    %57 = vector.extract_strided_slice %1 {offsets = [0, 15], sizes = [3, 1009], strides = [1, 1]} : vector<3x1024xbf16> to vector<3x1009xbf16>
    %58 = vector.extract_strided_slice %1 {offsets = [0, 0], sizes = [3, 15], strides = [1, 1]} : vector<3x1024xbf16> to vector<3x15xbf16>
    %59 = tpu.concatenate %57, %58 in 1 : vector<3x1009xbf16>, vector<3x15xbf16> -> vector<3x1024xbf16>
    %60 = vector.extract_strided_slice %0 {offsets = [6, 0], sizes = [1, 1024], strides = [1, 1]} : vector<9x1024xbf16> to vector<1x1024xbf16>
    %61 = vector.broadcast %60 : vector<1x1024xbf16> to vector<3x1024xbf16>
    %62 = arith.mulf %59, %61 : vector<3x1024xbf16>
    %c6 = arith.constant 6 : index
    %c0_22 = arith.constant 0 : index
    %c0_23 = arith.constant 0 : index
    %63 = vector.load %arg3[%c6, %c0_22, %c0_23] : memref<9x8x3xbf16, #tpu.memory_space<vmem>>, vector<1x8x3xbf16>
    %64 = vector.shape_cast %63 : vector<1x8x3xbf16> to vector<8x3xbf16>
    %cst_24 = arith.constant dense<0.000000e+00> : vector<8x1024xf32>
    %65 = tpu.matmul %64, %62, %cst_24 {dimension_numbers = #tpu.dot_dimension_numbers<[1], [0], [0], [1], [0, 0, 1, 1], [], []>} : vector<8x3xbf16>, vector<3x1024xbf16>, vector<8x1024xf32> -> vector<8x1024xf32>
    %66 = arith.addf %56, %65 : vector<8x1024xf32>
    %67 = vector.extract_strided_slice %1 {offsets = [0, 16], sizes = [3, 1008], strides = [1, 1]} : vector<3x1024xbf16> to vector<3x1008xbf16>
    %68 = vector.extract_strided_slice %1 {offsets = [0, 0], sizes = [3, 16], strides = [1, 1]} : vector<3x1024xbf16> to vector<3x16xbf16>
    %69 = tpu.concatenate %67, %68 in 1 : vector<3x1008xbf16>, vector<3x16xbf16> -> vector<3x1024xbf16>
    %70 = vector.extract_strided_slice %0 {offsets = [7, 0], sizes = [1, 1024], strides = [1, 1]} : vector<9x1024xbf16> to vector<1x1024xbf16>
    %71 = vector.broadcast %70 : vector<1x1024xbf16> to vector<3x1024xbf16>
    %72 = arith.mulf %69, %71 : vector<3x1024xbf16>
    %c7 = arith.constant 7 : index
    %c0_25 = arith.constant 0 : index
    %c0_26 = arith.constant 0 : index
    %73 = vector.load %arg3[%c7, %c0_25, %c0_26] : memref<9x8x3xbf16, #tpu.memory_space<vmem>>, vector<1x8x3xbf16>
    %74 = vector.shape_cast %73 : vector<1x8x3xbf16> to vector<8x3xbf16>
    %cst_27 = arith.constant dense<0.000000e+00> : vector<8x1024xf32>
    %75 = tpu.matmul %74, %72, %cst_27 {dimension_numbers = #tpu.dot_dimension_numbers<[1], [0], [0], [1], [0, 0, 1, 1], [], []>} : vector<8x3xbf16>, vector<3x1024xbf16>, vector<8x1024xf32> -> vector<8x1024xf32>
    %76 = arith.addf %66, %75 : vector<8x1024xf32>
    %77 = vector.extract_strided_slice %1 {offsets = [0, 17], sizes = [3, 1007], strides = [1, 1]} : vector<3x1024xbf16> to vector<3x1007xbf16>
    %78 = vector.extract_strided_slice %1 {offsets = [0, 0], sizes = [3, 17], strides = [1, 1]} : vector<3x1024xbf16> to vector<3x17xbf16>
    %79 = tpu.concatenate %77, %78 in 1 : vector<3x1007xbf16>, vector<3x17xbf16> -> vector<3x1024xbf16>
    %80 = vector.extract_strided_slice %0 {offsets = [8, 0], sizes = [1, 1024], strides = [1, 1]} : vector<9x1024xbf16> to vector<1x1024xbf16>
    %81 = vector.broadcast %80 : vector<1x1024xbf16> to vector<3x1024xbf16>
    %82 = arith.mulf %79, %81 : vector<3x1024xbf16>
    %c8 = arith.constant 8 : index
    %c0_28 = arith.constant 0 : index
    %c0_29 = arith.constant 0 : index
    %83 = vector.load %arg3[%c8, %c0_28, %c0_29] : memref<9x8x3xbf16, #tpu.memory_space<vmem>>, vector<1x8x3xbf16>
    %84 = vector.shape_cast %83 : vector<1x8x3xbf16> to vector<8x3xbf16>
    %cst_30 = arith.constant dense<0.000000e+00> : vector<8x1024xf32>
    %85 = tpu.matmul %84, %82, %cst_30 {dimension_numbers = #tpu.dot_dimension_numbers<[1], [0], [0], [1], [0, 0, 1, 1], [], []>} : vector<8x3xbf16>, vector<3x1024xbf16>, vector<8x1024xf32> -> vector<8x1024xf32>
    %86 = arith.addf %76, %85 : vector<8x1024xf32>
    %c0_31 = arith.constant 0 : index
    %c0_32 = arith.constant 0 : index
    %87 = vector.load %arg4[%c0_31, %c0_32] : memref<8x1xf32, #tpu.memory_space<vmem>>, vector<8x1xf32>
    %88 = vector.broadcast %87 : vector<8x1xf32> to vector<8x1024xf32>
    %89 = arith.addf %86, %88 : vector<8x1024xf32>
    %cst_33 = arith.constant 0.000000e+00 : f32
    %90 = vector.broadcast %cst_33 : f32 to vector<8x1024xf32>
    %91 = arith.maximumf %89, %90 : vector<8x1024xf32>
    %92 = arith.truncf %91 : vector<8x1024xf32> to vector<8x1024xbf16>
    %cst_34 = arith.constant 0.000000e+00 : f32
    %93 = vector.broadcast %cst_34 : f32 to vector<8x1024xf32>
    %94 = vector.extract_strided_slice %92 {offsets = [0, 1007], sizes = [8, 17], strides = [1, 1]} : vector<8x1024xbf16> to vector<8x17xbf16>
    %95 = vector.extract_strided_slice %92 {offsets = [0, 0], sizes = [8, 1007], strides = [1, 1]} : vector<8x1024xbf16> to vector<8x1007xbf16>
    %96 = tpu.concatenate %94, %95 in 1 : vector<8x17xbf16>, vector<8x1007xbf16> -> vector<8x1024xbf16>
    %97 = vector.extract_strided_slice %0 {offsets = [0, 0], sizes = [1, 1024], strides = [1, 1]} : vector<9x1024xbf16> to vector<1x1024xbf16>
    %98 = vector.broadcast %97 : vector<1x1024xbf16> to vector<8x1024xbf16>
    %99 = arith.mulf %96, %98 : vector<8x1024xbf16>
    %c0_35 = arith.constant 0 : index
    %c0_36 = arith.constant 0 : index
    %c0_37 = arith.constant 0 : index
    %100 = vector.load %arg5[%c0_35, %c0_36, %c0_37] : memref<9x8x8xbf16, #tpu.memory_space<vmem>>, vector<1x8x8xbf16>
    %101 = vector.shape_cast %100 : vector<1x8x8xbf16> to vector<8x8xbf16>
    %cst_38 = arith.constant dense<0.000000e+00> : vector<8x1024xf32>
    %102 = tpu.matmul %101, %99, %cst_38 {dimension_numbers = #tpu.dot_dimension_numbers<[1], [0], [0], [1], [0, 0, 1, 1], [], []>} : vector<8x8xbf16>, vector<8x1024xbf16>, vector<8x1024xf32> -> vector<8x1024xf32>
    %103 = arith.addf %93, %102 : vector<8x1024xf32>
    %104 = vector.extract_strided_slice %92 {offsets = [0, 1008], sizes = [8, 16], strides = [1, 1]} : vector<8x1024xbf16> to vector<8x16xbf16>
    %105 = vector.extract_strided_slice %92 {offsets = [0, 0], sizes = [8, 1008], strides = [1, 1]} : vector<8x1024xbf16> to vector<8x1008xbf16>
    %106 = tpu.concatenate %104, %105 in 1 : vector<8x16xbf16>, vector<8x1008xbf16> -> vector<8x1024xbf16>
    %107 = vector.extract_strided_slice %0 {offsets = [1, 0], sizes = [1, 1024], strides = [1, 1]} : vector<9x1024xbf16> to vector<1x1024xbf16>
    %108 = vector.broadcast %107 : vector<1x1024xbf16> to vector<8x1024xbf16>
    %109 = arith.mulf %106, %108 : vector<8x1024xbf16>
    %c1_39 = arith.constant 1 : index
    %c0_40 = arith.constant 0 : index
    %c0_41 = arith.constant 0 : index
    %110 = vector.load %arg5[%c1_39, %c0_40, %c0_41] : memref<9x8x8xbf16, #tpu.memory_space<vmem>>, vector<1x8x8xbf16>
    %111 = vector.shape_cast %110 : vector<1x8x8xbf16> to vector<8x8xbf16>
    %cst_42 = arith.constant dense<0.000000e+00> : vector<8x1024xf32>
    %112 = tpu.matmul %111, %109, %cst_42 {dimension_numbers = #tpu.dot_dimension_numbers<[1], [0], [0], [1], [0, 0, 1, 1], [], []>} : vector<8x8xbf16>, vector<8x1024xbf16>, vector<8x1024xf32> -> vector<8x1024xf32>
    %113 = arith.addf %103, %112 : vector<8x1024xf32>
    %114 = vector.extract_strided_slice %92 {offsets = [0, 1009], sizes = [8, 15], strides = [1, 1]} : vector<8x1024xbf16> to vector<8x15xbf16>
    %115 = vector.extract_strided_slice %92 {offsets = [0, 0], sizes = [8, 1009], strides = [1, 1]} : vector<8x1024xbf16> to vector<8x1009xbf16>
    %116 = tpu.concatenate %114, %115 in 1 : vector<8x15xbf16>, vector<8x1009xbf16> -> vector<8x1024xbf16>
    %117 = vector.extract_strided_slice %0 {offsets = [2, 0], sizes = [1, 1024], strides = [1, 1]} : vector<9x1024xbf16> to vector<1x1024xbf16>
    %118 = vector.broadcast %117 : vector<1x1024xbf16> to vector<8x1024xbf16>
    %119 = arith.mulf %116, %118 : vector<8x1024xbf16>
    %c2_43 = arith.constant 2 : index
    %c0_44 = arith.constant 0 : index
    %c0_45 = arith.constant 0 : index
    %120 = vector.load %arg5[%c2_43, %c0_44, %c0_45] : memref<9x8x8xbf16, #tpu.memory_space<vmem>>, vector<1x8x8xbf16>
    %121 = vector.shape_cast %120 : vector<1x8x8xbf16> to vector<8x8xbf16>
    %cst_46 = arith.constant dense<0.000000e+00> : vector<8x1024xf32>
    %122 = tpu.matmul %121, %119, %cst_46 {dimension_numbers = #tpu.dot_dimension_numbers<[1], [0], [0], [1], [0, 0, 1, 1], [], []>} : vector<8x8xbf16>, vector<8x1024xbf16>, vector<8x1024xf32> -> vector<8x1024xf32>
    %123 = arith.addf %113, %122 : vector<8x1024xf32>
    %124 = vector.extract_strided_slice %92 {offsets = [0, 1023], sizes = [8, 1], strides = [1, 1]} : vector<8x1024xbf16> to vector<8x1xbf16>
    %125 = vector.extract_strided_slice %92 {offsets = [0, 0], sizes = [8, 1023], strides = [1, 1]} : vector<8x1024xbf16> to vector<8x1023xbf16>
    %126 = tpu.concatenate %124, %125 in 1 : vector<8x1xbf16>, vector<8x1023xbf16> -> vector<8x1024xbf16>
    %127 = vector.extract_strided_slice %0 {offsets = [3, 0], sizes = [1, 1024], strides = [1, 1]} : vector<9x1024xbf16> to vector<1x1024xbf16>
    %128 = vector.broadcast %127 : vector<1x1024xbf16> to vector<8x1024xbf16>
    %129 = arith.mulf %126, %128 : vector<8x1024xbf16>
    %c3_47 = arith.constant 3 : index
    %c0_48 = arith.constant 0 : index
    %c0_49 = arith.constant 0 : index
    %130 = vector.load %arg5[%c3_47, %c0_48, %c0_49] : memref<9x8x8xbf16, #tpu.memory_space<vmem>>, vector<1x8x8xbf16>
    %131 = vector.shape_cast %130 : vector<1x8x8xbf16> to vector<8x8xbf16>
    %cst_50 = arith.constant dense<0.000000e+00> : vector<8x1024xf32>
    %132 = tpu.matmul %131, %129, %cst_50 {dimension_numbers = #tpu.dot_dimension_numbers<[1], [0], [0], [1], [0, 0, 1, 1], [], []>} : vector<8x8xbf16>, vector<8x1024xbf16>, vector<8x1024xf32> -> vector<8x1024xf32>
    %133 = arith.addf %123, %132 : vector<8x1024xf32>
    %c4_51 = arith.constant 4 : index
    %c0_52 = arith.constant 0 : index
    %c0_53 = arith.constant 0 : index
    %134 = vector.load %arg5[%c4_51, %c0_52, %c0_53] : memref<9x8x8xbf16, #tpu.memory_space<vmem>>, vector<1x8x8xbf16>
    %135 = vector.shape_cast %134 : vector<1x8x8xbf16> to vector<8x8xbf16>
    %cst_54 = arith.constant dense<0.000000e+00> : vector<8x1024xf32>
    %136 = tpu.matmul %135, %92, %cst_54 {dimension_numbers = #tpu.dot_dimension_numbers<[1], [0], [0], [1], [0, 0, 1, 1], [], []>} : vector<8x8xbf16>, vector<8x1024xbf16>, vector<8x1024xf32> -> vector<8x1024xf32>
    %137 = arith.addf %133, %136 : vector<8x1024xf32>
    %138 = vector.extract_strided_slice %92 {offsets = [0, 1], sizes = [8, 1023], strides = [1, 1]} : vector<8x1024xbf16> to vector<8x1023xbf16>
    %139 = vector.extract_strided_slice %92 {offsets = [0, 0], sizes = [8, 1], strides = [1, 1]} : vector<8x1024xbf16> to vector<8x1xbf16>
    %140 = tpu.concatenate %138, %139 in 1 : vector<8x1023xbf16>, vector<8x1xbf16> -> vector<8x1024xbf16>
    %141 = vector.extract_strided_slice %0 {offsets = [5, 0], sizes = [1, 1024], strides = [1, 1]} : vector<9x1024xbf16> to vector<1x1024xbf16>
    %142 = vector.broadcast %141 : vector<1x1024xbf16> to vector<8x1024xbf16>
    %143 = arith.mulf %140, %142 : vector<8x1024xbf16>
    %c5_55 = arith.constant 5 : index
    %c0_56 = arith.constant 0 : index
    %c0_57 = arith.constant 0 : index
    %144 = vector.load %arg5[%c5_55, %c0_56, %c0_57] : memref<9x8x8xbf16, #tpu.memory_space<vmem>>, vector<1x8x8xbf16>
    %145 = vector.shape_cast %144 : vector<1x8x8xbf16> to vector<8x8xbf16>
    %cst_58 = arith.constant dense<0.000000e+00> : vector<8x1024xf32>
    %146 = tpu.matmul %145, %143, %cst_58 {dimension_numbers = #tpu.dot_dimension_numbers<[1], [0], [0], [1], [0, 0, 1, 1], [], []>} : vector<8x8xbf16>, vector<8x1024xbf16>, vector<8x1024xf32> -> vector<8x1024xf32>
    %147 = arith.addf %137, %146 : vector<8x1024xf32>
    %148 = vector.extract_strided_slice %92 {offsets = [0, 15], sizes = [8, 1009], strides = [1, 1]} : vector<8x1024xbf16> to vector<8x1009xbf16>
    %149 = vector.extract_strided_slice %92 {offsets = [0, 0], sizes = [8, 15], strides = [1, 1]} : vector<8x1024xbf16> to vector<8x15xbf16>
    %150 = tpu.concatenate %148, %149 in 1 : vector<8x1009xbf16>, vector<8x15xbf16> -> vector<8x1024xbf16>
    %151 = vector.extract_strided_slice %0 {offsets = [6, 0], sizes = [1, 1024], strides = [1, 1]} : vector<9x1024xbf16> to vector<1x1024xbf16>
    %152 = vector.broadcast %151 : vector<1x1024xbf16> to vector<8x1024xbf16>
    %153 = arith.mulf %150, %152 : vector<8x1024xbf16>
    %c6_59 = arith.constant 6 : index
    %c0_60 = arith.constant 0 : index
    %c0_61 = arith.constant 0 : index
    %154 = vector.load %arg5[%c6_59, %c0_60, %c0_61] : memref<9x8x8xbf16, #tpu.memory_space<vmem>>, vector<1x8x8xbf16>
    %155 = vector.shape_cast %154 : vector<1x8x8xbf16> to vector<8x8xbf16>
    %cst_62 = arith.constant dense<0.000000e+00> : vector<8x1024xf32>
    %156 = tpu.matmul %155, %153, %cst_62 {dimension_numbers = #tpu.dot_dimension_numbers<[1], [0], [0], [1], [0, 0, 1, 1], [], []>} : vector<8x8xbf16>, vector<8x1024xbf16>, vector<8x1024xf32> -> vector<8x1024xf32>
    %157 = arith.addf %147, %156 : vector<8x1024xf32>
    %158 = vector.extract_strided_slice %92 {offsets = [0, 16], sizes = [8, 1008], strides = [1, 1]} : vector<8x1024xbf16> to vector<8x1008xbf16>
    %159 = vector.extract_strided_slice %92 {offsets = [0, 0], sizes = [8, 16], strides = [1, 1]} : vector<8x1024xbf16> to vector<8x16xbf16>
    %160 = tpu.concatenate %158, %159 in 1 : vector<8x1008xbf16>, vector<8x16xbf16> -> vector<8x1024xbf16>
    %161 = vector.extract_strided_slice %0 {offsets = [7, 0], sizes = [1, 1024], strides = [1, 1]} : vector<9x1024xbf16> to vector<1x1024xbf16>
    %162 = vector.broadcast %161 : vector<1x1024xbf16> to vector<8x1024xbf16>
    %163 = arith.mulf %160, %162 : vector<8x1024xbf16>
    %c7_63 = arith.constant 7 : index
    %c0_64 = arith.constant 0 : index
    %c0_65 = arith.constant 0 : index
    %164 = vector.load %arg5[%c7_63, %c0_64, %c0_65] : memref<9x8x8xbf16, #tpu.memory_space<vmem>>, vector<1x8x8xbf16>
    %165 = vector.shape_cast %164 : vector<1x8x8xbf16> to vector<8x8xbf16>
    %cst_66 = arith.constant dense<0.000000e+00> : vector<8x1024xf32>
    %166 = tpu.matmul %165, %163, %cst_66 {dimension_numbers = #tpu.dot_dimension_numbers<[1], [0], [0], [1], [0, 0, 1, 1], [], []>} : vector<8x8xbf16>, vector<8x1024xbf16>, vector<8x1024xf32> -> vector<8x1024xf32>
    %167 = arith.addf %157, %166 : vector<8x1024xf32>
    %168 = vector.extract_strided_slice %92 {offsets = [0, 17], sizes = [8, 1007], strides = [1, 1]} : vector<8x1024xbf16> to vector<8x1007xbf16>
    %169 = vector.extract_strided_slice %92 {offsets = [0, 0], sizes = [8, 17], strides = [1, 1]} : vector<8x1024xbf16> to vector<8x17xbf16>
    %170 = tpu.concatenate %168, %169 in 1 : vector<8x1007xbf16>, vector<8x17xbf16> -> vector<8x1024xbf16>
    %171 = vector.extract_strided_slice %0 {offsets = [8, 0], sizes = [1, 1024], strides = [1, 1]} : vector<9x1024xbf16> to vector<1x1024xbf16>
    %172 = vector.broadcast %171 : vector<1x1024xbf16> to vector<8x1024xbf16>
    %173 = arith.mulf %170, %172 : vector<8x1024xbf16>
    %c8_67 = arith.constant 8 : index
    %c0_68 = arith.constant 0 : index
    %c0_69 = arith.constant 0 : index
    %174 = vector.load %arg5[%c8_67, %c0_68, %c0_69] : memref<9x8x8xbf16, #tpu.memory_space<vmem>>, vector<1x8x8xbf16>
    %175 = vector.shape_cast %174 : vector<1x8x8xbf16> to vector<8x8xbf16>
    %cst_70 = arith.constant dense<0.000000e+00> : vector<8x1024xf32>
    %176 = tpu.matmul %175, %173, %cst_70 {dimension_numbers = #tpu.dot_dimension_numbers<[1], [0], [0], [1], [0, 0, 1, 1], [], []>} : vector<8x8xbf16>, vector<8x1024xbf16>, vector<8x1024xf32> -> vector<8x1024xf32>
    %177 = arith.addf %167, %176 : vector<8x1024xf32>
    %c0_71 = arith.constant 0 : index
    %c0_72 = arith.constant 0 : index
    %178 = vector.load %arg6[%c0_71, %c0_72] : memref<8x1xf32, #tpu.memory_space<vmem>>, vector<8x1xf32>
    %179 = vector.broadcast %178 : vector<8x1xf32> to vector<8x1024xf32>
    %180 = arith.addf %177, %179 : vector<8x1024xf32>
    %cst_73 = arith.constant 0.000000e+00 : f32
    %181 = vector.broadcast %cst_73 : f32 to vector<8x1024xf32>
    %182 = arith.maximumf %180, %181 : vector<8x1024xf32>
    %183 = arith.truncf %182 : vector<8x1024xf32> to vector<8x1024xbf16>
    %cst_74 = arith.constant 0.000000e+00 : f32
    %184 = vector.broadcast %cst_74 : f32 to vector<1x1024xf32>
    %185 = vector.extract_strided_slice %183 {offsets = [0, 1007], sizes = [8, 17], strides = [1, 1]} : vector<8x1024xbf16> to vector<8x17xbf16>
    %186 = vector.extract_strided_slice %183 {offsets = [0, 0], sizes = [8, 1007], strides = [1, 1]} : vector<8x1024xbf16> to vector<8x1007xbf16>
    %187 = tpu.concatenate %185, %186 in 1 : vector<8x17xbf16>, vector<8x1007xbf16> -> vector<8x1024xbf16>
    %188 = vector.extract_strided_slice %0 {offsets = [0, 0], sizes = [1, 1024], strides = [1, 1]} : vector<9x1024xbf16> to vector<1x1024xbf16>
    %189 = vector.broadcast %188 : vector<1x1024xbf16> to vector<8x1024xbf16>
    %190 = arith.mulf %187, %189 : vector<8x1024xbf16>
    %c0_75 = arith.constant 0 : index
    %c0_76 = arith.constant 0 : index
    %c0_77 = arith.constant 0 : index
    %191 = vector.load %arg7[%c0_75, %c0_76, %c0_77] : memref<9x1x8xbf16, #tpu.memory_space<vmem>>, vector<1x1x8xbf16>
    %192 = vector.shape_cast %191 : vector<1x1x8xbf16> to vector<1x8xbf16>
    %cst_78 = arith.constant dense<0.000000e+00> : vector<1x1024xf32>
    %193 = tpu.matmul %192, %190, %cst_78 {dimension_numbers = #tpu.dot_dimension_numbers<[1], [0], [0], [1], [0, 0, 1, 1], [], []>} : vector<1x8xbf16>, vector<8x1024xbf16>, vector<1x1024xf32> -> vector<1x1024xf32>
    %194 = arith.addf %184, %193 : vector<1x1024xf32>
    %195 = vector.extract_strided_slice %183 {offsets = [0, 1008], sizes = [8, 16], strides = [1, 1]} : vector<8x1024xbf16> to vector<8x16xbf16>
    %196 = vector.extract_strided_slice %183 {offsets = [0, 0], sizes = [8, 1008], strides = [1, 1]} : vector<8x1024xbf16> to vector<8x1008xbf16>
    %197 = tpu.concatenate %195, %196 in 1 : vector<8x16xbf16>, vector<8x1008xbf16> -> vector<8x1024xbf16>
    %198 = vector.extract_strided_slice %0 {offsets = [1, 0], sizes = [1, 1024], strides = [1, 1]} : vector<9x1024xbf16> to vector<1x1024xbf16>
    %199 = vector.broadcast %198 : vector<1x1024xbf16> to vector<8x1024xbf16>
    %200 = arith.mulf %197, %199 : vector<8x1024xbf16>
    %c1_79 = arith.constant 1 : index
    %c0_80 = arith.constant 0 : index
    %c0_81 = arith.constant 0 : index
    %201 = vector.load %arg7[%c1_79, %c0_80, %c0_81] : memref<9x1x8xbf16, #tpu.memory_space<vmem>>, vector<1x1x8xbf16>
    %202 = vector.shape_cast %201 : vector<1x1x8xbf16> to vector<1x8xbf16>
    %cst_82 = arith.constant dense<0.000000e+00> : vector<1x1024xf32>
    %203 = tpu.matmul %202, %200, %cst_82 {dimension_numbers = #tpu.dot_dimension_numbers<[1], [0], [0], [1], [0, 0, 1, 1], [], []>} : vector<1x8xbf16>, vector<8x1024xbf16>, vector<1x1024xf32> -> vector<1x1024xf32>
    %204 = arith.addf %194, %203 : vector<1x1024xf32>
    %205 = vector.extract_strided_slice %183 {offsets = [0, 1009], sizes = [8, 15], strides = [1, 1]} : vector<8x1024xbf16> to vector<8x15xbf16>
    %206 = vector.extract_strided_slice %183 {offsets = [0, 0], sizes = [8, 1009], strides = [1, 1]} : vector<8x1024xbf16> to vector<8x1009xbf16>
    %207 = tpu.concatenate %205, %206 in 1 : vector<8x15xbf16>, vector<8x1009xbf16> -> vector<8x1024xbf16>
    %208 = vector.extract_strided_slice %0 {offsets = [2, 0], sizes = [1, 1024], strides = [1, 1]} : vector<9x1024xbf16> to vector<1x1024xbf16>
    %209 = vector.broadcast %208 : vector<1x1024xbf16> to vector<8x1024xbf16>
    %210 = arith.mulf %207, %209 : vector<8x1024xbf16>
    %c2_83 = arith.constant 2 : index
    %c0_84 = arith.constant 0 : index
    %c0_85 = arith.constant 0 : index
    %211 = vector.load %arg7[%c2_83, %c0_84, %c0_85] : memref<9x1x8xbf16, #tpu.memory_space<vmem>>, vector<1x1x8xbf16>
    %212 = vector.shape_cast %211 : vector<1x1x8xbf16> to vector<1x8xbf16>
    %cst_86 = arith.constant dense<0.000000e+00> : vector<1x1024xf32>
    %213 = tpu.matmul %212, %210, %cst_86 {dimension_numbers = #tpu.dot_dimension_numbers<[1], [0], [0], [1], [0, 0, 1, 1], [], []>} : vector<1x8xbf16>, vector<8x1024xbf16>, vector<1x1024xf32> -> vector<1x1024xf32>
    %214 = arith.addf %204, %213 : vector<1x1024xf32>
    %215 = vector.extract_strided_slice %183 {offsets = [0, 1023], sizes = [8, 1], strides = [1, 1]} : vector<8x1024xbf16> to vector<8x1xbf16>
    %216 = vector.extract_strided_slice %183 {offsets = [0, 0], sizes = [8, 1023], strides = [1, 1]} : vector<8x1024xbf16> to vector<8x1023xbf16>
    %217 = tpu.concatenate %215, %216 in 1 : vector<8x1xbf16>, vector<8x1023xbf16> -> vector<8x1024xbf16>
    %218 = vector.extract_strided_slice %0 {offsets = [3, 0], sizes = [1, 1024], strides = [1, 1]} : vector<9x1024xbf16> to vector<1x1024xbf16>
    %219 = vector.broadcast %218 : vector<1x1024xbf16> to vector<8x1024xbf16>
    %220 = arith.mulf %217, %219 : vector<8x1024xbf16>
    %c3_87 = arith.constant 3 : index
    %c0_88 = arith.constant 0 : index
    %c0_89 = arith.constant 0 : index
    %221 = vector.load %arg7[%c3_87, %c0_88, %c0_89] : memref<9x1x8xbf16, #tpu.memory_space<vmem>>, vector<1x1x8xbf16>
    %222 = vector.shape_cast %221 : vector<1x1x8xbf16> to vector<1x8xbf16>
    %cst_90 = arith.constant dense<0.000000e+00> : vector<1x1024xf32>
    %223 = tpu.matmul %222, %220, %cst_90 {dimension_numbers = #tpu.dot_dimension_numbers<[1], [0], [0], [1], [0, 0, 1, 1], [], []>} : vector<1x8xbf16>, vector<8x1024xbf16>, vector<1x1024xf32> -> vector<1x1024xf32>
    %224 = arith.addf %214, %223 : vector<1x1024xf32>
    %c4_91 = arith.constant 4 : index
    %c0_92 = arith.constant 0 : index
    %c0_93 = arith.constant 0 : index
    %225 = vector.load %arg7[%c4_91, %c0_92, %c0_93] : memref<9x1x8xbf16, #tpu.memory_space<vmem>>, vector<1x1x8xbf16>
    %226 = vector.shape_cast %225 : vector<1x1x8xbf16> to vector<1x8xbf16>
    %cst_94 = arith.constant dense<0.000000e+00> : vector<1x1024xf32>
    %227 = tpu.matmul %226, %183, %cst_94 {dimension_numbers = #tpu.dot_dimension_numbers<[1], [0], [0], [1], [0, 0, 1, 1], [], []>} : vector<1x8xbf16>, vector<8x1024xbf16>, vector<1x1024xf32> -> vector<1x1024xf32>
    %228 = arith.addf %224, %227 : vector<1x1024xf32>
    %229 = vector.extract_strided_slice %183 {offsets = [0, 1], sizes = [8, 1023], strides = [1, 1]} : vector<8x1024xbf16> to vector<8x1023xbf16>
    %230 = vector.extract_strided_slice %183 {offsets = [0, 0], sizes = [8, 1], strides = [1, 1]} : vector<8x1024xbf16> to vector<8x1xbf16>
    %231 = tpu.concatenate %229, %230 in 1 : vector<8x1023xbf16>, vector<8x1xbf16> -> vector<8x1024xbf16>
    %232 = vector.extract_strided_slice %0 {offsets = [5, 0], sizes = [1, 1024], strides = [1, 1]} : vector<9x1024xbf16> to vector<1x1024xbf16>
    %233 = vector.broadcast %232 : vector<1x1024xbf16> to vector<8x1024xbf16>
    %234 = arith.mulf %231, %233 : vector<8x1024xbf16>
    %c5_95 = arith.constant 5 : index
    %c0_96 = arith.constant 0 : index
    %c0_97 = arith.constant 0 : index
    %235 = vector.load %arg7[%c5_95, %c0_96, %c0_97] : memref<9x1x8xbf16, #tpu.memory_space<vmem>>, vector<1x1x8xbf16>
    %236 = vector.shape_cast %235 : vector<1x1x8xbf16> to vector<1x8xbf16>
    %cst_98 = arith.constant dense<0.000000e+00> : vector<1x1024xf32>
    %237 = tpu.matmul %236, %234, %cst_98 {dimension_numbers = #tpu.dot_dimension_numbers<[1], [0], [0], [1], [0, 0, 1, 1], [], []>} : vector<1x8xbf16>, vector<8x1024xbf16>, vector<1x1024xf32> -> vector<1x1024xf32>
    %238 = arith.addf %228, %237 : vector<1x1024xf32>
    %239 = vector.extract_strided_slice %183 {offsets = [0, 15], sizes = [8, 1009], strides = [1, 1]} : vector<8x1024xbf16> to vector<8x1009xbf16>
    %240 = vector.extract_strided_slice %183 {offsets = [0, 0], sizes = [8, 15], strides = [1, 1]} : vector<8x1024xbf16> to vector<8x15xbf16>
    %241 = tpu.concatenate %239, %240 in 1 : vector<8x1009xbf16>, vector<8x15xbf16> -> vector<8x1024xbf16>
    %242 = vector.extract_strided_slice %0 {offsets = [6, 0], sizes = [1, 1024], strides = [1, 1]} : vector<9x1024xbf16> to vector<1x1024xbf16>
    %243 = vector.broadcast %242 : vector<1x1024xbf16> to vector<8x1024xbf16>
    %244 = arith.mulf %241, %243 : vector<8x1024xbf16>
    %c6_99 = arith.constant 6 : index
    %c0_100 = arith.constant 0 : index
    %c0_101 = arith.constant 0 : index
    %245 = vector.load %arg7[%c6_99, %c0_100, %c0_101] : memref<9x1x8xbf16, #tpu.memory_space<vmem>>, vector<1x1x8xbf16>
    %246 = vector.shape_cast %245 : vector<1x1x8xbf16> to vector<1x8xbf16>
    %cst_102 = arith.constant dense<0.000000e+00> : vector<1x1024xf32>
    %247 = tpu.matmul %246, %244, %cst_102 {dimension_numbers = #tpu.dot_dimension_numbers<[1], [0], [0], [1], [0, 0, 1, 1], [], []>} : vector<1x8xbf16>, vector<8x1024xbf16>, vector<1x1024xf32> -> vector<1x1024xf32>
    %248 = arith.addf %238, %247 : vector<1x1024xf32>
    %249 = vector.extract_strided_slice %183 {offsets = [0, 16], sizes = [8, 1008], strides = [1, 1]} : vector<8x1024xbf16> to vector<8x1008xbf16>
    %250 = vector.extract_strided_slice %183 {offsets = [0, 0], sizes = [8, 16], strides = [1, 1]} : vector<8x1024xbf16> to vector<8x16xbf16>
    %251 = tpu.concatenate %249, %250 in 1 : vector<8x1008xbf16>, vector<8x16xbf16> -> vector<8x1024xbf16>
    %252 = vector.extract_strided_slice %0 {offsets = [7, 0], sizes = [1, 1024], strides = [1, 1]} : vector<9x1024xbf16> to vector<1x1024xbf16>
    %253 = vector.broadcast %252 : vector<1x1024xbf16> to vector<8x1024xbf16>
    %254 = arith.mulf %251, %253 : vector<8x1024xbf16>
    %c7_103 = arith.constant 7 : index
    %c0_104 = arith.constant 0 : index
    %c0_105 = arith.constant 0 : index
    %255 = vector.load %arg7[%c7_103, %c0_104, %c0_105] : memref<9x1x8xbf16, #tpu.memory_space<vmem>>, vector<1x1x8xbf16>
    %256 = vector.shape_cast %255 : vector<1x1x8xbf16> to vector<1x8xbf16>
    %cst_106 = arith.constant dense<0.000000e+00> : vector<1x1024xf32>
    %257 = tpu.matmul %256, %254, %cst_106 {dimension_numbers = #tpu.dot_dimension_numbers<[1], [0], [0], [1], [0, 0, 1, 1], [], []>} : vector<1x8xbf16>, vector<8x1024xbf16>, vector<1x1024xf32> -> vector<1x1024xf32>
    %258 = arith.addf %248, %257 : vector<1x1024xf32>
    %259 = vector.extract_strided_slice %183 {offsets = [0, 17], sizes = [8, 1007], strides = [1, 1]} : vector<8x1024xbf16> to vector<8x1007xbf16>
    %260 = vector.extract_strided_slice %183 {offsets = [0, 0], sizes = [8, 17], strides = [1, 1]} : vector<8x1024xbf16> to vector<8x17xbf16>
    %261 = tpu.concatenate %259, %260 in 1 : vector<8x1007xbf16>, vector<8x17xbf16> -> vector<8x1024xbf16>
    %262 = vector.extract_strided_slice %0 {offsets = [8, 0], sizes = [1, 1024], strides = [1, 1]} : vector<9x1024xbf16> to vector<1x1024xbf16>
    %263 = vector.broadcast %262 : vector<1x1024xbf16> to vector<8x1024xbf16>
    %264 = arith.mulf %261, %263 : vector<8x1024xbf16>
    %c8_107 = arith.constant 8 : index
    %c0_108 = arith.constant 0 : index
    %c0_109 = arith.constant 0 : index
    %265 = vector.load %arg7[%c8_107, %c0_108, %c0_109] : memref<9x1x8xbf16, #tpu.memory_space<vmem>>, vector<1x1x8xbf16>
    %266 = vector.shape_cast %265 : vector<1x1x8xbf16> to vector<1x8xbf16>
    %cst_110 = arith.constant dense<0.000000e+00> : vector<1x1024xf32>
    %267 = tpu.matmul %266, %264, %cst_110 {dimension_numbers = #tpu.dot_dimension_numbers<[1], [0], [0], [1], [0, 0, 1, 1], [], []>} : vector<1x8xbf16>, vector<8x1024xbf16>, vector<1x1024xf32> -> vector<1x1024xf32>
    %268 = arith.addf %258, %267 : vector<1x1024xf32>
    %c0_111 = arith.constant 0 : index
    %c0_112 = arith.constant 0 : index
    %269 = vector.load %arg8[%c0_111, %c0_112] : memref<1x1xf32, #tpu.memory_space<vmem>>, vector<1x1xf32>
    %270 = vector.broadcast %269 : vector<1x1xf32> to vector<1x1024xf32>
    %271 = arith.addf %268, %270 : vector<1x1024xf32>
    %cst_113 = arith.constant 0.000000e+00 : f32
    %272 = vector.broadcast %cst_113 : f32 to vector<1x1024xf32>
    %273 = arith.maximumf %271, %272 : vector<1x1024xf32>
    %274 = math.absf %271 : vector<1x1024xf32>
    %cst_114 = arith.constant 0.000000e+00 : f32
    %275 = vector.broadcast %cst_114 : f32 to vector<1x1024xf32>
    %276 = arith.subf %275, %274 : vector<1x1024xf32>
    %277 = math.exp %276 : vector<1x1024xf32>
    %cst_115 = arith.constant 1.000000e+00 : f32
    %278 = vector.broadcast %cst_115 : f32 to vector<1x1024xf32>
    %279 = arith.addf %278, %277 : vector<1x1024xf32>
    %280 = math.log %279 : vector<1x1024xf32>
    %281 = arith.addf %273, %280 : vector<1x1024xf32>
    %cst_116 = arith.constant 0.00999999977 : f32
    %282 = vector.broadcast %cst_116 : f32 to vector<1x1024xf32>
    %283 = arith.addf %281, %282 : vector<1x1024xf32>
    %c0_117 = arith.constant 0 : index
    %c0_118 = arith.constant 0 : index
    %284 = vector.load %arg9[%c0_117, %c0_118] : memref<1x1024xf32, #tpu.memory_space<vmem>>, vector<1x1024xf32>
    tpu.vector_store %arg9[%c0_117, %c0_118], %283 {strides = array<i32>} : memref<1x1024xf32, #tpu.memory_space<vmem>>, vector<1x1024xf32>,
    return
  }
  func.func @transform_0(%arg0: i32) -> (i32, i32) {
    %c0_i32 = arith.constant 0 : i32
    %c0_i32_0 = arith.constant 0 : i32
    return %c0_i32, %arg0 : i32, i32
  }
  func.func @transform_1(%arg0: i32) -> (i32, i32) {
    %c0_i32 = arith.constant 0 : i32
    %c0_i32_0 = arith.constant 0 : i32
    return %c0_i32, %arg0 : i32, i32
  }
  func.func @transform_2(%arg0: i32) -> (i32, i32, i32) {
    %c0_i32 = arith.constant 0 : i32
    %c0_i32_0 = arith.constant 0 : i32
    %c0_i32_1 = arith.constant 0 : i32
    %c0_i32_2 = arith.constant 0 : i32
    return %c0_i32, %c0_i32_0, %c0_i32_1 : i32, i32, i32
  }
  func.func @transform_3(%arg0: i32) -> (i32, i32) {
    %c0_i32 = arith.constant 0 : i32
    %c0_i32_0 = arith.constant 0 : i32
    %c0_i32_1 = arith.constant 0 : i32
    return %c0_i32, %c0_i32_0 : i32, i32
  }
  func.func @transform_4(%arg0: i32) -> (i32, i32, i32) {
    %c0_i32 = arith.constant 0 : i32
    %c0_i32_0 = arith.constant 0 : i32
    %c0_i32_1 = arith.constant 0 : i32
    %c0_i32_2 = arith.constant 0 : i32
    return %c0_i32, %c0_i32_0, %c0_i32_1 : i32, i32, i32
  }
  func.func @transform_5(%arg0: i32) -> (i32, i32) {
    %c0_i32 = arith.constant 0 : i32
    %c0_i32_0 = arith.constant 0 : i32
    %c0_i32_1 = arith.constant 0 : i32
    return %c0_i32, %c0_i32_0 : i32, i32
  }
  func.func @transform_6(%arg0: i32) -> (i32, i32, i32) {
    %c0_i32 = arith.constant 0 : i32
    %c0_i32_0 = arith.constant 0 : i32
    %c0_i32_1 = arith.constant 0 : i32
    %c0_i32_2 = arith.constant 0 : i32
    return %c0_i32, %c0_i32_0, %c0_i32_1 : i32, i32, i32
  }
  func.func @transform_7(%arg0: i32) -> (i32, i32) {
    %c0_i32 = arith.constant 0 : i32
    %c0_i32_0 = arith.constant 0 : i32
    %c0_i32_1 = arith.constant 0 : i32
    return %c0_i32, %c0_i32_0 : i32, i32
  }
  func.func @transform_8(%arg0: i32) -> (i32, i32) {
    %c0_i32 = arith.constant 0 : i32
    %c0_i32_0 = arith.constant 0 : i32
    return %c0_i32, %arg0 : i32, i32
  }
}

</mosaic_0001>

<bundles_post_ra>
// kernel: tpu_custom_call.1
= control target key start
LH: loop header
LB: loop body
LE: loop exit
PB: predicated region body
PF: predicated region fallthrough
CT: control target
= control target key end

     0   :  { %s8501_s0 = inlined_call_operand.vmem [shape: bf16[3,1024], index: 0, kind: input, shape index: {}]   ;;  %s8502_s1 = inlined_call_operand.vmem [shape: bf16[9,1024], index: 1, kind: input, shape index: {}]   ;;  %s8503_s2 = inlined_call_operand.vmem [shape: bf16[9,8,3], index: 2, kind: input, shape index: {}]   ;;  %s8504_s3 = inlined_call_operand.vmem [shape: f32[8,1], index: 3, kind: input, shape index: {}]   ;;  %s8505_s4 = inlined_call_operand.vmem [shape: bf16[9,8,8], index: 4, kind: input, shape index: {}]   ;;  %s8506_s5 = inlined_call_operand.vmem [shape: f32[8,1], index: 5, kind: input, shape index: {}]   ;;  %s8507_s6 = inlined_call_operand.vmem [shape: bf16[9,1,8], index: 6, kind: input, shape index: {}]   ;;  %s8508_s7 = inlined_call_operand.<no memory space> [shape: f32[1,1], index: 7, kind: input, shape index: {}]   ;;  %s8509_s8 = inlined_call_operand.hbm [shape: f32[1,1024], index: 8, kind: output, shape index: {}]  }
   0x1   :  { %v13_v0 = vstv %s8508_s7 }
   0x2   :  { %14 = vst [vmem:[#allocation2] sm:$0x1] %v13_v0 }
   0x3   :  { %v6255_v1 = vld [vmem:[%s8501_s0 + $0x8] sm:$0xff] }
   0x4   :  { %15 = vsyncpa [#allocation4], 0  ;;  %44 = vst [vmem:[#allocation1] ss:$4 sm:$0xff] %v6255_v1  ;;  %v6262_v2 = vld [vmem:[%s8501_s0] sm:$0xff]  ;;  %s6193_s0 = smov 16  }
   0x5   :  { %52 = vst [vmem:[#allocation1 + $0x20] ss:$4 sm:$0xff] %v6255_v1  ;;  %s6194_s7 = smov 17   ;;  %s6195_s11 = smov 15   ;;  %v35_v42 = vld [vmem:[%s8502_s1 + $0x10] sm:$0xff]  ;;  %v33_v44 = vld [vmem:[%s8502_s1] sm:$0xff] }
   0x6   :  { %s6196_s12 = smov 1   ;;  %v114_v45 = vunpack.c.h.b16 %v35_v42  ;;  %v110_v47 = vunpack.c.h.b16 %v33_v44  ;;  %v34_v52 = vld [vmem:[%s8502_s1 + $0x8] sm:$0xff]  ;;  %v113_v53 = vunpack.c.l.b16 %v35_v42  ;;  %v109_v54 = vunpack.c.l.b16 %v33_v44  ;;  %s6198_s21 = smov 127  }
   0x7   :  { %v111_v57 = vunpack.c.l.b16 %v34_v52  ;;  %v112_v58 = vunpack.c.h.b16 %v34_v52  ;;  %vm230_vm0 = vcmask 130048   ;;  %vm320_vm1 = vcmask 1040384   ;;  %s6199_s24 = smov 113   ;;  %s6200_s27 = smov 112  }
   0x8   :  { %v6327_v46 = vpack.c.b16 %v114_v45, %v114_v45  ;;  %v6332_v50 = vpack.c.b16 %v110_v47, %v110_v47  ;;  %v6346_v61 = vpack.c.b16 %v113_v53, %v113_v53  ;;  %v6353_v0 = vpack.c.b16 %v109_v54, %v109_v54  ;;  %s6201_s30 = smov 111   ;;  %s5873_s28 = sshll.u32 %s8509_s8, 4  ;;  %s5874_s28 = int_to_ptr.hbm [resolvable:$true] %s5873_s28 }
   0x9   :  { %vm321_vm2 = vcmask 1041408   ;;  %vm316_vm3 = vcmask 23552   ;;  %vm85_vm4 = vcmask 138240   ;;  %vm623_vm5 = vcmask 121856  }
   0xa   :  { %v270_v49 = vshrl.u32 %v6327_v46, 16  ;;  %v254_v56 = vshrl.u32 %v6332_v50, 16  ;;  %vm864_vm6 = vcmask 7168   ;;  %vm1244_vm7 = vcmask 1039360  }
   0xb   :  { %v45_v3 = vld.sshfl [vmem:[#allocation1 + $0x18] sm:$0xff pattern:$0x73625140]  ;;  %vm1485_vm8 = vcmask 924672   ;;  %vm1726_vm9 = vcmask 916480   ;;  %vm1967_vm10 = vcmask 908288  }
   0xc   :  { %50 = vst [vmem:[#allocation1] ss:$4 sm:$0xff] %v6262_v2  ;;  %v61_v4 = vld.sshfl [vmem:[#allocation1 + $0x20] sm:$0xff pattern:$0x73625140]  ;;  %v6339_v55 = vpack.i.b16 %v270_v49, %v270_v49  ;;  %vm2386_vm11 = vcmask 1043456  }
   0xd   :  { %v63_v5 = vld.sshfl [vmem:[#allocation1 + $0x28] sm:$0xff pattern:$0x73625140]  ;;  %v65_v6 = vld.sshfl [vmem:[#allocation1 + $0x30] sm:$0xff pattern:$0x73625140] }
   0xe   :  { %v67_v7 = vld.sshfl [vmem:[#allocation1 + $0x38] sm:$0xff pattern:$0x73625140]  ;;  %vm2382_vm12 = vcmask 64512   ;;  %vm5854_vm13 = vcmask 1042434   ;;  %vm5859_vm14 = vcmask 1046534  }
   0xf   :  { %197 = vst [vmem:[#allocation1 + $0x20] ss:$4 sm:$0xff] %v6255_v1  ;;  %vm5857_vm15 = vcmask 1044484  }
  0x13   :  { %v53_v8 = vld.sshfl [vmem:[#allocation1] sm:$0xff pattern:$0x73625140]  ;;  %v55_v9 = vld.sshfl [vmem:[#allocation1 + $0x8] sm:$0xff pattern:$0x73625140] }
  0x14   :  { %v57_v10 = vld.sshfl [vmem:[#allocation1 + $0x10] sm:$0xff pattern:$0x73625140]  ;;  %v59_v11 = vld.sshfl [vmem:[#allocation1 + $0x18] sm:$0xff pattern:$0x73625140] }
  0x15   :  { %190 = vst [vmem:[#allocation1] ss:$4 sm:$0xff] %v6255_v1 }
  0x16   :  { %v212_v12 = vld.sshfl [vmem:[#allocation1 + $0x38] sm:$0xff pattern:$0x73625140]  ;;  %v210_v13 = vld.sshfl [vmem:[#allocation1 + $0x30] sm:$0xff pattern:$0x73625140] }
  0x17   :  { %v208_v15 = vld.sshfl [vmem:[#allocation1 + $0x28] sm:$0xff pattern:$0x73625140]  ;;  %v206_v16 = vld.sshfl [vmem:[#allocation1 + $0x20] sm:$0xff pattern:$0x73625140] }
  0x18   :  { %590 = vst [vmem:[#allocation1 + $0x20] ss:$4 sm:$0xff] %v6255_v1 }
  0x1c   :  { %v191_v14 = vld.sshfl [vmem:[#allocation1 + $0x18] sm:$0xff pattern:$0x73625140] }
  0x1d   :  { %195 = vst [vmem:[#allocation1] ss:$4 sm:$0xff] %v6262_v2 }
  0x1f   :  { %v603_v27 = vld.sshfl [vmem:[#allocation1 + $0x30] sm:$0xff pattern:$0x73625140]  ;;  %v605_v28 = vld.sshfl [vmem:[#allocation1 + $0x38] sm:$0xff pattern:$0x73625140] }
  0x20   :  { %v601_v29 = vld.sshfl [vmem:[#allocation1 + $0x28] sm:$0xff pattern:$0x73625140]  ;;  %v599_v30 = vld.sshfl [vmem:[#allocation1 + $0x20] sm:$0xff pattern:$0x73625140] }
  0x21   :  { %831 = vst [vmem:[#allocation1 + $0x20] ss:$4 sm:$0xff] %v6255_v1 }
  0x24   :  { %v204_v17 = vld.sshfl [vmem:[#allocation1 + $0x18] sm:$0xff pattern:$0x73625140]  ;;  %v200_v18 = vld.sshfl [vmem:[#allocation1 + $0x8] sm:$0xff pattern:$0x73625140] }
  0x25   :  { %220 = vrot.lane.b32.xlu1 %v204_v17, %s6193_s0  ;;  %216 = vrot.lane.b32.xlu0 %v200_v18, %s6193_s0  ;;  %v202_v19 = vld.sshfl [vmem:[#allocation1 + $0x10] sm:$0xff pattern:$0x73625140]  ;;  %v198_v20 = vld.sshfl [vmem:[#allocation1] sm:$0xff pattern:$0x73625140] }
  0x26   :  { %214 = vrot.lane.b32.xlu2 %v198_v20, %s6193_s0  ;;  %583 = vst [vmem:[#allocation1] ss:$4 sm:$0xff] %v6255_v1 }
  0x28   :  { %v842_v39 = vld.sshfl [vmem:[#allocation1 + $0x28] sm:$0xff pattern:$0x73625140]  ;;  %v844_v40 = vld.sshfl [vmem:[#allocation1 + $0x30] sm:$0xff pattern:$0x73625140] }
  0x29   :  { %v846_v41 = vld.sshfl [vmem:[#allocation1 + $0x38] sm:$0xff pattern:$0x73625140]  ;;  %v840_v48 = vld.sshfl [vmem:[#allocation1 + $0x20] sm:$0xff pattern:$0x73625140] }
  0x2a   :  { %1069 = vst [vmem:[#allocation1 + $0x20] ss:$4 sm:$0xff] %v6255_v1 }
  0x2d   :  { %193 = vrot.lane.b32.xlu1 %v191_v14, %s6193_s0  ;;  %218 = vrot.lane.b32.xlu0 %v202_v19, %s6193_s0  ;;  %v584_v21 = vld.sshfl [vmem:[#allocation1 + $0x18] sm:$0xff pattern:$0x73625140] }
  0x2e   :  { %224 = vrot.lane.b32.xlu2 %v208_v15, %s6193_s0  ;;  %588 = vst [vmem:[#allocation1] ss:$4 sm:$0xff] %v6262_v2 }
  0x31   :  { %v6342_v59 = vld.sshfl [vmem:[#allocation1 + $0x20] sm:$0xff pattern:$0x73625140]  ;;  %v6344_v60 = vld.sshfl [vmem:[#allocation1 + $0x28] sm:$0xff pattern:$0x73625140] }
  0x32   :  { %v6348_v62 = vld.sshfl [vmem:[#allocation1 + $0x30] sm:$0xff pattern:$0x73625140]  ;;  %v6350_v63 = vld.sshfl [vmem:[#allocation1 + $0x38] sm:$0xff pattern:$0x73625140] }
  0x33   :  { %1211 = vst [vmem:[#allocation1 + $0x20] ss:$4 sm:$0xff] %v6255_v1 }
  0x35   :  { %228 = vrot.lane.b32.xlu1 %v212_v12, %s6193_s0  ;;  %226 = vrot.lane.b32.xlu0 %v210_v13, %s6193_s0  ;;  %v595_v22 = vld.sshfl [vmem:[#allocation1 + $0x10] sm:$0xff pattern:$0x73625140]  ;;  %v593_v23 = vld.sshfl [vmem:[#allocation1 + $0x8] sm:$0xff pattern:$0x73625140] }
  0x36   :  { %222 = vrot.lane.b32.xlu2 %v206_v16, %s6193_s0  ;;  %v591_v24 = vld.sshfl [vmem:[#allocation1] sm:$0xff pattern:$0x73625140]  ;;  %v597_v25 = vld.sshfl [vmem:[#allocation1 + $0x18] sm:$0xff pattern:$0x73625140] }
  0x37   :  { %824 = vst [vmem:[#allocation1] ss:$4 sm:$0xff] %v6255_v1  ;;  %v250_v12 = vshrl.u32 %v6353_v0, 16 }
  0x39   :  { %v6376_v20 = vpack.i.b16 %v250_v12, %v250_v12 }
  0x3d   :  { %73 = vrot.lane.b32.xlu1 %v57_v10, %s6194_s7  ;;  %71 = vrot.lane.b32.xlu0 %v55_v9, %s6194_s7  ;;  %v266_v9 = vshrl.u32 %v6346_v61, 16 }
  0x3e   :  { %75 = vrot.lane.b32.xlu2 %v59_v11, %s6194_s7  ;;  %v825_v26 = vld.sshfl [vmem:[#allocation1 + $0x18] sm:$0xff pattern:$0x73625140] }
  0x3f   :  { %829 = vst [vmem:[#allocation1] ss:$4 sm:$0xff] %v6262_v2  ;;  %v6374_v19 = vpack.i.b16 %v266_v9, %v266_v9 }
  0x45   :  { %69 = vrot.lane.b32.xlu1 %v53_v8, %s6194_s7  ;;  %47 = vrot.lane.b32.xlu0 %v45_v3, %s6194_s7  ;;  %v273_v3 = vperm.slane %v6339_v55, 0 }
  0x46   :  { %79 = vrot.lane.b32.xlu2 %v63_v5, %s6194_s7  ;;  %v836_v31 = vld.sshfl [vmem:[#allocation1 + $0x10] sm:$0xff pattern:$0x73625140]  ;;  %v834_v32 = vld.sshfl [vmem:[#allocation1 + $0x8] sm:$0xff pattern:$0x73625140]  ;;  %v6358_v5 = vpack.c.b16 %v111_v57, %v111_v57 }
  0x47   :  { %v832_v33 = vld.sshfl [vmem:[#allocation1] sm:$0xff pattern:$0x73625140]  ;;  %v838_v34 = vld.sshfl [vmem:[#allocation1 + $0x18] sm:$0xff pattern:$0x73625140]  ;;  %v6369_v13 = vunpack.c.l.bf16 %v273_v3 }
  0x48   :  { %1067 = vst [vmem:[#allocation1] ss:$4 sm:$0xff] %v6262_v2  ;;  %v258_v16 = vshrl.u32 %v6358_v5, 16 }
  0x4d   :  { %83 = vrot.lane.b32.xlu1 %v67_v7, %s6194_s7  ;;  %81 = vrot.lane.b32.xlu0 %v65_v6, %s6194_s7  ;;  %v6360_v6 = vpack.c.b16 %v112_v58, %v112_v58  ;;  %v36_v7 = vld [vmem:[%s8502_s1 + $0x18] sm:$0xff] }
  0x4e   :  { %77 = vrot.lane.b32.xlu2 %v61_v4, %s6194_s7  ;;  %v6356_v4 = vpack.i.b16 %v254_v56, %v254_v56  ;;  %v115_v14 = vunpack.c.l.b16 %v36_v7  ;;  %v116_v18 = vunpack.c.h.b16 %v36_v7 }
  0x4f   :  { %v6305_v35 = vld.sshfl [vmem:[#allocation1] sm:$0xff pattern:$0x73625140]  ;;  %v6307_v36 = vld.sshfl [vmem:[#allocation1 + $0x8] sm:$0xff pattern:$0x73625140] }
  0x50   :  { %v6309_v37 = vld.sshfl [vmem:[#allocation1 + $0x10] sm:$0xff pattern:$0x73625140]  ;;  %v6311_v38 = vld.sshfl [vmem:[#allocation1 + $0x18] sm:$0xff pattern:$0x73625140] }
  0x51   :  { %1209 = vst [vmem:[#allocation1] ss:$4 sm:$0xff] %v6262_v2  ;;  %v257_v15 = vperm.slane %v6356_v4, 0  ;;  %v262_v17 = vshrl.u32 %v6360_v6, 16 }
  0x55   :  { %611 = vrot.lane.b32.xlu1 %v595_v22, %s6195_s11  ;;  %609 = vrot.lane.b32.xlu0 %v593_v23, %s6195_s11  ;;  %v6379_v22 = vpack.c.b16 %v115_v14, %v115_v14 }
  0x56   :  { %613 = vrot.lane.b32.xlu2 %v597_v25, %s6195_s11  ;;  %v6381_v25 = vunpack.c.l.bf16 %v257_v15 }
  0x57   :  { %v274_v42 = vshrl.u32 %v6379_v22, 16 }
  0x58   :  { %v1218_v56 = vld.sshfl [vmem:[#allocation1 + $0x18] sm:$0xff pattern:$0x73625140] }
  0x59   :  { %v6410_v3 = vpack.i.b16 %v274_v42, %v274_v42 }
  0x5d   :  { %607 = vrot.lane.b32.xlu1 %v591_v24, %s6195_s11  ;;  %586 = vrot.lane.b32.xlu0 %v584_v21, %s6195_s11 }
  0x5e   :  { %617 = vrot.lane.b32.xlu2 %v601_v29, %s6195_s11 }
  0x65   :  { %619 = vrot.lane.b32.xlu0 %v603_v27, %s6195_s11  ;;  %621 = vrot.lane.b32.xlu1 %v605_v28, %s6195_s11  ;;  %v6385_v27 = vpack.i.b16 %v262_v17, %v262_v17  ;;  %v6387_v28 = vpack.c.b16 %v116_v18, %v116_v18 }
  0x66   :  { %615 = vrot.lane.b32.xlu2 %v599_v30, %s6195_s11  ;;  %v269_v30 = vperm.slane %v6374_v19, 0 }
  0x67   :  { %v265_v47 = vperm.slane %v6385_v27, 0 }
  0x68   :  { %v6405_v53 = vunpack.c.l.bf16 %v269_v30 }
  0x6d   :  { %852 = vrot.lane.b32.xlu1 %v836_v31, %s6196_s12  ;;  %850 = vrot.lane.b32.xlu0 %v834_v32, %s6196_s12 }
  0x6e   :  { %854 = vrot.lane.b32.xlu2 %v838_v34, %s6196_s12  ;;  %v6197_v34 = vmov 65535  }
  0x75   :  { %848 = vrot.lane.b32.xlu1 %v832_v33, %s6196_s12  ;;  %827 = vrot.lane.b32.xlu0 %v825_v26, %s6196_s12  ;;  %v6383_v26 = vpack.i.b16 %v258_v16, %v258_v16 }
  0x76   :  { %858 = vrot.lane.b32.xlu2 %v842_v39, %s6196_s12  ;;  %v322_v39 = vsel %vm320_vm1, 4294967295, %v6197_v34 }
  0x77   :  { %v261_v45 = vperm.slane %v6383_v26, 0  ;;  %v6403_v52 = vsel %vm321_vm2, %v322_v39, 0 }
  0x7d   :  { %860 = vrot.lane.b32.xlu0 %v844_v40, %s6196_s12  ;;  %862 = vrot.lane.b32.xlu1 %v846_v41, %s6196_s12  ;;  %v253_v40 = vperm.slane %v6376_v20, 0 }
  0x7e   :  { %856 = vrot.lane.b32.xlu2 %v840_v48, %s6196_s12  ;;  %v278_v48 = vshrl.u32 %v6387_v28, 16 }
  0x7f   :  { %v6407_v57 = vunpack.c.l.bf16 %v253_v40 }
  0x80   :  { %v6322_v43 = vpop.permute.xlu2 %214  ;;  %v6418_v12 = vpack.i.b16 %v278_v48, %v278_v48  ;;  %v6442_v48 = vpack.i.b16 %v6360_v6, %v6360_v6 }
  0x82   :  { %v281_v39 = vperm.slane %v6418_v12, 0 }
  0x84   :  { %v6455_v6 = vunpack.c.l.bf16 %v281_v39 }
  0x85   :  { %1234 = vrot.lane.b32.xlu1 %v1218_v56, %s6198_s21 }
  0x88   :  { %v6334_v51 = vpop.permute.xlu2 %224 }
  0x90   :  { %v223_v8 = vpop.permute.xlu2 %222 }
  0x91   :  { %v235_v10 = vsel %vm230_vm0, %v223_v8, %v6334_v51 }
  0x92   :  { %v287_v11 = vunpack.c.l.bf16 %v235_v10  ;;  %v6414_v10 = vunpack.c.l.bf16 %v261_v45 }
  0x94   :  { %v303_v21 = vmul.f32 %v6369_v13, %v287_v11  ;;  %v6416_v11 = vunpack.c.l.bf16 %v265_v47  ;;  %v1212_v47 = vld.sshfl [vmem:[#allocation1] sm:$0xff pattern:$0x73625140] }
  0x96   :  { %v311_v41 = vpack.c.bf16 %v303_v21, %v303_v21 }
  0x97   :  { %v221_v23 = vpop.permute.xlu1 %220  ;;  %v217_v24 = vpop.permute.xlu0 %216 }
  0x98   :  { %v231_v29 = vsel %vm230_vm0, %v6322_v43, %v217_v24  ;;  %v6392_v31 = vpop.permute.xlu2 %75  ;;  %v234_v33 = vsel %vm230_vm0, %v221_v23, %v223_v8  ;;  %v340_v58 = vand.u32 %v6403_v52, %v311_v41  ;;  %v1214_v41 = vld.sshfl [vmem:[#allocation1 + $0x8] sm:$0xff pattern:$0x73625140] }
  0x99   :  { %v283_v32 = vunpack.c.l.bf16 %v231_v29  ;;  %v286_v49 = vunpack.c.l.bf16 %v234_v33  ;;  %v1216_v33 = vld.sshfl [vmem:[#allocation1 + $0x10] sm:$0xff pattern:$0x73625140]  ;;  %1230 = vrot.lane.b32.xlu1 %v1214_v41, %s6198_s21 }
  0x9a   :  { %1232 = vrot.lane.b32.xlu0 %v1216_v33, %s6198_s21  ;;  %1259 = vst [vmem:[#allocation1] ss:$4 sm:$0xff] %v6262_v2  ;;  %v6465_v33 = vpack.i.b16 %v6346_v61, %v6346_v61 }
  0x9b   :  { %v299_v44 = vmul.f32 %v6381_v25, %v283_v32  ;;  %v302_v17 = vmul.f32 %v6405_v53, %v286_v49  ;;  %v6430_v32 = vld [vmem:[%s8503_s2 + $0x4] sm:$0xf] }
  0x9c   :  { %v144_v41 = vperm.slane %v6465_v33, 0 }
  0x9d   :  { %v307_v54 = vpack.c.bf16 %v299_v44, %v299_v44  ;;  %v310_v40 = vpack.c.bf16 %v302_v17, %v302_v17 }
  0x9f   :  { %v194_v7 = vpop.permute.xlu1 %193  ;;  %v219_v8 = vpop.permute.xlu0 %218  ;;  %v328_v9 = vand.u32 %v6403_v52, %v307_v54  ;;  %v6448_v54 = vpack.i.b16 %v6358_v5, %v6358_v5 }
  0xa0   :  { %v248_v14 = vsel %vm230_vm0, %v194_v7, %v6322_v43  ;;  %v232_v15 = vsel %vm230_vm0, %v217_v24, %v219_v8  ;;  %v233_v16 = vsel %vm230_vm0, %v219_v8, %v221_v23  ;;  %v6425_v18 = vpop.permute.xlu2 %79  ;;  %v277_v43 = vperm.slane %v6410_v3, 0 }
  0xa1   :  { %v282_v21 = vunpack.c.l.bf16 %v248_v14  ;;  %v284_v29 = vunpack.c.l.bf16 %v232_v15  ;;  %v285_v30 = vunpack.c.l.bf16 %v233_v16  ;;  %368 = vmatpush.bf16.msra.mxu1 %v328_v9  ;;  %v337_v15 = vand.u32 %v6403_v52, %v310_v40 }
  0xa2   :  { %v6444_v49 = vunpack.c.l.bf16 %v277_v43  ;;  %1228 = vrot.lane.b32.xlu0 %v1212_v47, %s6198_s21 }
  0xa3   :  { %v298_v23 = vmul.f32 %v6407_v57, %v282_v21  ;;  %v300_v24 = vmul.f32 %v6414_v10, %v284_v29  ;;  %v301_v34 = vmul.f32 %v6416_v11, %v285_v30  ;;  %v140_v29 = vperm.slane %v6442_v48, 0 }
  0xa4   :  { %5884 = vmatmul.msk.bf16.vlgmr.msra.gmra.mxu1 %vm316_vm3, %v6430_v32  ;;  %v136_v30 = vperm.slane %v6448_v54, 0 }
  0xa5   :  { %420 = vmatpush.bf16.msrb.mxu1 %v340_v58  ;;  %v306_v42 = vpack.c.bf16 %v298_v23, %v298_v23  ;;  %v308_v44 = vpack.c.bf16 %v300_v24, %v300_v24  ;;  %v309_v45 = vpack.c.bf16 %v301_v34, %v301_v34  ;;  %v6486_v34 = vpack.i.b16 %v6353_v0, %v6353_v0 }
  0xa6   :  { %v6488_v39 = vunpack.c.l.bf16 %v140_v29  ;;  %v6490_v40 = vunpack.c.l.bf16 %v136_v30  ;;  %v6507_v29 = vunpack.c.l.bf16 %v144_v41 }
  0xa7   :  { %v229_v56 = vpop.permute.xlu1 %228  ;;  %v227_v58 = vpop.permute.xlu0 %226  ;;  %v325_v7 = vand.u32 %v6403_v52, %v306_v42  ;;  %v331_v8 = vand.u32 %v6403_v52, %v308_v44  ;;  %v334_v9 = vand.u32 %v6403_v52, %v309_v45 }
  0xa8   :  { %v236_v14 = vsel %vm230_vm0, %v6334_v51, %v227_v58  ;;  %v237_v5 = vsel %vm230_vm0, %v227_v58, %v229_v56  ;;  %v78_v21 = vpop.permute.xlu2 %77  ;;  %v6469_v51 = vpack.i.b16 %v6327_v46, %v6327_v46  ;;  %v6482_v46 = vpack.i.b16 %v6332_v50, %v6332_v50 }
  0xa9   :  { %v288_v16 = vunpack.c.l.bf16 %v236_v14  ;;  %v289_v17 = vunpack.c.l.bf16 %v237_v5  ;;  %355 = vmatpush.bf16.msra.mxu0 %v325_v7  ;;  %381 = vmatpush.bf16.msra.mxu2 %v331_v8  ;;  %v89_v56 = vsel %vm85_vm4, %v6392_v31, %v78_v21  ;;  %v90_v0 = vsel %vm85_vm4, %v78_v21, %v6425_v18 }
  0xaa   :  { %394 = vmatpush.bf16.msra.mxu3 %v334_v9  ;;  %v148_v42 = vperm.slane %v6469_v51, 0  ;;  %v132_v14 = vperm.slane %v6482_v46, 0  ;;  %v128_v5 = vperm.slane %v6486_v34, 0 }
  0xab   :  { %v304_v43 = vmul.f32 %v6444_v49, %v288_v16  ;;  %v305_v23 = vmul.f32 %v6455_v6, %v289_v17  ;;  %v161_v16 = vunpack.c.l.bf16 %v89_v56  ;;  %v162_v17 = vunpack.c.l.bf16 %v90_v0 }
  0xac   :  { %5883 = vmatmul.msk.bf16.vlgmr.msra.gmra.mxu0 %vm316_vm3, %v6430_v32  ;;  %5885 = vmatmul.msk.bf16.vlgmr.msra.gmra.mxu2 %vm316_vm3, %v6430_v32  ;;  %v6509_v21 = vunpack.c.l.bf16 %v148_v42  ;;  %v6517_v41 = vunpack.c.l.bf16 %v132_v14  ;;  %v6519_v42 = vunpack.c.l.bf16 %v128_v5 }
  0xad   :  { %407 = vmatpush.bf16.msrb.mxu0 %v337_v15  ;;  %5886 = vmatmul.msk.bf16.vlgmr.msra.gmra.mxu3 %vm316_vm3, %v6430_v32  ;;  %v312_v61 = vpack.c.bf16 %v304_v43, %v304_v43  ;;  %v313_v24 = vpack.c.bf16 %v305_v23, %v305_v23  ;;  %v1220_v43 = vld.sshfl [vmem:[#allocation1 + $0x20] sm:$0xff pattern:$0x73625140]  ;;  %v1226_v23 = vld.sshfl [vmem:[#allocation1 + $0x38] sm:$0xff pattern:$0x73625140] }
  0xae   :  { %1236 = vrot.lane.b32.xlu2 %v1220_v43, %s6198_s21  ;;  %1242 = vrot.lane.b32.xlu0 %v1226_v23, %s6198_s21  ;;  %8600 = vst [vmem:[#allocation6_spill] sm:$0xff] %v6519_v42 }
  0xaf   :  { %v74_v44 = vpop.permute.xlu1 %73  ;;  %v343_v45 = vand.u32 %v6403_v52, %v312_v61  ;;  %v72_v47 = vpop.permute.xlu0 %71  ;;  %v346_v50 = vand.u32 %v6403_v52, %v313_v24 }
  0xb0   :  { %v88_v58 = vsel %vm85_vm4, %v74_v44, %v6392_v31  ;;  %v87_v7 = vsel %vm85_vm4, %v72_v47, %v74_v44  ;;  %v6505_v15 = vpop.permute.xlu2 %613  ;;  %v1260_v44 = vld.sshfl [vmem:[#allocation1] sm:$0xff pattern:$0x73625140] }
  0xb1   :  { %v160_v8 = vunpack.c.l.bf16 %v88_v58  ;;  %433 = vmatpush.bf16.msrb.mxu2 %v343_v45  ;;  %v159_v9 = vunpack.c.l.bf16 %v87_v7  ;;  %446 = vmatpush.bf16.msrb.mxu3 %v346_v50  ;;  %v177_v45 = vmul.f32 %v6507_v29, %v161_v16  ;;  %v178_v50 = vmul.f32 %v6509_v21, %v162_v17  ;;  %1450 = vst [vmem:[#allocation1] ss:$4 sm:$0xff] %v6262_v2 }
  0xb2   :  { %1262 = vrot.lane.b32.xlu1 %v1260_v44, %s6198_s21  ;;  %v1224_v44 = vld.sshfl [vmem:[#allocation1 + $0x30] sm:$0xff pattern:$0x73625140] }
  0xb3   :  { %v176_v31 = vmul.f32 %v6488_v39, %v160_v8  ;;  %v175_v30 = vmul.f32 %v6490_v40, %v159_v9  ;;  %v6529_v8 = vpack.i.b16 %v6379_v22, %v6379_v22  ;;  %v6533_v9 = vpack.i.b16 %v6387_v28, %v6387_v28 }
  0xb4   :  { %5888 = vmatmul.msk.bf16.vlgmr.msrb.gmra.mxu1 %vm316_vm3, %v6430_v32 }
  0xb5   :  { %v184_v61 = vpack.c.bf16 %v176_v31, %v176_v31  ;;  %v183_v24 = vpack.c.bf16 %v175_v30, %v175_v30  ;;  %v185_v31 = vpack.c.bf16 %v177_v45, %v177_v45  ;;  %v186_v30 = vpack.c.bf16 %v178_v50, %v178_v50 }
  0xb6   :  { %v152_v22 = vperm.slane %v6529_v8, 0  ;;  %1240 = vrot.lane.b32.xlu2 %v1224_v44, %s6198_s21 }
  0xb7   :  { %v70_v56 = vpop.permute.xlu1 %69  ;;  %v48_v0 = vpop.permute.xlu0 %47  ;;  %v462_v58 = vand.u32 %v6403_v52, %v183_v24  ;;  %v465_v7 = vand.u32 %v6403_v52, %v184_v61  ;;  %v156_v61 = vperm.slane %v6533_v9, 0  ;;  %v468_v50 = vand.u32 %v6403_v52, %v185_v31 }
  0xb8   :  { %v86_v14 = vsel %vm85_vm4, %v70_v56, %v72_v47  ;;  %v103_v5 = vsel %vm85_vm4, %v48_v0, %v70_v56  ;;  %v6541_v28 = vpop.permute.xlu2 %617  ;;  %v1459_v45 = vld.sshfl [vmem:[#allocation1 + $0x18] sm:$0xff pattern:$0x73625140]  ;;  %v471_v56 = vand.u32 %v6403_v52, %v186_v30  ;;  %v1457_v0 = vld.sshfl [vmem:[#allocation1 + $0x10] sm:$0xff pattern:$0x73625140] }
  0xb9   :  { %v158_v16 = vunpack.c.l.bf16 %v86_v14  ;;  %v157_v17 = vunpack.c.l.bf16 %v103_v5  ;;  %512 = vmatpush.bf16.msra.mxu2 %v462_v58  ;;  %525 = vmatpush.bf16.msra.mxu3 %v465_v7  ;;  %v6566_v30 = vld [vmem:[%s8503_s2] sm:$0xf]  ;;  %v1455_v44 = vld.sshfl [vmem:[#allocation1 + $0x8] sm:$0xff pattern:$0x73625140] }
  0xba   :  { %1475 = vrot.lane.b32.xlu1 %v1459_v45, %s6199_s24  ;;  %1473 = vrot.lane.b32.xlu0 %v1457_v0, %s6199_s24 }
  0xbb   :  { %v174_v43 = vmul.f32 %v6517_v41, %v158_v16  ;;  %v173_v23 = vmul.f32 %v6519_v42, %v157_v17  ;;  %v6557_v16 = vunpack.c.l.bf16 %v156_v61 }
  0xbc   :  { %5887 = vmatmul.msk.bf16.vlgmr.msrb.gmra.mxu0 %vm316_vm3, %v6430_v32  ;;  %5889 = vmatmul.msk.bf16.vlgmr.msrb.gmra.mxu2 %vm316_vm3, %v6430_v32 }
  0xbd   :  { %v182_v47 = vpack.c.bf16 %v174_v43, %v174_v43  ;;  %5890 = vmatmul.msk.bf16.vlgmr.msrb.gmra.mxu3 %vm316_vm3, %v6430_v32  ;;  %v181_v24 = vpack.c.bf16 %v173_v23, %v173_v23  ;;  %v6555_v32 = vunpack.c.l.bf16 %v152_v22  ;;  %8602 = vst [vmem:[#allocation8_spill] sm:$0xff] %v6557_v16  ;;  %v646_v22 = vperm.slane %v6442_v48, 1 }
  0xbf   :  { %v456_v58 = vand.u32 %v6403_v52, %v181_v24  ;;  %v459_v7 = vand.u32 %v6403_v52, %v182_v47  ;;  %v84_v14 = vpop.permute.xlu1 %83  ;;  %v82_v5 = vpop.permute.xlu0 %81  ;;  %8601 = vst [vmem:[#allocation7_spill] sm:$0xff] %v6555_v32  ;;  %v1222_v24 = vld.sshfl [vmem:[#allocation1 + $0x28] sm:$0xff pattern:$0x73625140] }
  0xc0   :  { %v91_v17 = vsel %vm85_vm4, %v6425_v18, %v82_v5  ;;  %v92_v31 = vsel %vm85_vm4, %v82_v5, %v84_v14  ;;  %v645_v18 = vperm.slane %v6448_v54, 1  ;;  %1452 = vst [vmem:[#allocation1 + $0x20] ss:$4 sm:$0xff] %v6255_v1  ;;  %1238 = vrot.lane.b32.xlu2 %v1222_v24, %s6198_s21 }
  0xc1   :  { %499 = vmatpush.bf16.msra.mxu1 %v459_v7  ;;  %v163_v43 = vunpack.c.l.bf16 %v91_v17  ;;  %v164_v23 = vunpack.c.l.bf16 %v92_v31  ;;  %486 = vmatpush.bf16.msra.mxu0 %v456_v58  ;;  %v616_v7 = vpop.permute.xlu2 %615  ;;  %v1453_v58 = vld.sshfl [vmem:[#allocation1] sm:$0xff pattern:$0x73625140] }
  0xc2   :  { %1471 = vrot.lane.b32.xlu1 %v1455_v44, %s6199_s24  ;;  %v6581_v31 = vunpack.c.l.bf16 %v645_v18  ;;  %1469 = vrot.lane.b32.xlu0 %v1453_v58, %s6199_s24  ;;  %1500 = vst [vmem:[#allocation1] ss:$4 sm:$0xff] %v6262_v2  ;;  %v647_v18 = vperm.slane %v6465_v33, 1  ;;  %v627_v44 = vsel %vm623_vm5, %v6505_v15, %v616_v7 }
  0xc3   :  { %v179_v61 = vmul.f32 %v6555_v32, %v163_v43  ;;  %v180_v47 = vmul.f32 %v6557_v16, %v164_v23  ;;  %v628_v23 = vsel %vm623_vm5, %v616_v7, %v6541_v28  ;;  %v644_v32 = vperm.slane %v6482_v46, 1 }
  0xc4   :  { %5892 = vmatmul.msk.bf16.vlgmr.msra.gmra.mxu1 %vm316_vm3, %v6566_v30  ;;  %8604 = vst [vmem:[#allocation10_spill] sm:$0xff] %v6581_v31 }
  0xc5   :  { %538 = vmatpush.bf16.msrb.mxu0 %v468_v50  ;;  %551 = vmatpush.bf16.msrb.mxu1 %v471_v56  ;;  %v187_v45 = vpack.c.bf16 %v179_v61, %v179_v61  ;;  %v188_v0 = vpack.c.bf16 %v180_v47, %v180_v47  ;;  %v6575_v50 = vunpack.c.l.bf16 %v646_v22  ;;  %v648_v56 = vperm.slane %v6469_v51, 1 }
  0xc7   :  { %8603 = vst [vmem:[#allocation9_spill] sm:$0xff] %v6575_v50  ;;  %v612_v14 = vpop.permute.xlu1 %611  ;;  %v474_v5 = vand.u32 %v6403_v52, %v187_v45  ;;  %v610_v17 = vpop.permute.xlu0 %609  ;;  %v477_v43 = vand.u32 %v6403_v52, %v188_v0  ;;  %v656_v45 = vunpack.c.l.bf16 %v628_v23  ;;  %v6594_v0 = vunpack.c.l.bf16 %v648_v56 }
  0xc8   :  { %v626_v22 = vsel %vm623_vm5, %v612_v14, %v6505_v15  ;;  %v625_v61 = vsel %vm623_vm5, %v610_v17, %v612_v14  ;;  %v643_v14 = vperm.slane %v6486_v34, 1  ;;  %v655_v56 = vunpack.c.l.bf16 %v627_v44 }
  0xc9   :  { %v654_v47 = vunpack.c.l.bf16 %v626_v22  ;;  %564 = vmatpush.bf16.msrb.mxu2 %v474_v5  ;;  %v653_v24 = vunpack.c.l.bf16 %v625_v61  ;;  %577 = vmatpush.bf16.msrb.mxu3 %v477_v43  ;;  %8605 = vst [vmem:[#allocation11_spill] sm:$0xff] %v6594_v0  ;;  %v6606_v5 = vunpack.c.l.bf16 %v647_v18  ;;  %v6608_v43 = vpop.permute.xlu2 %854  ;;  %v672_v23 = vmul.f32 %v6594_v0, %v656_v45 }
  0xca   :  { %v6611_v61 = vunpack.c.l.bf16 %v644_v32  ;;  %v649_v0 = vperm.slane %v6529_v8, 1 }
  0xcb   :  { %v670_v58 = vmul.f32 %v6575_v50, %v654_v47  ;;  %v669_v16 = vmul.f32 %v6581_v31, %v653_v24  ;;  %8606 = vst [vmem:[#allocation12_spill] sm:$0xff] %v6606_v5  ;;  %v6613_v24 = vunpack.c.l.bf16 %v643_v14  ;;  %v671_v42 = vmul.f32 %v6606_v5, %v655_v56 }
  0xcc   :  { %5891 = vmatmul.msk.bf16.vlgmr.msra.gmra.mxu0 %vm316_vm3, %v6566_v30  ;;  %5893 = vmatmul.msk.bf16.vlgmr.msra.gmra.mxu2 %vm316_vm3, %v6566_v30  ;;  %8607 = vst [vmem:[#allocation13_spill] sm:$0xff] %v6611_v61  ;;  %v680_v45 = vpack.c.bf16 %v672_v23, %v672_v23 }
  0xcd   :  { %5894 = vmatmul.msk.bf16.vlgmr.msra.gmra.mxu3 %vm316_vm3, %v6566_v30  ;;  %v678_v15 = vpack.c.bf16 %v670_v58, %v670_v58  ;;  %v677_v7 = vpack.c.bf16 %v669_v16, %v669_v16  ;;  %8608 = vst [vmem:[#allocation14_spill] sm:$0xff] %v6613_v24 }
  0xcf   :  { %v608_v22 = vpop.permute.xlu1 %607  ;;  %v587_v47 = vpop.permute.xlu0 %586  ;;  %v695_v50 = vand.u32 %v677_v7, %v6403_v52  ;;  %v698_v31 = vand.u32 %v678_v15, %v6403_v52  ;;  %v650_v7 = vperm.slane %v6533_v9, 1  ;;  %v1467_v15 = vld.sshfl [vmem:[#allocation1 + $0x38] sm:$0xff pattern:$0x73625140] }
  0xd0   :  { %v624_v58 = vsel %vm623_vm5, %v608_v22, %v610_v17  ;;  %v641_v16 = vsel %vm623_vm5, %v587_v47, %v608_v22  ;;  %v1461_v17 = vld.sshfl [vmem:[#allocation1 + $0x20] sm:$0xff pattern:$0x73625140]  ;;  %1483 = vrot.lane.b32.xlu0 %v1467_v15, %s6199_s24 }
  0xd1   :  { %v652_v18 = vunpack.c.l.bf16 %v624_v58  ;;  %v651_v44 = vunpack.c.l.bf16 %v641_v16  ;;  %745 = vmatpush.bf16.msra.mxu2 %v695_v50  ;;  %758 = vmatpush.bf16.msra.mxu3 %v698_v31  ;;  %v679_v58 = vpack.c.bf16 %v671_v42, %v671_v42  ;;  %v1501_v50 = vld.sshfl [vmem:[#allocation1] sm:$0xff pattern:$0x73625140]  ;;  %v704_v31 = vand.u32 %v680_v45, %v6403_v52  ;;  %v6631_v56 = vpop.permute.xlu2 %858 }
  0xd2   :  { %1477 = vrot.lane.b32.xlu2 %v1461_v17, %s6199_s24  ;;  %1503 = vrot.lane.b32.xlu1 %v1501_v50, %s6199_s24  ;;  %1691 = vst [vmem:[#allocation1] ss:$4 sm:$0xff] %v6262_v2 }
  0xd3   :  { %v668_v32 = vmul.f32 %v6611_v61, %v652_v18  ;;  %v667_v14 = vmul.f32 %v6613_v24, %v651_v44  ;;  %v6635_v44 = vunpack.c.l.bf16 %v649_v0  ;;  %v701_v50 = vand.u32 %v679_v58, %v6403_v52 }
  0xd4   :  { %5896 = vmatmul.msk.bf16.vlgmr.msrb.gmra.mxu1 %vm316_vm3, %v6566_v30 }
  0xd5   :  { %v676_v22 = vpack.c.bf16 %v668_v32, %v668_v32  ;;  %v675_v47 = vpack.c.bf16 %v667_v14, %v667_v14  ;;  %8609 = vst [vmem:[#allocation15_spill] sm:$0xff] %v6635_v44  ;;  %v6637_v32 = vunpack.c.l.bf16 %v650_v7  ;;  %v886_v7 = vperm.slane %v6383_v26, 1 }
  0xd7   :  { %v689_v23 = vand.u32 %v675_v47, %v6403_v52  ;;  %v692_v16 = vand.u32 %v676_v22, %v6403_v52  ;;  %v620_v18 = vpop.permute.xlu0 %619  ;;  %v622_v42 = vpop.permute.xlu1 %621  ;;  %8610 = vst [vmem:[#allocation16_spill] sm:$0xff] %v6637_v32  ;;  %v887_v47 = vperm.slane %v6385_v27, 1 }
  0xd8   :  { %v629_v14 = vsel %vm623_vm5, %v6541_v28, %v620_v18  ;;  %v630_v45 = vsel %vm623_vm5, %v620_v18, %v622_v42 }
  0xd9   :  { %732 = vmatpush.bf16.msra.mxu1 %v692_v16  ;;  %v657_v17 = vunpack.c.l.bf16 %v629_v14  ;;  %v658_v15 = vunpack.c.l.bf16 %v630_v45  ;;  %719 = vmatpush.bf16.msra.mxu0 %v689_v23  ;;  %v1700_v23 = vld.sshfl [vmem:[#allocation1 + $0x18] sm:$0xff pattern:$0x73625140]  ;;  %v1698_v16 = vld.sshfl [vmem:[#allocation1 + $0x10] sm:$0xff pattern:$0x73625140]  ;;  %v6656_v14 = vunpack.c.l.bf16 %v887_v47 }
  0xda   :  { %1716 = vrot.lane.b32.xlu1 %v1700_v23, %s6200_s27  ;;  %1714 = vrot.lane.b32.xlu0 %v1698_v16, %s6200_s27  ;;  %v885_v16 = vperm.slane %v6356_v4, 1  ;;  %v1694_v61 = vld.sshfl [vmem:[#allocation1] sm:$0xff pattern:$0x73625140] }
  0xdb   :  { %v673_v22 = vmul.f32 %v6635_v44, %v657_v17  ;;  %v674_v0 = vmul.f32 %v6637_v32, %v658_v15  ;;  %8611 = vst [vmem:[#allocation17_spill] sm:$0xff] %v6656_v14 }
  0xdc   :  { %5895 = vmatmul.msk.bf16.vlgmr.msrb.gmra.mxu0 %vm316_vm3, %v6566_v30  ;;  %5897 = vmatmul.msk.bf16.vlgmr.msrb.gmra.mxu2 %vm316_vm3, %v6566_v30 }
  0xdd   :  { %784 = vmatpush.bf16.msrb.mxu1 %v704_v31  ;;  %5898 = vmatmul.msk.bf16.vlgmr.msrb.gmra.mxu3 %vm316_vm3, %v6566_v30  ;;  %v681_v28 = vpack.c.bf16 %v673_v22, %v673_v22  ;;  %v682_v58 = vpack.c.bf16 %v674_v0, %v674_v0  ;;  %v1465_v31 = vld.sshfl [vmem:[#allocation1 + $0x30] sm:$0xff pattern:$0x73625140]  ;;  %v6659_v30 = vunpack.c.l.bf16 %v886_v7  ;;  %v6668_v22 = vld [vmem:[%s8503_s2 + $0x8] sm:$0xf]  ;;  %v889_v7 = vperm.slane %v6339_v55, 1 }
  0xde   :  { %771 = vmatpush.bf16.msrb.mxu0 %v701_v50  ;;  %1481 = vrot.lane.b32.xlu2 %v1465_v31, %s6199_s24 }
  0xdf   :  { %v710_v18 = vand.u32 %v682_v58, %v6403_v52  ;;  %v853_v42 = vpop.permute.xlu1 %852  ;;  %v707_v45 = vand.u32 %v681_v28, %v6403_v52  ;;  %v851_v17 = vpop.permute.xlu0 %850  ;;  %8612 = vst [vmem:[#allocation18_spill] sm:$0xff] %v6659_v30  ;;  %v6679_v5 = vunpack.c.l.bf16 %v889_v7 }
  0xe0   :  { %v867_v15 = vsel %vm864_vm6, %v853_v42, %v6608_v43  ;;  %v866_v50 = vsel %vm864_vm6, %v851_v17, %v853_v42  ;;  %v857_v28 = vpop.permute.xlu2 %856  ;;  %v884_v42 = vperm.slane %v6376_v20, 1 }
  0xe1   :  { %v895_v0 = vunpack.c.l.bf16 %v867_v15  ;;  %797 = vmatpush.bf16.msrb.mxu2 %v707_v45  ;;  %v894_v47 = vunpack.c.l.bf16 %v866_v50  ;;  %810 = vmatpush.bf16.msrb.mxu3 %v710_v18  ;;  %v869_v58 = vsel %vm864_vm6, %v857_v28, %v6631_v56  ;;  %v1463_v45 = vld.sshfl [vmem:[#allocation1 + $0x28] sm:$0xff pattern:$0x73625140]  ;;  %8613 = vst [vmem:[#allocation19_spill] sm:$0xff] %v6679_v5 }
  0xe2   :  { %v1696_v15 = vld.sshfl [vmem:[#allocation1 + $0x8] sm:$0xff pattern:$0x73625140]  ;;  %v897_v50 = vunpack.c.l.bf16 %v869_v58  ;;  %1693 = vst [vmem:[#allocation1 + $0x20] ss:$4 sm:$0xff] %v6255_v1  ;;  %1710 = vrot.lane.b32.xlu0 %v1694_v61, %s6200_s27 }
  0xe3   :  { %v911_v31 = vmul.f32 %v6656_v14, %v895_v0  ;;  %v910_v23 = vmul.f32 %v6659_v30, %v894_v47  ;;  %1712 = vrot.lane.b32.xlu1 %v1696_v15, %s6200_s27  ;;  %1741 = vst [vmem:[#allocation1] ss:$4 sm:$0xff] %v6262_v2  ;;  %v6685_v47 = vunpack.c.l.bf16 %v885_v16  ;;  %v6687_v30 = vunpack.c.l.bf16 %v884_v42 }
  0xe4   :  { %5901 = vmatmul.msk.bf16.vlgmr.msra.gmra.mxu1 %vm316_vm3, %v6668_v22  ;;  %v913_v32 = vmul.f32 %v6679_v5, %v897_v50  ;;  %v891_v50 = vperm.slane %v6418_v12, 1 }
  0xe5   :  { %v918_v18 = vpack.c.bf16 %v910_v23, %v910_v23  ;;  %v919_v24 = vpack.c.bf16 %v911_v31, %v911_v31  ;;  %8614 = vst [vmem:[#allocation20_spill] sm:$0xff] %v6687_v30  ;;  %v868_v31 = vsel %vm864_vm6, %v6608_v43, %v857_v28  ;;  %v888_v23 = vperm.slane %v6374_v19, 1 }
  0xe6   :  { %1479 = vrot.lane.b32.xlu2 %v1463_v45, %s6199_s24  ;;  %v896_v43 = vunpack.c.l.bf16 %v868_v31 }
  0xe7   :  { %v849_v0 = vpop.permute.xlu1 %848  ;;  %v828_v14 = vpop.permute.xlu0 %827  ;;  %v936_v16 = vand.u32 %v918_v18, %v6403_v52  ;;  %v939_v42 = vand.u32 %v919_v24, %v6403_v52  ;;  %v921_v18 = vpack.c.bf16 %v913_v32, %v913_v32 }
  0xe8   :  { %v865_v7 = vsel %vm864_vm6, %v849_v0, %v851_v17  ;;  %v882_v58 = vsel %vm864_vm6, %v828_v14, %v849_v0  ;;  %v890_v17 = vperm.slane %v6410_v3, 1  ;;  %v6705_v14 = vunpack.c.l.bf16 %v888_v23 }
  0xe9   :  { %v893_v45 = vunpack.c.l.bf16 %v865_v7  ;;  %v892_v15 = vunpack.c.l.bf16 %v882_v58  ;;  %v6714_v23 = vunpack.c.l.bf16 %v891_v50  ;;  %v1708_v50 = vld.sshfl [vmem:[#allocation1 + $0x38] sm:$0xff pattern:$0x73625140] }
  0xea   :  { %8615 = vst [vmem:[#allocation21_spill] sm:$0xff] %v6705_v14  ;;  %v912_v32 = vmul.f32 %v6705_v14, %v896_v43  ;;  %v1742_v43 = vld.sshfl [vmem:[#allocation1] sm:$0xff pattern:$0x73625140]  ;;  %1724 = vrot.lane.b32.xlu0 %v1708_v50, %s6200_s27 }
  0xeb   :  { %v909_v44 = vmul.f32 %v6685_v47, %v893_v45  ;;  %v908_v61 = vmul.f32 %v6687_v30, %v892_v15  ;;  %v6712_v45 = vunpack.c.l.bf16 %v890_v17  ;;  %8617 = vst [vmem:[#allocation23_spill] sm:$0xff] %v6714_v23  ;;  %1744 = vrot.lane.b32.xlu1 %v1742_v43, %s6200_s27 }
  0xec   :  { %5900 = vmatmul.msk.bf16.vlgmr.msra.gmra.mxu0 %vm316_vm3, %v6668_v22  ;;  %5902 = vmatmul.msk.bf16.vlgmr.msra.gmra.mxu2 %vm316_vm3, %v6668_v22  ;;  %1932 = vst [vmem:[#allocation1] ss:$4 sm:$0xff] %v6262_v2 }
  0xed   :  { %5903 = vmatmul.msk.bf16.vlgmr.msra.gmra.mxu3 %vm316_vm3, %v6668_v22  ;;  %v917_v28 = vpack.c.bf16 %v909_v44, %v909_v44  ;;  %v916_v24 = vpack.c.bf16 %v908_v61, %v908_v61  ;;  %986 = vmatpush.bf16.msra.mxu2 %v936_v16  ;;  %8616 = vst [vmem:[#allocation22_spill] sm:$0xff] %v6712_v45 }
  0xee   :  { %999 = vmatpush.bf16.msra.mxu3 %v939_v42  ;;  %v945_v61 = vand.u32 %v921_v18, %v6403_v52 }
  0xef   :  { %v930_v0 = vand.u32 %v916_v24, %v6403_v52  ;;  %v933_v7 = vand.u32 %v917_v28, %v6403_v52  ;;  %v861_v58 = vpop.permute.xlu0 %860  ;;  %v863_v31 = vpop.permute.xlu1 %862  ;;  %v1702_v24 = vld.sshfl [vmem:[#allocation1 + $0x20] sm:$0xff pattern:$0x73625140] }
  0xf0   :  { %v870_v15 = vsel %vm864_vm6, %v6631_v56, %v861_v58  ;;  %v871_v44 = vsel %vm864_vm6, %v861_v58, %v863_v31  ;;  %v920_v56 = vpack.c.bf16 %v912_v32, %v912_v32  ;;  %1718 = vrot.lane.b32.xlu2 %v1702_v24, %s6200_s27  ;;  %v5908_v32 = vld [vmem:[%s8503_s2 + $0xc] sm:$0xf] }
  0xf1   :  { %973 = vmatpush.bf16.msra.mxu1 %v933_v7  ;;  %v898_v16 = vunpack.c.l.bf16 %v870_v15  ;;  %960 = vmatpush.bf16.msra.mxu0 %v930_v0  ;;  %v899_v42 = vunpack.c.l.bf16 %v871_v44  ;;  %v1706_v15 = vld.sshfl [vmem:[#allocation1 + $0x30] sm:$0xff pattern:$0x73625140] }
  0xf2   :  { %v942_v18 = vand.u32 %v920_v56, %v6403_v52  ;;  %v1270_v56 = vperm.slane %v6356_v4, 2 }
  0xf3   :  { %v914_v28 = vmul.f32 %v6712_v45, %v898_v16  ;;  %v915_v17 = vmul.f32 %v6714_v23, %v899_v42  ;;  %v1941_v44 = vld.sshfl [vmem:[#allocation1 + $0x18] sm:$0xff pattern:$0x73625140]  ;;  %v1083_v16 = vand.u32 %v6307_v36, %v6403_v52  ;;  %v1939_v42 = vld.sshfl [vmem:[#allocation1 + $0x10] sm:$0xff pattern:$0x73625140]  ;;  %v1085_v36 = vand.u32 %v6309_v37, %v6403_v52 }
  0xf4   :  { %5905 = vmatmul.msk.bf16.vlgmr.msrb.gmra.mxu1 %vm316_vm3, %v6668_v22  ;;  %1957 = vrot.lane.b32.xlu1 %v1941_v44, %s6201_s30  ;;  %v1093_v44 = vand.u32 %v6348_v62, %v6403_v52 }
  0xf5   :  { %1025 = vmatpush.bf16.msrb.mxu1 %v945_v61  ;;  %v922_v7 = vpack.c.bf16 %v914_v28, %v914_v28  ;;  %v923_v58 = vpack.c.bf16 %v915_v17, %v915_v17  ;;  %1955 = vrot.lane.b32.xlu0 %v1939_v42, %s6201_s30  ;;  %v1937_v61 = vld.sshfl [vmem:[#allocation1 + $0x8] sm:$0xff pattern:$0x73625140]  ;;  %v1081_v28 = vand.u32 %v6305_v35, %v6403_v52 }
  0xf6   :  { %v1087_v17 = vand.u32 %v6311_v38, %v6403_v52  ;;  %v1091_v38 = vand.u32 %v6344_v60, %v6403_v52 }
  0xf7   :  { %v951_v0 = vand.u32 %v923_v58, %v6403_v52  ;;  %v948_v31 = vand.u32 %v922_v7, %v6403_v52  ;;  %v1235_v37 = vpop.permute.xlu1 %1234  ;;  %v6770_v7 = vunpack.c.l.bf16 %v1270_v56  ;;  %v1272_v58 = vperm.slane %v6385_v27, 2 }
  0xf8   :  { %1722 = vrot.lane.b32.xlu2 %v1706_v15, %s6200_s27 }
  0xf9   :  { %8618 = vst [vmem:[#allocation24_spill] sm:$0xff] %v6770_v7 }
  0xfc   :  { %5904 = vmatmul.msk.bf16.vlgmr.msrb.gmra.mxu0 %vm316_vm3, %v6668_v22  ;;  %5906 = vmatmul.msk.bf16.vlgmr.msrb.gmra.mxu2 %vm316_vm3, %v6668_v22 }
  0xfd   :  { %5907 = vmatmul.msk.bf16.vlgmr.msrb.gmra.mxu3 %vm316_vm3, %v6668_v22  ;;  %1012 = vmatpush.bf16.msrb.mxu0 %v942_v18  ;;  %v1704_v22 = vld.sshfl [vmem:[#allocation1 + $0x28] sm:$0xff pattern:$0x73625140]  ;;  %v1271_v18 = vperm.slane %v6383_v26, 2 }
  0xfe   :  { %1038 = vmatpush.bf16.msrb.mxu2 %v948_v31  ;;  %1051 = vmatpush.bf16.msrb.mxu3 %v951_v0  ;;  %1934 = vst [vmem:[#allocation1 + $0x20] ss:$4 sm:$0xff] %v6255_v1  ;;  %v1935_v1 = vld.sshfl [vmem:[#allocation1] sm:$0xff pattern:$0x73625140]  ;;  %v1089_v0 = vand.u32 %v6342_v59, %v6403_v52  ;;  %v6788_v59 = vunpack.c.l.bf16 %v1272_v58 }
  0xff   :  { %1953 = vrot.lane.b32.xlu1 %v1937_v61, %s6201_s30  ;;  %1982 = vst [vmem:[#allocation1] ss:$4 sm:$0xff] %v6262_v2  ;;  %1951 = vrot.lane.b32.xlu0 %v1935_v1, %s6201_s30  ;;  %v6804_v58 = vld [vmem:[%s8503_s2 + $0x10] sm:$0xf] }
 0x100   :  { %1720 = vrot.lane.b32.xlu2 %v1704_v22, %s6200_s27  ;;  %8619 = vst [vmem:[#allocation25_spill] sm:$0xff] %v6788_v59 }
 0x104   :  { %5910 = vmatmul.msk.bf16.vlgmr.msra.gmra.mxu1 %vm316_vm3, %v5908_v32 }
 0x105   :  { %1117 = vmatpush.bf16.msra.mxu1 %v1083_v16  ;;  %v1943_v50 = vld.sshfl [vmem:[#allocation1 + $0x20] sm:$0xff pattern:$0x73625140]  ;;  %v1095_v16 = vand.u32 %v6350_v63, %v6403_v52  ;;  %v1949_v62 = vld.sshfl [vmem:[#allocation1 + $0x38] sm:$0xff pattern:$0x73625140] }
 0x107   :  { %1965 = vrot.lane.b32.xlu0 %v1949_v62, %s6201_s30 }
 0x108   :  { %v6761_v35 = vpop.permute.xlu2 %1236  ;;  %1959 = vrot.lane.b32.xlu2 %v1943_v50, %s6201_s30 }
 0x109   :  { %v1248_v22 = vsel %vm1244_vm7, %v1235_v37, %v6761_v35 }
 0x10b   :  { %v1231_v2 = vpop.permute.xlu1 %1230 }
 0x10c   :  { %5909 = vmatmul.msk.bf16.vlgmr.msra.gmra.mxu0 %vm316_vm3, %v5908_v32  ;;  %5911 = vmatmul.msk.bf16.vlgmr.msra.gmra.mxu2 %vm316_vm3, %v5908_v32  ;;  %v1233_v24 = vpop.permute.xlu0 %1232 }
 0x10d   :  { %5912 = vmatmul.msk.bf16.vlgmr.msra.gmra.mxu3 %vm316_vm3, %v5908_v32  ;;  %1104 = vmatpush.bf16.msra.mxu0 %v1081_v28  ;;  %v1246_v60 = vsel %vm1244_vm7, %v1231_v2, %v1233_v24  ;;  %v1247_v31 = vsel %vm1244_vm7, %v1233_v24, %v1235_v37  ;;  %v6790_v28 = vunpack.c.l.bf16 %v1271_v18  ;;  %v1947_v24 = vld.sshfl [vmem:[#allocation1 + $0x30] sm:$0xff pattern:$0x73625140] }
 0x10e   :  { %1130 = vmatpush.bf16.msra.mxu2 %v1085_v36  ;;  %1143 = vmatpush.bf16.msra.mxu3 %v1087_v17  ;;  %v1278_v15 = vunpack.c.l.bf16 %v1246_v60  ;;  %v1279_v61 = vunpack.c.l.bf16 %v1247_v31  ;;  %v1983_v36 = vld.sshfl [vmem:[#allocation1] sm:$0xff pattern:$0x73625140]  ;;  %v1280_v17 = vunpack.c.l.bf16 %v1248_v22  ;;  %v1274_v60 = vperm.slane %v6339_v55, 2 }
 0x10f   :  { %8620 = vst [vmem:[#allocation26_spill] sm:$0xff] %v6790_v28  ;;  %1985 = vrot.lane.b32.xlu1 %v1983_v36, %s6201_s30 }
 0x110   :  { %v6768_v43 = vpop.permute.xlu2 %1240  ;;  %v1294_v42 = vmul.f32 %v6770_v7, %v1278_v15  ;;  %1963 = vrot.lane.b32.xlu2 %v1947_v24, %s6201_s30  ;;  %v1296_v31 = vmul.f32 %v6788_v59, %v1280_v17  ;;  %v1273_v24 = vperm.slane %v6374_v19, 2 }
 0x112   :  { %v1302_v1 = vpack.c.bf16 %v1294_v42, %v1294_v42  ;;  %v6815_v42 = vunpack.c.l.bf16 %v1274_v60  ;;  %v1304_v62 = vpack.c.bf16 %v1296_v31, %v1296_v31  ;;  %v1275_v31 = vperm.slane %v6410_v3, 2 }
 0x114   :  { %5914 = vmatmul.msk.bf16.vlgmr.msrb.gmra.mxu1 %vm316_vm3, %v5908_v32  ;;  %v1229_v63 = vpop.permute.xlu0 %1228  ;;  %8622 = vst [vmem:[#allocation28_spill] sm:$0xff] %v6815_v42 }
 0x115   :  { %1169 = vmatpush.bf16.msrb.mxu1 %v1091_v38  ;;  %v1245_v37 = vsel %vm1244_vm7, %v1229_v63, %v1231_v2  ;;  %v1269_v38 = vperm.slane %v6376_v20, 2  ;;  %v1295_v2 = vmul.f32 %v6790_v28, %v1279_v61  ;;  %v1945_v61 = vld.sshfl [vmem:[#allocation1 + $0x28] sm:$0xff pattern:$0x73625140] }
 0x117   :  { %v6796_v50 = vunpack.c.l.bf16 %v1269_v38 }
 0x118   :  { %1961 = vrot.lane.b32.xlu2 %v1945_v61, %s6201_s30 }
 0x119   :  { %8621 = vst [vmem:[#allocation27_spill] sm:$0xff] %v6796_v50 }
 0x11a   :  { %v1239_v18 = vpop.permute.xlu2 %1238 }
 0x11b   :  { %v1249_v38 = vsel %vm1244_vm7, %v6761_v35, %v1239_v18 }
 0x11c   :  { %5913 = vmatmul.msk.bf16.vlgmr.msrb.gmra.mxu0 %vm316_vm3, %v5908_v32  ;;  %5915 = vmatmul.msk.bf16.vlgmr.msrb.gmra.mxu2 %vm316_vm3, %v5908_v32  ;;  %v1281_v35 = vunpack.c.l.bf16 %v1249_v38 }
 0x11d   :  { %5916 = vmatmul.msk.bf16.vlgmr.msrb.gmra.mxu3 %vm316_vm3, %v5908_v32  ;;  %1156 = vmatpush.bf16.msrb.mxu0 %v1089_v0  ;;  %v1277_v32 = vunpack.c.l.bf16 %v1245_v37  ;;  %v1318_v0 = vand.u32 %v1302_v1, %v6403_v52 }
 0x11e   :  { %1182 = vmatpush.bf16.msrb.mxu2 %v1093_v44  ;;  %1195 = vmatpush.bf16.msrb.mxu3 %v1095_v16  ;;  %v1250_v44 = vsel %vm1244_vm7, %v1239_v18, %v6768_v43  ;;  %v1303_v16 = vpack.c.bf16 %v1295_v2, %v1295_v2  ;;  %v6838_v18 = vunpack.c.l.bf16 %v1273_v24 }
 0x11f   :  { %v1293_v15 = vmul.f32 %v6796_v50, %v1277_v32  ;;  %v1282_v22 = vunpack.c.l.bf16 %v1250_v44 }
 0x120   :  { %v1243_v63 = vpop.permute.xlu0 %1242  ;;  %v1321_v2 = vand.u32 %v1303_v16, %v6403_v52  ;;  %8623 = vst [vmem:[#allocation29_spill] sm:$0xff] %v6838_v18 }
 0x121   :  { %v6799_v56 = vpop.f32.mrf.mxu1  ;;  %v1301_v36 = vpack.c.bf16 %v1293_v15, %v1293_v15  ;;  %v1298_v32 = vmul.f32 %v6815_v42, %v1282_v22  ;;  %v1276_v15 = vperm.slane %v6418_v12, 2  ;;  %v1251_v44 = vsel %vm1244_vm7, %v6768_v43, %v1243_v63 }
 0x122   :  { %v1283_v22 = vunpack.c.l.bf16 %v1251_v44 }
 0x123   :  { %v1315_v60 = vand.u32 %v1301_v36, %v6403_v52  ;;  %v1306_v16 = vpack.c.bf16 %v1298_v32, %v1298_v32  ;;  %v6842_v36 = vunpack.c.l.bf16 %v1276_v15  ;;  %v1297_v32 = vmul.f32 %v6838_v18, %v1281_v35 }
 0x124   :  { %5919 = vmatmul.msk.bf16.vlgmr.msra.gmra.mxu1 %vm316_vm3, %v6804_v58  ;;  %v1263_v17 = vpop.permute.xlu1 %1262  ;;  %v1512_v35 = vperm.slane %v6448_v54, 3 }
 0x125   :  { %1358 = vmatpush.bf16.msra.mxu1 %v1318_v0  ;;  %v1324_v0 = vand.u32 %v1304_v62, %v6403_v52  ;;  %v1267_v61 = vsel %vm1244_vm7, %v1243_v63, %v1263_v17  ;;  %v6840_v62 = vunpack.c.l.bf16 %v1275_v31  ;;  %8625 = vst [vmem:[#allocation31_spill] sm:$0xff] %v6842_v36  ;;  %v1305_v15 = vpack.c.bf16 %v1297_v32, %v1297_v32 }
 0x126   :  { %v1284_v43 = vunpack.c.l.bf16 %v1267_v61 }
 0x127   :  { %8624 = vst [vmem:[#allocation30_spill] sm:$0xff] %v6840_v62 }
 0x128   :  { %v1300_v31 = vmul.f32 %v6842_v36, %v1284_v43  ;;  %v1327_v36 = vand.u32 %v1305_v15, %v6403_v52 }
 0x129   :  { %v6818_v1 = vpop.f32.mrf.mxu0  ;;  %v372_v37 = vpop.f32.mrf.mxu1 }
 0x12a   :  { %v1308_v61 = vpack.c.bf16 %v1300_v31, %v1300_v31  ;;  %v6878_v31 = vunpack.c.l.bf16 %v1512_v35 }
 0x12c   :  { %5918 = vmatmul.msk.bf16.vlgmr.msra.gmra.mxu0 %vm316_vm3, %v6804_v58  ;;  %5920 = vmatmul.msk.bf16.vlgmr.msra.gmra.mxu2 %vm316_vm3, %v6804_v58  ;;  %v6846_v17 = vpop.permute.xlu2 %1477  ;;  %v1476_v42 = vpop.permute.xlu1 %1475  ;;  %8627 = vst [vmem:[#allocation33_spill] sm:$0xff] %v6878_v31 }
 0x12d   :  { %5921 = vmatmul.msk.bf16.vlgmr.msra.gmra.mxu3 %vm316_vm3, %v6804_v58  ;;  %1371 = vmatpush.bf16.msra.mxu2 %v1321_v2  ;;  %v1330_v2 = vand.u32 %v1306_v16, %v6403_v52 }
 0x12e   :  { %1384 = vmatpush.bf16.msra.mxu3 %v1324_v0  ;;  %1345 = vmatpush.bf16.msra.mxu0 %v1315_v60  ;;  %v1299_v0 = vmul.f32 %v6840_v62, %v1283_v22  ;;  %v1474_v60 = vpop.permute.xlu0 %1473  ;;  %v1513_v62 = vperm.slane %v6442_v48, 3 }
 0x12f   :  { %v6844_v63 = vpop.f32.mrf.mxu2  ;;  %v1488_v32 = vsel %vm1485_vm8, %v1474_v60, %v1476_v42 }
 0x130   :  { %v6848_v37 = vpop.f32.mrf.mxu3  ;;  %v1307_v44 = vpack.c.bf16 %v1299_v0, %v1299_v0  ;;  %v1520_v48 = vunpack.c.l.bf16 %v1488_v32 }
 0x131   :  { %v359_v38 = vpop.f32.mrf.mxu0  ;;  %v6850_v24 = vpop.f32.mrf.mxu1 }
 0x132   :  { %v1511_v38 = vperm.slane %v6482_v46, 3  ;;  %v1489_v46 = vsel %vm1485_vm8, %v1476_v42, %v6846_v17 }
 0x133   :  { %v1521_v42 = vunpack.c.l.bf16 %v1489_v46 }
 0x134   :  { %5923 = vmatmul.msk.bf16.vlgmr.msrb.gmra.mxu1 %vm316_vm3, %v6804_v58  ;;  %v6871_v54 = vunpack.c.l.bf16 %v1511_v38 }
 0x135   :  { %1410 = vmatpush.bf16.msrb.mxu1 %v1330_v2  ;;  %v1336_v2 = vand.u32 %v1308_v61, %v6403_v52 }
 0x136   :  { %8626 = vst [vmem:[#allocation32_spill] sm:$0xff] %v6871_v54  ;;  %v1470_v61 = vpop.permute.xlu0 %1469 }
 0x137   :  { %v385_v59 = vpop.f32.mrf.mxu2 }
 0x138   :  { %v398_v28 = vpop.f32.mrf.mxu3  ;;  %v6860_v16 = vpop.permute.xlu2 %1481  ;;  %v1333_v59 = vand.u32 %v1307_v44, %v6403_v52  ;;  %v6882_v44 = vunpack.c.l.bf16 %v1513_v62 }
 0x139   :  { %v6862_v22 = vpop.f32.mrf.mxu0  ;;  %v424_v43 = vpop.f32.mrf.mxu1 }
 0x13a   :  { %v1472_v28 = vpop.permute.xlu1 %1471  ;;  %8628 = vst [vmem:[#allocation34_spill] sm:$0xff] %v6882_v44 }
 0x13b   :  { %v1487_v0 = vsel %vm1485_vm8, %v1472_v28, %v1474_v60  ;;  %v1510_v60 = vperm.slane %v6486_v34, 3  ;;  %v1486_v43 = vsel %vm1485_vm8, %v1470_v61, %v1472_v28  ;;  %v6897_v34 = vld [vmem:[%s8503_s2 + $0x14] sm:$0xf] }
 0x13c   :  { %5922 = vmatmul.msk.bf16.vlgmr.msrb.gmra.mxu0 %vm316_vm3, %v6804_v58  ;;  %5924 = vmatmul.msk.bf16.vlgmr.msrb.gmra.mxu2 %vm316_vm3, %v6804_v58  ;;  %v1519_v15 = vunpack.c.l.bf16 %v1487_v0  ;;  %v1518_v35 = vunpack.c.l.bf16 %v1486_v43 }
 0x13d   :  { %5925 = vmatmul.msk.bf16.vlgmr.msrb.gmra.mxu3 %vm316_vm3, %v6804_v58  ;;  %1397 = vmatpush.bf16.msrb.mxu0 %v1327_v36  ;;  %v6889_v0 = vunpack.c.l.bf16 %v1510_v60  ;;  %v1536_v58 = vmul.f32 %v6878_v31, %v1520_v48 }
 0x13e   :  { %1423 = vmatpush.bf16.msrb.mxu2 %v1333_v59  ;;  %v1535_v38 = vmul.f32 %v6871_v54, %v1519_v15  ;;  %1436 = vmatpush.bf16.msrb.mxu3 %v1336_v2  ;;  %v1537_v2 = vmul.f32 %v6882_v44, %v1521_v42  ;;  %v1515_v59 = vperm.slane %v6469_v51, 3 }
 0x13f   :  { %v6887_v32 = vpop.f32.mrf.mxu2  ;;  %8629 = vst [vmem:[#allocation35_spill] sm:$0xff] %v6889_v0  ;;  %v1534_v15 = vmul.f32 %v6889_v0, %v1518_v35  ;;  %v1544_v60 = vpack.c.bf16 %v1536_v58, %v1536_v58  ;;  %v1514_v35 = vperm.slane %v6465_v33, 3  ;;  %v1516_v33 = vperm.slane %v6529_v8, 3 }
 0x140   :  { %v6891_v18 = vpop.f32.mrf.mxu3  ;;  %v1543_v62 = vpack.c.bf16 %v1535_v38, %v1535_v38  ;;  %v1480_v36 = vpop.permute.xlu2 %1479  ;;  %v1545_v38 = vpack.c.bf16 %v1537_v2, %v1537_v2 }
 0x141   :  { %v411_v46 = vpop.f32.mrf.mxu0  ;;  %v501_v7 = vpop.f32.mrf.mxu1  ;;  %v1491_v48 = vsel %vm1485_vm8, %v1480_v36, %v6860_v16  ;;  %v1542_v51 = vpack.c.bf16 %v1534_v15, %v1534_v15  ;;  %v1562_v44 = vand.u32 %v1544_v60, %v6403_v52  ;;  %v1490_v0 = vsel %vm1485_vm8, %v6846_v17, %v1480_v36 }
 0x142   :  { %v6902_v28 = vadd.f32 %v501_v7, %v6799_v56  ;;  %v1559_v61 = vand.u32 %v1543_v62, %v6403_v52  ;;  %v1523_v43 = vunpack.c.l.bf16 %v1491_v48  ;;  %v6910_v46 = vunpack.c.l.bf16 %v1515_v59  ;;  %v1484_v7 = vpop.permute.xlu0 %1483 }
 0x143   :  { %v1565_v2 = vand.u32 %v1545_v38, %v6403_v52  ;;  %v1517_v59 = vperm.slane %v6533_v9, 3  ;;  %v1556_v48 = vand.u32 %v1542_v51, %v6403_v52  ;;  %v1492_v60 = vsel %vm1485_vm8, %v6860_v16, %v1484_v7 }
 0x144   :  { %5928 = vmatmul.msk.bf16.vlgmr.msra.gmra.mxu1 %vm316_vm3, %v6897_v34  ;;  %8630 = vst [vmem:[#allocation36_spill] sm:$0xff] %v6910_v46  ;;  %v1504_v54 = vpop.permute.xlu1 %1503  ;;  %v1539_v58 = vmul.f32 %v6910_v46, %v1523_v43  ;;  %v1522_v17 = vunpack.c.l.bf16 %v1490_v0  ;;  %v6931_v9 = vunpack.c.l.bf16 %v1514_v35  ;;  %v6937_v16 = vunpack.c.l.bf16 %v1516_v33 }
 0x145   :  { %1599 = vmatpush.bf16.msra.mxu1 %v1559_v61  ;;  %v1508_v61 = vsel %vm1485_vm8, %v1484_v7, %v1504_v54  ;;  %v1524_v54 = vunpack.c.l.bf16 %v1492_v60 }
 0x146   :  { %8631 = vst [vmem:[#allocation37_spill] sm:$0xff] %v6931_v9  ;;  %v1525_v8 = vunpack.c.l.bf16 %v1508_v61  ;;  %v1538_v51 = vmul.f32 %v6931_v9, %v1522_v17 }
 0x147   :  { %v437_v42 = vpop.f32.mrf.mxu2  ;;  %8633 = vst [vmem:[#allocation39_spill] sm:$0xff] %v6937_v16 }
 0x148   :  { %v450_v56 = vpop.f32.mrf.mxu3 }
 0x149   :  { %v488_v31 = vpop.f32.mrf.mxu0  ;;  %v503_v62 = vpop.f32.mrf.mxu1 }
 0x14a   :  { %v6920_v15 = vadd.f32 %v488_v31, %v6818_v1  ;;  %v1547_v1 = vpack.c.bf16 %v1539_v58, %v1539_v58  ;;  %v6935_v31 = vunpack.c.l.bf16 %v1517_v59  ;;  %v6939_v38 = vpop.permute.xlu2 %1718 }
 0x14c   :  { %5927 = vmatmul.msk.bf16.vlgmr.msra.gmra.mxu0 %vm316_vm3, %v6897_v34  ;;  %5929 = vmatmul.msk.bf16.vlgmr.msra.gmra.mxu2 %vm316_vm3, %v6897_v34  ;;  %8632 = vst [vmem:[#allocation38_spill] sm:$0xff] %v6935_v31  ;;  %v1717_v42 = vpop.permute.xlu1 %1716  ;;  %v1541_v35 = vmul.f32 %v6935_v31, %v1525_v8  ;;  %v1571_v62 = vand.u32 %v1547_v1, %v6403_v52  ;;  %v1715_v59 = vpop.permute.xlu0 %1714 }
 0x14d   :  { %5930 = vmatmul.msk.bf16.vlgmr.msra.gmra.mxu3 %vm316_vm3, %v6897_v34  ;;  %1612 = vmatpush.bf16.msra.mxu2 %v1562_v44 }
 0x14e   :  { %1625 = vmatpush.bf16.msra.mxu3 %v1565_v2  ;;  %1586 = vmatpush.bf16.msra.mxu0 %v1556_v48  ;;  %v1540_v2 = vmul.f32 %v6937_v16, %v1524_v54  ;;  %v1752_v48 = vperm.slane %v6356_v4, 3 }
 0x14f   :  { %v514_v36 = vpop.f32.mrf.mxu2 }
 0x150   :  { %v6942_v0 = vadd.f32 %v514_v36, %v6844_v63  ;;  %v527_v43 = vpop.f32.mrf.mxu3  ;;  %v1546_v63 = vpack.c.bf16 %v1538_v51, %v1538_v51  ;;  %v1548_v33 = vpack.c.bf16 %v1540_v2, %v1540_v2  ;;  %v1753_v51 = vperm.slane %v6383_v26, 3 }
 0x151   :  { %v6946_v44 = vadd.f32 %v527_v43, %v6848_v37  ;;  %v490_v7 = vpop.f32.mrf.mxu0  ;;  %v553_v56 = vpop.f32.mrf.mxu1  ;;  %v1549_v37 = vpack.c.bf16 %v1541_v35, %v1541_v35  ;;  %v1754_v43 = vperm.slane %v6385_v27, 3  ;;  %v1729_v35 = vsel %vm1726_vm9, %v1715_v59, %v1717_v42 }
 0x152   :  { %v6951_v58 = vadd.f32 %v553_v56, %v6850_v24  ;;  %v1568_v17 = vand.u32 %v1546_v63, %v6403_v52  ;;  %v6958_v24 = vunpack.c.l.bf16 %v1752_v48  ;;  %v1574_v56 = vand.u32 %v1548_v33, %v6403_v52 }
 0x153   :  { %v1577_v36 = vand.u32 %v1549_v37, %v6403_v52  ;;  %v1730_v63 = vsel %vm1726_vm9, %v1717_v42, %v6939_v38  ;;  %v1761_v27 = vunpack.c.l.bf16 %v1729_v35  ;;  %v1751_v48 = vperm.slane %v6376_v20, 3 }
 0x154   :  { %5932 = vmatmul.msk.bf16.vlgmr.msrb.gmra.mxu1 %vm316_vm3, %v6897_v34  ;;  %8634 = vst [vmem:[#allocation40_spill] sm:$0xff] %v6958_v24  ;;  %v1762_v37 = vunpack.c.l.bf16 %v1730_v63  ;;  %v6981_v42 = vunpack.c.l.bf16 %v1754_v43  ;;  %v6995_v43 = vld [vmem:[%s8503_s2 + $0x18] sm:$0xf] }
 0x155   :  { %1651 = vmatpush.bf16.msrb.mxu1 %v1571_v62  ;;  %v1713_v1 = vpop.permute.xlu1 %1712  ;;  %v1723_v62 = vpop.permute.xlu2 %1722 }
 0x156   :  { %v1728_v4 = vsel %vm1726_vm9, %v1713_v1, %v1715_v59  ;;  %v1711_v59 = vpop.permute.xlu0 %1710  ;;  %8636 = vst [vmem:[#allocation42_spill] sm:$0xff] %v6981_v42  ;;  %v1778_v35 = vmul.f32 %v6981_v42, %v1762_v37 }
 0x157   :  { %v516_v61 = vpop.f32.mrf.mxu2  ;;  %v1760_v2 = vunpack.c.l.bf16 %v1728_v4 }
 0x158   :  { %v529_v60 = vpop.f32.mrf.mxu3  ;;  %v1727_v61 = vsel %vm1726_vm9, %v1711_v59, %v1713_v1 }
 0x159   :  { %v540_v8 = vpop.f32.mrf.mxu0  ;;  %v555_v54 = vpop.f32.mrf.mxu1  ;;  %v1776_v26 = vmul.f32 %v6958_v24, %v1760_v2 }
 0x15a   :  { %v6965_v7 = vadd.f32 %v540_v8, %v6862_v22  ;;  %v6978_v22 = vunpack.c.l.bf16 %v1753_v51  ;;  %v1759_v8 = vunpack.c.l.bf16 %v1727_v61  ;;  %v6984_v54 = vunpack.c.l.bf16 %v1751_v48 }
 0x15b   :  { %v1784_v33 = vpack.c.bf16 %v1776_v26, %v1776_v26  ;;  %v1786_v48 = vpack.c.bf16 %v1778_v35, %v1778_v35  ;;  %v1755_v61 = vperm.slane %v6374_v19, 3 }
 0x15c   :  { %5931 = vmatmul.msk.bf16.vlgmr.msrb.gmra.mxu0 %vm316_vm3, %v6897_v34  ;;  %5933 = vmatmul.msk.bf16.vlgmr.msrb.gmra.mxu2 %vm316_vm3, %v6897_v34  ;;  %8635 = vst [vmem:[#allocation41_spill] sm:$0xff] %v6978_v22  ;;  %v1777_v1 = vmul.f32 %v6978_v22, %v1761_v27 }
 0x15d   :  { %5934 = vmatmul.msk.bf16.vlgmr.msrb.gmra.mxu3 %vm316_vm3, %v6897_v34  ;;  %1638 = vmatpush.bf16.msrb.mxu0 %v1568_v17  ;;  %8637 = vst [vmem:[#allocation43_spill] sm:$0xff] %v6984_v54  ;;  %v1721_v2 = vpop.permute.xlu2 %1720  ;;  %v1806_v19 = vand.u32 %v1786_v48, %v6403_v52 }
 0x15e   :  { %1664 = vmatpush.bf16.msrb.mxu2 %v1574_v56  ;;  %1677 = vmatpush.bf16.msrb.mxu3 %v1577_v36  ;;  %v1800_v36 = vand.u32 %v1784_v33, %v6403_v52  ;;  %v1756_v56 = vperm.slane %v6339_v55, 3  ;;  %v1732_v63 = vsel %vm1726_vm9, %v1721_v2, %v1723_v62  ;;  %v1785_v26 = vpack.c.bf16 %v1777_v1, %v1777_v1  ;;  %v1725_v37 = vpop.permute.xlu0 %1724 }
 0x15f   :  { %v566_v60 = vpop.f32.mrf.mxu2  ;;  %v1764_v59 = vunpack.c.l.bf16 %v1732_v63 }
 0x160   :  { %v6987_v34 = vadd.f32 %v566_v60, %v6887_v32  ;;  %v579_v17 = vpop.f32.mrf.mxu3  ;;  %v7008_v27 = vunpack.c.l.bf16 %v1756_v56  ;;  %v1757_v60 = vperm.slane %v6410_v3, 3  ;;  %v1733_v3 = vsel %vm1726_vm9, %v1723_v62, %v1725_v37 }
 0x161   :  { %v6990_v51 = vadd.f32 %v579_v17, %v6891_v18  ;;  %v542_v20 = vpop.f32.mrf.mxu0  ;;  %v734_v4 = vpop.f32.mrf.mxu1  ;;  %v1775_v18 = vmul.f32 %v6984_v54, %v1759_v8  ;;  %v1765_v62 = vunpack.c.l.bf16 %v1733_v3 }
 0x162   :  { %v7001_v32 = vadd.f32 %v734_v4, %v6902_v28  ;;  %8638 = vst [vmem:[#allocation44_spill] sm:$0xff] %v7008_v27  ;;  %v1803_v20 = vand.u32 %v1785_v26, %v6403_v52  ;;  %v1731_v4 = vsel %vm1726_vm9, %v6939_v38, %v1721_v2  ;;  %v1780_v1 = vmul.f32 %v7008_v27, %v1764_v59 }
 0x163   :  { %v1783_v55 = vpack.c.bf16 %v1775_v18, %v1775_v18  ;;  %v1745_v18 = vpop.permute.xlu1 %1744  ;;  %v1763_v38 = vunpack.c.l.bf16 %v1731_v4  ;;  %v38_v4 = vld [vmem:[%s8502_s1 + $0x28] sm:$0x11] }
 0x164   :  { %5937 = vmatmul.msk.bf16.vlgmr.msra.gmra.mxu1 %vm316_vm3, %v6995_v43  ;;  %v1749_v63 = vsel %vm1726_vm9, %v1725_v37, %v1745_v18  ;;  %v1788_v2 = vpack.c.bf16 %v1780_v1, %v1780_v1 }
 0x165   :  { %1840 = vmatpush.bf16.msra.mxu1 %v1800_v36  ;;  %v1758_v36 = vperm.slane %v6418_v12, 3  ;;  %v1797_v35 = vand.u32 %v1783_v55, %v6403_v52  ;;  %v7028_v12 = vunpack.c.l.bf16 %v1755_v61  ;;  %v1766_v26 = vunpack.c.l.bf16 %v1749_v63 }
 0x167   :  { %v568_v33 = vpop.f32.mrf.mxu2  ;;  %8639 = vst [vmem:[#allocation45_spill] sm:$0xff] %v7028_v12  ;;  %v7034_v59 = vunpack.c.l.bf16 %v1758_v36  ;;  %v7055_v36 = vpop.permute.xlu2 %1959 }
 0x168   :  { %v581_v28 = vpop.f32.mrf.mxu3 }
 0x169   :  { %v721_v8 = vpop.f32.mrf.mxu0  ;;  %v736_v17 = vpop.f32.mrf.mxu1  ;;  %8641 = vst [vmem:[#allocation47_spill] sm:$0xff] %v7034_v59  ;;  %v1779_v28 = vmul.f32 %v7028_v12, %v1763_v38 }
 0x16a   :  { %v7018_v56 = vadd.f32 %v721_v8, %v6920_v15  ;;  %v7030_v15 = vunpack.c.l.bf16 %v1757_v60  ;;  %v1812_v8 = vand.u32 %v1788_v2, %v6403_v52 }
 0x16b   :  { %v1787_v18 = vpack.c.bf16 %v1779_v28, %v1779_v28 }
 0x16c   :  { %5936 = vmatmul.msk.bf16.vlgmr.msra.gmra.mxu0 %vm316_vm3, %v6995_v43  ;;  %5938 = vmatmul.msk.bf16.vlgmr.msra.gmra.mxu2 %vm316_vm3, %v6995_v43  ;;  %8640 = vst [vmem:[#allocation46_spill] sm:$0xff] %v7030_v15  ;;  %v1781_v17 = vmul.f32 %v7030_v15, %v1765_v62 }
 0x16d   :  { %5939 = vmatmul.msk.bf16.vlgmr.msra.gmra.mxu3 %vm316_vm3, %v6995_v43  ;;  %1853 = vmatpush.bf16.msra.mxu2 %v1803_v20  ;;  %v1782_v20 = vmul.f32 %v7034_v59, %v1766_v26 }
 0x16e   :  { %1866 = vmatpush.bf16.msra.mxu3 %v1806_v19  ;;  %1827 = vmatpush.bf16.msra.mxu0 %v1797_v35  ;;  %v1999_v35 = vunpack.c.h.b16 %v38_v4  ;;  %v1998_v19 = vunpack.c.l.b16 %v38_v4  ;;  %v1789_v2 = vpack.c.bf16 %v1781_v17, %v1781_v17  ;;  %v1809_v4 = vand.u32 %v1787_v18, %v6403_v52 }
 0x16f   :  { %v747_v48 = vpop.f32.mrf.mxu2  ;;  %v1790_v62 = vpack.c.bf16 %v1782_v20, %v1782_v20 }
 0x170   :  { %v7037_v55 = vadd.f32 %v747_v48, %v6942_v0  ;;  %v760_v33 = vpop.f32.mrf.mxu3  ;;  %v37_v0 = vld [vmem:[%s8502_s1 + $0x20] sm:$0x11]  ;;  %v2007_v63 = vpack.c.b16 %v1999_v35, %v1999_v35  ;;  %v2006_v38 = vpack.c.b16 %v1998_v19, %v1998_v19  ;;  %v1815_v12 = vand.u32 %v1789_v2, %v6403_v52  ;;  %v39_v2 = vld [vmem:[%s8502_s1 + $0x30] sm:$0x11] }
 0x171   :  { %v7041_v61 = vadd.f32 %v760_v33, %v6946_v44  ;;  %v723_v37 = vpop.f32.mrf.mxu0  ;;  %v786_v60 = vpop.f32.mrf.mxu1  ;;  %v1997_v3 = vunpack.c.h.b16 %v37_v0  ;;  %v1818_v28 = vand.u32 %v1790_v62, %v6403_v52  ;;  %v2000_v62 = vunpack.c.l.b16 %v39_v2 }
 0x172   :  { %v7053_v1 = vadd.f32 %v786_v60, %v6951_v58  ;;  %v1958_v44 = vpop.permute.xlu1 %1957  ;;  %v2025_v48 = vpack.i.b16 %v2007_v63, %v2007_v63  ;;  %v2021_v33 = vpack.i.b16 %v2006_v38, %v2006_v38  ;;  %v1956_v37 = vpop.permute.xlu0 %1955 }
 0x173   :  { %v2005_v26 = vpack.c.b16 %v1997_v3, %v1997_v3  ;;  %v1970_v19 = vsel %vm1967_vm10, %v1956_v37, %v1958_v44  ;;  %v7066_v63 = vpop.permute.xlu2 %1963  ;;  %v1971_v18 = vsel %vm1967_vm10, %v1958_v44, %v7055_v36 }
 0x174   :  { %5941 = vmatmul.msk.bf16.vlgmr.msrb.gmra.mxu1 %vm316_vm3, %v6995_v43  ;;  %v2023_v35 = vperm.slane %v2021_v33, 0  ;;  %v2027_v20 = vperm.slane %v2025_v48, 0 }
 0x175   :  { %1892 = vmatpush.bf16.msrb.mxu1 %v1812_v8  ;;  %v2017_v60 = vpack.i.b16 %v2005_v26, %v2005_v26  ;;  %v2047_v26 = vunpack.c.l.bf16 %v1971_v18  ;;  %v2001_v18 = vunpack.c.h.b16 %v39_v2 }
 0x176   :  { %v7082_v44 = vunpack.c.l.bf16 %v2023_v35  ;;  %v7084_v48 = vunpack.c.l.bf16 %v2027_v20 }
 0x177   :  { %v749_v58 = vpop.f32.mrf.mxu2  ;;  %v2019_v17 = vperm.slane %v2017_v60, 0 }
 0x178   :  { %v762_v59 = vpop.f32.mrf.mxu3  ;;  %8643 = vst [vmem:[#allocation49_spill] sm:$0xff] %v7082_v44 }
 0x179   :  { %v773_v15 = vpop.f32.mrf.mxu0  ;;  %v788_v27 = vpop.f32.mrf.mxu1  ;;  %v1996_v59 = vunpack.c.l.b16 %v37_v0  ;;  %v7071_v38 = vunpack.c.l.bf16 %v2019_v17  ;;  %v2046_v0 = vunpack.c.l.bf16 %v1970_v19  ;;  %8644 = vst [vmem:[#allocation50_spill] sm:$0xff] %v7084_v48 }
 0x17a   :  { %v7063_v8 = vadd.f32 %v773_v15, %v6965_v7  ;;  %v1954_v3 = vpop.permute.xlu1 %1953 }
 0x17b   :  { %v1969_v27 = vsel %vm1967_vm10, %v1954_v3, %v1956_v37  ;;  %8642 = vst [vmem:[#allocation48_spill] sm:$0xff] %v7071_v38  ;;  %v2004_v15 = vpack.c.b16 %v1996_v59, %v1996_v59 }
 0x17c   :  { %5940 = vmatmul.msk.bf16.vlgmr.msrb.gmra.mxu0 %vm316_vm3, %v6995_v43  ;;  %5942 = vmatmul.msk.bf16.vlgmr.msrb.gmra.mxu2 %vm316_vm3, %v6995_v43  ;;  %v2045_v7 = vunpack.c.l.bf16 %v1969_v27  ;;  %v2063_v27 = vmul.f32 %v7084_v48, %v2047_v26 }
 0x17d   :  { %5943 = vmatmul.msk.bf16.vlgmr.msrb.gmra.mxu3 %vm316_vm3, %v6995_v43  ;;  %1879 = vmatpush.bf16.msrb.mxu0 %v1809_v4  ;;  %v2013_v37 = vpack.i.b16 %v2004_v15, %v2004_v15  ;;  %v2008_v43 = vpack.c.b16 %v2000_v62, %v2000_v62 }
 0x17e   :  { %1905 = vmatpush.bf16.msrb.mxu2 %v1815_v12  ;;  %v2061_v33 = vmul.f32 %v7071_v38, %v2045_v7  ;;  %1918 = vmatpush.bf16.msrb.mxu3 %v1818_v28  ;;  %v7096_v12 = vld [vmem:[%s8503_s2 + $0x1c] sm:$0xf]  ;;  %v2062_v28 = vmul.f32 %v7082_v44, %v2046_v0  ;;  %v2009_v0 = vpack.c.b16 %v2001_v18, %v2001_v18 }
 0x17f   :  { %v799_v58 = vpop.f32.mrf.mxu2  ;;  %v2015_v20 = vperm.slane %v2013_v37, 0  ;;  %v2029_v37 = vpack.i.b16 %v2008_v43, %v2008_v43  ;;  %v2071_v26 = vpack.c.bf16 %v2063_v27, %v2063_v27 }
 0x180   :  { %v7088_v60 = vadd.f32 %v799_v58, %v6987_v34  ;;  %v812_v17 = vpop.f32.mrf.mxu3  ;;  %v2069_v59 = vpack.c.bf16 %v2061_v33, %v2061_v33  ;;  %v1962_v58 = vpop.permute.xlu2 %1961  ;;  %v2070_v2 = vpack.c.bf16 %v2062_v28, %v2062_v28  ;;  %v40_v28 = vld [vmem:[%s8502_s1 + $0x38] sm:$0x11] }
 0x181   :  { %v7091_v4 = vadd.f32 %v812_v17, %v6990_v51  ;;  %v775_v35 = vpop.f32.mrf.mxu0  ;;  %v975_v19 = vpop.f32.mrf.mxu1  ;;  %v7105_v62 = vunpack.c.l.bf16 %v2015_v20  ;;  %v2031_v20 = vperm.slane %v2029_v37, 0  ;;  %v1972_v43 = vsel %vm1967_vm10, %v7055_v36, %v1962_v58 }
 0x182   :  { %v7100_v34 = vadd.f32 %v975_v19, %v7001_v32  ;;  %v2085_v7 = vand.u32 %v2069_v59, %v6403_v52  ;;  %v1952_v51 = vpop.permute.xlu0 %1951  ;;  %v1973_v32 = vsel %vm1967_vm10, %v1962_v58, %v7066_v63  ;;  %v2033_v59 = vpack.i.b16 %v2009_v0, %v2009_v0 }
 0x183   :  { %v1968_v15 = vsel %vm1967_vm10, %v1952_v51, %v1954_v3  ;;  %8645 = vst [vmem:[#allocation51_spill] sm:$0xff] %v7105_v62  ;;  %v2049_v48 = vunpack.c.l.bf16 %v1973_v32  ;;  %v2088_v18 = vand.u32 %v2070_v2, %v6403_v52  ;;  %v2002_v37 = vunpack.c.l.b16 %v40_v28 }
 0x184   :  { %5946 = vmatmul.msk.bf16.vlgmr.msra.gmra.mxu1 %vm316_vm3, %v7096_v12  ;;  %v2044_v33 = vunpack.c.l.bf16 %v1968_v15  ;;  %v2035_v51 = vperm.slane %v2033_v59, 0  ;;  %v2003_v32 = vunpack.c.h.b16 %v40_v28  ;;  %v2048_v36 = vunpack.c.l.bf16 %v1972_v43 }
 0x185   :  { %2125 = vmatpush.bf16.msra.mxu1 %v2085_v7  ;;  %v2091_v7 = vand.u32 %v2071_v26, %v6403_v52  ;;  %v7129_v58 = vunpack.c.l.bf16 %v2031_v20 }
 0x186   :  { %v2060_v17 = vmul.f32 %v7105_v62, %v2044_v33  ;;  %v7123_v0 = vunpack.c.l.bf16 %v2035_v51  ;;  %v2011_v2 = vpack.c.b16 %v2003_v32, %v2003_v32  ;;  %v1986_v32 = vpop.permute.xlu1 %1985 }
 0x187   :  { %v801_v35 = vpop.f32.mrf.mxu2  ;;  %8647 = vst [vmem:[#allocation53_spill] sm:$0xff] %v7129_v58  ;;  %v2064_v20 = vmul.f32 %v7129_v58, %v2048_v36 }
 0x188   :  { %v814_v3 = vpop.f32.mrf.mxu3  ;;  %v2068_v19 = vpack.c.bf16 %v2060_v17, %v2060_v17  ;;  %8646 = vst [vmem:[#allocation52_spill] sm:$0xff] %v7123_v0  ;;  %v2041_v35 = vpack.i.b16 %v2011_v2, %v2011_v2 }
 0x189   :  { %v962_v44 = vpop.f32.mrf.mxu0  ;;  %v977_v15 = vpop.f32.mrf.mxu1 }
 0x18a   :  { %v7119_v27 = vadd.f32 %v962_v44, %v7018_v56  ;;  %v2082_v33 = vand.u32 %v2068_v19, %v6403_v52  ;;  %v2065_v56 = vmul.f32 %v7123_v0, %v2049_v48  ;;  %v2010_v44 = vpack.c.b16 %v2002_v37, %v2002_v37 }
 0x18b   :  { %v2043_v28 = vperm.slane %v2041_v35, 0  ;;  %v6202_v37 = vmov 0  }
 0x18c   :  { %5945 = vmatmul.msk.bf16.vlgmr.msra.gmra.mxu0 %vm316_vm3, %v7096_v12  ;;  %5947 = vmatmul.msk.bf16.vlgmr.msra.gmra.mxu2 %vm316_vm3, %v7096_v12  ;;  %v2073_v26 = vpack.c.bf16 %v2065_v56, %v2065_v56  ;;  %v2037_v59 = vpack.i.b16 %v2010_v44, %v2010_v44 }
 0x18d   :  { %5948 = vmatmul.msk.bf16.vlgmr.msra.gmra.mxu3 %vm316_vm3, %v7096_v12  ;;  %2138 = vmatpush.bf16.msra.mxu2 %v2088_v18  ;;  %v7147_v44 = vunpack.c.l.bf16 %v2043_v28 }
 0x18e   :  { %2151 = vmatpush.bf16.msra.mxu3 %v2091_v7  ;;  %2112 = vmatpush.bf16.msra.mxu0 %v2082_v33  ;;  %v2097_v43 = vand.u32 %v2073_v26, %v6403_v52  ;;  %v2039_v18 = vperm.slane %v2037_v59, 0  ;;  %v2217_v7 = vld [vmem:[%s8504_s3] sm:$0xff]  ;;  %v1966_v33 = vpop.permute.xlu0 %1965 }
 0x18f   :  { %v988_v17 = vpop.f32.mrf.mxu2  ;;  %6133 = vset.pattern.permute.xlu0 %v6202_v37  ;;  %6134 = vset.pattern.permute.xlu2 %v6202_v37  ;;  %v1990_v56 = vsel %vm1967_vm10, %v1966_v33, %v1986_v32  ;;  %8649 = vst [vmem:[#allocation55_spill] sm:$0xff] %v7147_v44 }
 0x190   :  { %v1059_v3 = vadd.f32 %v988_v17, %v7037_v55  ;;  %v1001_v19 = vpop.f32.mrf.mxu3  ;;  %2220 = vperm.xlu0 %6133, %v2217_v7   ;;  %v7144_v36 = vunpack.c.l.bf16 %v2039_v18  ;;  %v2051_v26 = vunpack.c.l.bf16 %v1990_v56  ;;  %v2072_v17 = vpack.c.bf16 %v2064_v20, %v2064_v20  ;;  %v5953_v56 = vld [vmem:[%s8503_s2 + $0x20] sm:$0xf] }
 0x191   :  { %v1060_v51 = vadd.f32 %v1001_v19, %v7041_v61  ;;  %v964_v48 = vpop.f32.mrf.mxu0  ;;  %v1027_v15 = vpop.f32.mrf.mxu1  ;;  %v1974_v61 = vsel %vm1967_vm10, %v7066_v63, %v1966_v33 }
 0x192   :  { %v1062_v55 = vadd.f32 %v1027_v15, %v7053_v1  ;;  %8648 = vst [vmem:[#allocation54_spill] sm:$0xff] %v7144_v36  ;;  %v2050_v2 = vunpack.c.l.bf16 %v1974_v61  ;;  %v2067_v59 = vmul.f32 %v7147_v44, %v2051_v26  ;;  %v2094_v28 = vand.u32 %v2072_v17, %v6403_v52 }
 0x194   :  { %5950 = vmatmul.msk.bf16.vlgmr.msrb.gmra.mxu1 %vm316_vm3, %v7096_v12  ;;  %v2066_v1 = vmul.f32 %v7144_v36, %v2050_v2  ;;  %v2075_v48 = vpack.c.bf16 %v2067_v59, %v2067_v59 }
 0x195   :  { %2177 = vmatpush.bf16.msrb.mxu1 %v2097_v43 }
 0x196   :  { %v2074_v63 = vpack.c.bf16 %v2066_v1, %v2066_v1  ;;  %v2103_v33 = vand.u32 %v2075_v48, %v6403_v52 }
 0x197   :  { %v990_v35 = vpop.f32.mrf.mxu2 }
 0x198   :  { %v1003_v19 = vpop.f32.mrf.mxu3  ;;  %v2100_v7 = vand.u32 %v2074_v63, %v6403_v52 }
 0x199   :  { %v1014_v15 = vpop.f32.mrf.mxu0  ;;  %v1029_v18 = vpop.f32.mrf.mxu1 }
 0x19a   :  { %v1061_v37 = vadd.f32 %v1014_v15, %v7063_v8 }
 0x19c   :  { %5949 = vmatmul.msk.bf16.vlgmr.msrb.gmra.mxu0 %vm316_vm3, %v7096_v12  ;;  %5951 = vmatmul.msk.bf16.vlgmr.msrb.gmra.mxu2 %vm316_vm3, %v7096_v12 }
 0x19d   :  { %5952 = vmatmul.msk.bf16.vlgmr.msrb.gmra.mxu3 %vm316_vm3, %v7096_v12  ;;  %2164 = vmatpush.bf16.msrb.mxu0 %v2094_v28 }
 0x19e   :  { %2190 = vmatpush.bf16.msrb.mxu2 %v2100_v7  ;;  %2203 = vmatpush.bf16.msrb.mxu3 %v2103_v33 }
 0x19f   :  { %v1040_v20 = vpop.f32.mrf.mxu2 }
 0x1a0   :  { %v1063_v43 = vadd.f32 %v1040_v20, %v7088_v60  ;;  %v1053_v8 = vpop.f32.mrf.mxu3 }
 0x1a1   :  { %v1064_v32 = vadd.f32 %v1053_v8, %v7091_v4  ;;  %v1016_v61 = vpop.f32.mrf.mxu0  ;;  %v1119_v52 = vpop.f32.mrf.mxu1 }
 0x1a2   :  { %v1202_v2 = vadd.f32 %v1119_v52, %v7100_v34 }
 0x1a4   :  { %5955 = vmatmul.msk.bf16.vlgmr.msra.gmra.mxu1 %vm316_vm3, %v5953_v56 }
 0x1a7   :  { %v1042_v12 = vpop.f32.mrf.mxu2 }
 0x1a8   :  { %v1055_v26 = vpop.f32.mrf.mxu3 }
 0x1a9   :  { %v1106_v17 = vpop.f32.mrf.mxu0  ;;  %v1121_v1 = vpop.f32.mrf.mxu1 }
 0x1aa   :  { %v1201_v59 = vadd.f32 %v1106_v17, %v7119_v27 }
 0x1ac   :  { %5954 = vmatmul.msk.bf16.vlgmr.msra.gmra.mxu0 %vm316_vm3, %v5953_v56  ;;  %5956 = vmatmul.msk.bf16.vlgmr.msra.gmra.mxu2 %vm316_vm3, %v5953_v56 }
 0x1ad   :  { %5957 = vmatmul.msk.bf16.vlgmr.msra.gmra.mxu3 %vm316_vm3, %v5953_v56 }
 0x1af   :  { %v1132_v60 = vpop.f32.mrf.mxu2 }
 0x1b0   :  { %v1203_v4 = vadd.f32 %v1132_v60, %v1059_v3  ;;  %v1145_v35 = vpop.f32.mrf.mxu3 }
 0x1b1   :  { %v1204_v19 = vadd.f32 %v1145_v35, %v1060_v51  ;;  %v1108_v63 = vpop.f32.mrf.mxu0  ;;  %v1171_v34 = vpop.f32.mrf.mxu1 }
 0x1b2   :  { %v1206_v48 = vadd.f32 %v1171_v34, %v1062_v55 }
 0x1b4   :  { %5959 = vmatmul.msk.bf16.vlgmr.msrb.gmra.mxu1 %vm316_vm3, %v5953_v56 }
 0x1b7   :  { %v1134_v15 = vpop.f32.mrf.mxu2 }
 0x1b8   :  { %v1147_v18 = vpop.f32.mrf.mxu3 }
 0x1b9   :  { %v1158_v28 = vpop.f32.mrf.mxu0  ;;  %v1173_v7 = vpop.f32.mrf.mxu1 }
 0x1ba   :  { %v1205_v27 = vadd.f32 %v1158_v28, %v1061_v37 }
 0x1bc   :  { %5958 = vmatmul.msk.bf16.vlgmr.msrb.gmra.mxu0 %vm316_vm3, %v5953_v56  ;;  %5960 = vmatmul.msk.bf16.vlgmr.msrb.gmra.mxu2 %vm316_vm3, %v5953_v56 }
 0x1bd   :  { %5961 = vmatmul.msk.bf16.vlgmr.msrb.gmra.mxu3 %vm316_vm3, %v5953_v56 }
 0x1bf   :  { %v1184_v33 = vpop.f32.mrf.mxu2 }
 0x1c0   :  { %v1207_v3 = vadd.f32 %v1184_v33, %v1063_v43  ;;  %v1197_v20 = vpop.f32.mrf.mxu3 }
 0x1c1   :  { %v1208_v51 = vadd.f32 %v1197_v20, %v1064_v32  ;;  %v1160_v8 = vpop.f32.mrf.mxu0  ;;  %v1360_v61 = vpop.f32.mrf.mxu1 }
 0x1c2   :  { %v1443_v55 = vadd.f32 %v1360_v61, %v1202_v2 }
 0x1c7   :  { %v1186_v52 = vpop.f32.mrf.mxu2 }
 0x1c8   :  { %v1199_v12 = vpop.f32.mrf.mxu3 }
 0x1c9   :  { %v1347_v26 = vpop.f32.mrf.mxu0  ;;  %v1362_v17 = vpop.f32.mrf.mxu1 }
 0x1ca   :  { %v1442_v1 = vadd.f32 %v1347_v26, %v1201_v59 }
 0x1cf   :  { %v1373_v60 = vpop.f32.mrf.mxu2 }
 0x1d0   :  { %v1444_v37 = vadd.f32 %v1373_v60, %v1203_v4  ;;  %v1386_v35 = vpop.f32.mrf.mxu3 }
 0x1d1   :  { %v1445_v63 = vadd.f32 %v1386_v35, %v1204_v19  ;;  %v1349_v34 = vpop.f32.mrf.mxu0  ;;  %v1412_v15 = vpop.f32.mrf.mxu1 }
 0x1d2   :  { %v1447_v18 = vadd.f32 %v1412_v15, %v1206_v48 }
 0x1d7   :  { %v1375_v56 = vpop.f32.mrf.mxu2 }
 0x1d8   :  { %v1388_v28 = vpop.f32.mrf.mxu3 }
 0x1d9   :  { %v1399_v43 = vpop.f32.mrf.mxu0  ;;  %v1414_v7 = vpop.f32.mrf.mxu1 }
 0x1da   :  { %v7178_v32 = vadd.f32 %v1399_v43, %v1205_v27 }
 0x1df   :  { %v1425_v33 = vpop.f32.mrf.mxu2 }
 0x1e0   :  { %v7180_v2 = vadd.f32 %v1425_v33, %v1207_v3  ;;  %v1438_v20 = vpop.f32.mrf.mxu3 }
 0x1e1   :  { %v7182_v8 = vadd.f32 %v1438_v20, %v1208_v51  ;;  %v1401_v59 = vpop.f32.mrf.mxu0  ;;  %v1601_v61 = vpop.f32.mrf.mxu1 }
 0x1e2   :  { %v1684_v4 = vadd.f32 %v1601_v61, %v1443_v55 }
 0x1e7   :  { %v1427_v52 = vpop.f32.mrf.mxu2 }
 0x1e8   :  { %v1440_v19 = vpop.f32.mrf.mxu3 }
 0x1e9   :  { %v1588_v12 = vpop.f32.mrf.mxu0  ;;  %v1603_v26 = vpop.f32.mrf.mxu1 }
 0x1ea   :  { %v1683_v58 = vadd.f32 %v1588_v12, %v1442_v1 }
 0x1ef   :  { %v1614_v48 = vpop.f32.mrf.mxu2 }
 0x1f0   :  { %v1627_v17 = vpop.f32.mrf.mxu3 }
 0x1f1   :  { %v1590_v60 = vpop.f32.mrf.mxu0  ;;  %v1653_v35 = vpop.f32.mrf.mxu1  ;;  %v1686_v24 = vadd.f32 %v1627_v17, %v1445_v63 }
 0x1f2   :  { %v1688_v34 = vadd.f32 %v1653_v35, %v1447_v18 }
 0x1f7   :  { %v1616_v27 = vpop.f32.mrf.mxu2 }
 0x1f8   :  { %v1629_v15 = vpop.f32.mrf.mxu3 }
 0x1f9   :  { %v1640_v56 = vpop.f32.mrf.mxu0  ;;  %v1655_v3 = vpop.f32.mrf.mxu1 }
 0x1ff   :  { %v7184_v28 = vpop.f32.mrf.mxu2 }
 0x200   :  { %v7186_v51 = vpop.f32.mrf.mxu3 }
 0x201   :  { %v1642_v43 = vpop.f32.mrf.mxu0  ;;  %v1842_v7 = vpop.f32.mrf.mxu1 }
 0x202   :  { %v1925_v0 = vadd.f32 %v1842_v7, %v1684_v4  ;;  %v7188_v38 = vpop.permute.xlu0 %2220 }
 0x207   :  { %v1668_v55 = vpop.f32.mrf.mxu2 }
 0x208   :  { %v1681_v33 = vpop.f32.mrf.mxu3 }
 0x209   :  { %v1829_v20 = vpop.f32.mrf.mxu0  ;;  %v1844_v59 = vpop.f32.mrf.mxu1 }
 0x20a   :  { %v1924_v33 = vadd.f32 %v1829_v20, %v1683_v58 }
 0x20f   :  { %v1855_v61 = vpop.f32.mrf.mxu2 }
 0x210   :  { %v1868_v52 = vpop.f32.mrf.mxu3 }
 0x211   :  { %v1831_v19 = vpop.f32.mrf.mxu0  ;;  %v1894_v26 = vpop.f32.mrf.mxu1  ;;  %v1927_v4 = vadd.f32 %v1868_v52, %v1686_v24 }
 0x217   :  { %v1857_v60 = vpop.f32.mrf.mxu2 }
 0x218   :  { %v1870_v18 = vpop.f32.mrf.mxu3 }
 0x219   :  { %v1881_v35 = vpop.f32.mrf.mxu0  ;;  %v1896_v27 = vpop.f32.mrf.mxu1  ;;  %v1685_v18 = vadd.f32 %v1614_v48, %v1444_v37  ;;  %v1929_v48 = vadd.f32 %v1894_v26, %v1688_v34 }
 0x21b   :  { %v1926_v22 = vadd.f32 %v1855_v61, %v1685_v18 }
 0x21f   :  { %v1907_v15 = vpop.f32.mrf.mxu2 }
 0x220   :  { %v1920_v3 = vpop.f32.mrf.mxu3 }
 0x221   :  { %v1883_v44 = vpop.f32.mrf.mxu0  ;;  %v2127_v36 = vpop.f32.mrf.mxu1 }
 0x222   :  { %v2210_v43 = vadd.f32 %v2127_v36, %v1925_v0 }
 0x224   :  { %v2224_v60 = vadd.f32 %v7188_v38, %v2210_v43 }
 0x226   :  { %v2232_v54 = vmax.f32 %v2224_v60, 0.0 }
 0x227   :  { %v1909_v55 = vpop.f32.mrf.mxu2 }
 0x228   :  { %v1922_v59 = vpop.f32.mrf.mxu3 }
 0x229   :  { %v2114_v62 = vpop.f32.mrf.mxu0  ;;  %v2129_v42 = vpop.f32.mrf.mxu1 }
 0x22a   :  { %v2209_v19 = vadd.f32 %v2114_v62, %v1924_v33 }
 0x22c   :  { %v2223_v27 = vadd.f32 %v7188_v38, %v2209_v19 }
 0x22e   :  { %v2231_v44 = vmax.f32 %v2223_v27, 0.0 }
 0x22f   :  { %v2140_v1 = vpop.f32.mrf.mxu2 }
 0x230   :  { %v2239_v0 = vpack.c.bf16 %v2232_v54, %v2231_v44  ;;  %v2211_v36 = vadd.f32 %v2140_v1, %v1926_v22  ;;  %v2153_v12 = vpop.f32.mrf.mxu3  ;;  %v1687_v54 = vadd.f32 %v1640_v56, %v7178_v32  ;;  %v1689_v32 = vadd.f32 %v7184_v28, %v7180_v2 }
 0x231   :  { %v2212_v7 = vadd.f32 %v2153_v12, %v1927_v4  ;;  %v2116_v58 = vpop.f32.mrf.mxu0  ;;  %v2179_v20 = vpop.f32.mrf.mxu1 }
 0x232   :  { %v2251_v55 = vunpack.c.l.b16 %v2239_v0  ;;  %v2252_v42 = vunpack.c.h.b16 %v2239_v0  ;;  %v2225_v62 = vadd.f32 %v7188_v38, %v2211_v36  ;;  %v2214_v22 = vadd.f32 %v2179_v20, %v1929_v48 }
 0x233   :  { %v2226_v37 = vadd.f32 %v7188_v38, %v2212_v7  ;;  %v1928_v33 = vadd.f32 %v1881_v35, %v1687_v54  ;;  %v1690_v35 = vadd.f32 %v7186_v51, %v7182_v8  ;;  %v1930_v1 = vadd.f32 %v1907_v15, %v1689_v32 }
 0x234   :  { %v7194_v43 = vpack.c.b16 %v2251_v55, %v2251_v55  ;;  %v7196_v63 = vpack.c.b16 %v2252_v42, %v2252_v42  ;;  %v2233_v17 = vmax.f32 %v2225_v62, 0.0  ;;  %v2228_v18 = vadd.f32 %v7188_v38, %v2214_v22 }
 0x235   :  { %v2234_v24 = vmax.f32 %v2226_v37, 0.0  ;;  %v1931_v2 = vadd.f32 %v1920_v3, %v1690_v35 }
 0x236   :  { %2326 = vrot.lane.b32.xlu1 %v7196_v63, %s6193_s0  ;;  %2324 = vrot.lane.b32.xlu0 %v7194_v43, %s6193_s0  ;;  %v2236_v0 = vmax.f32 %v2228_v18, 0.0 }
 0x237   :  { %v2240_v61 = vpack.c.bf16 %v2234_v24, %v2233_v17  ;;  %v2142_v52 = vpop.f32.mrf.mxu2 }
 0x238   :  { %v2155_v59 = vpop.f32.mrf.mxu3 }
 0x239   :  { %v2253_v34 = vunpack.c.l.b16 %v2240_v61  ;;  %v2254_v26 = vunpack.c.h.b16 %v2240_v61  ;;  %v2166_v19 = vpop.f32.mrf.mxu0  ;;  %v2181_v60 = vpop.f32.mrf.mxu1 }
 0x23a   :  { %v2213_v27 = vadd.f32 %v2166_v19, %v1928_v33 }
 0x23b   :  { %v7204_v44 = vpack.c.b16 %v2253_v34, %v2253_v34  ;;  %v7208_v56 = vpack.c.b16 %v2254_v26, %v2254_v26 }
 0x23c   :  { %v2227_v4 = vadd.f32 %v7188_v38, %v2213_v27 }
 0x23d   :  { %2328 = vrot.lane.b32.xlu2 %v7204_v44, %s6193_s0 }
 0x23e   :  { %v2235_v36 = vmax.f32 %v2227_v4, 0.0  ;;  %2330 = vrot.lane.b32.xlu1 %v7208_v56, %s6193_s0  ;;  %2267 = vrot.lane.b32.xlu0 %v7196_v63, %s6194_s7 }
 0x23f   :  { %v2192_v28 = vpop.f32.mrf.mxu2 }
 0x240   :  { %v2241_v12 = vpack.c.bf16 %v2236_v0, %v2235_v36  ;;  %v2215_v7 = vadd.f32 %v2192_v28, %v1930_v1  ;;  %v2205_v58 = vpop.f32.mrf.mxu3 }
 0x241   :  { %v2216_v20 = vadd.f32 %v2205_v58, %v1931_v2  ;;  %v2168_v55 = vpop.f32.mrf.mxu0 }
 0x242   :  { %v2255_v8 = vunpack.c.l.b16 %v2241_v12  ;;  %v2256_v51 = vunpack.c.h.b16 %v2241_v12  ;;  %v2229_v42 = vadd.f32 %v7188_v38, %v2215_v7 }
 0x243   :  { %v2230_v15 = vadd.f32 %v7188_v38, %v2216_v20 }
 0x244   :  { %v7221_v62 = vpack.c.b16 %v2255_v8, %v2255_v8  ;;  %v7223_v37 = vpack.c.b16 %v2256_v51, %v2256_v51  ;;  %v2237_v48 = vmax.f32 %v2229_v42, 0.0 }
 0x245   :  { %v2238_v17 = vmax.f32 %v2230_v15, 0.0 }
 0x246   :  { %2334 = vrot.lane.b32.xlu1 %v7223_v37, %s6193_s0  ;;  %2332 = vrot.lane.b32.xlu0 %v7221_v62, %s6193_s0 }
 0x247   :  { %v2242_v3 = vpack.c.bf16 %v2238_v17, %v2237_v48  ;;  %v2194_v24 = vpop.f32.mrf.mxu2  ;;  %v7325_v48 = vld [vmem:[%s8505_s4 + $0x4] sm:$0xf] }
 0x248   :  { %v2207_v54 = vpop.f32.mrf.mxu3 }
 0x249   :  { %v2244_v22 = vunpack.c.h.b16 %v2242_v3  ;;  %v2257_v38 = vunpack.c.l.b16 %v2242_v3 }
 0x24b   :  { %v7229_v61 = vpack.c.b16 %v2244_v22, %v2244_v22  ;;  %v7237_v52 = vpack.c.b16 %v2257_v38, %v2257_v38 }
 0x24d   :  { %2322 = vrot.lane.b32.xlu2 %v7229_v61, %s6193_s0 }
 0x24e   :  { %2269 = vrot.lane.b32.xlu1 %v7204_v44, %s6194_s7  ;;  %2275 = vrot.lane.b32.xlu0 %v7223_v37, %s6194_s7 }
 0x255   :  { %2336 = vrot.lane.b32.xlu2 %v7237_v52, %s6193_s0 }
 0x256   :  { %2246 = vrot.lane.b32.xlu1 %v7229_v61, %s6194_s7  ;;  %2650 = vrot.lane.b32.xlu0 %v7196_v63, %s6195_s11 }
 0x25d   :  { %2271 = vrot.lane.b32.xlu2 %v7208_v56, %s6194_s7 }
 0x25e   :  { %2277 = vrot.lane.b32.xlu1 %v7237_v52, %s6194_s7  ;;  %2646 = vrot.lane.b32.xlu0 %v7229_v61, %s6195_s11 }
 0x265   :  { %2265 = vrot.lane.b32.xlu2 %v7194_v43, %s6194_s7 }
 0x266   :  { %2652 = vrot.lane.b32.xlu1 %v7204_v44, %s6195_s11  ;;  %2660 = vrot.lane.b32.xlu0 %v7237_v52, %s6195_s11 }
 0x26d   :  { %2273 = vrot.lane.b32.xlu2 %v7221_v62, %s6194_s7 }
 0x26e   :  { %2648 = vrot.lane.b32.xlu1 %v7194_v43, %s6195_s11  ;;  %2851 = vrot.lane.b32.xlu0 %v7204_v44, %s6196_s12 }
 0x275   :  { %2654 = vrot.lane.b32.xlu2 %v7208_v56, %s6195_s11 }
 0x276   :  { %2656 = vrot.lane.b32.xlu1 %v7221_v62, %s6195_s11  ;;  %2847 = vrot.lane.b32.xlu0 %v7194_v43, %s6196_s12 }
 0x27d   :  { %2658 = vrot.lane.b32.xlu2 %v7223_v37, %s6195_s11 }
 0x27e   :  { %2853 = vrot.lane.b32.xlu1 %v7208_v56, %s6196_s12  ;;  %2855 = vrot.lane.b32.xlu0 %v7221_v62, %s6196_s12 }
 0x285   :  { %2849 = vrot.lane.b32.xlu2 %v7196_v63, %s6196_s12 }
 0x286   :  { %2857 = vrot.lane.b32.xlu1 %v7223_v37, %s6196_s12  ;;  %3193 = vrot.lane.b32.xlu0 %v7221_v62, %s6198_s21 }
 0x28d   :  { %2845 = vrot.lane.b32.xlu2 %v7229_v61, %s6196_s12 }
 0x28e   :  { %3189 = vrot.lane.b32.xlu1 %v7204_v44, %s6198_s21  ;;  %3197 = vrot.lane.b32.xlu0 %v7237_v52, %s6198_s21 }
 0x295   :  { %2859 = vrot.lane.b32.xlu2 %v7237_v52, %s6196_s12 }
 0x296   :  { %3185 = vrot.lane.b32.xlu1 %v7194_v43, %s6198_s21  ;;  %3388 = vrot.lane.b32.xlu0 %v7204_v44, %s6199_s24 }
 0x297   :  { %v2329_v33 = vpop.permute.xlu2 %2328 }
 0x29d   :  { %3191 = vrot.lane.b32.xlu2 %v7208_v56, %s6198_s21 }
 0x29e   :  { %3199 = vrot.lane.b32.xlu1 %v7229_v61, %s6198_s21  ;;  %3384 = vrot.lane.b32.xlu0 %v7194_v43, %s6199_s24 }
 0x2a5   :  { %3187 = vrot.lane.b32.xlu2 %v7196_v63, %s6198_s21 }
 0x2a6   :  { %3390 = vrot.lane.b32.xlu1 %v7208_v56, %s6199_s24  ;;  %3398 = vrot.lane.b32.xlu0 %v7229_v61, %s6199_s24 }
 0x2a7   :  { %v2323_v59 = vpop.permute.xlu2 %2322 }
 0x2a8   :  { %v2327_v34 = vpop.permute.xlu1 %2326  ;;  %v2325_v26 = vpop.permute.xlu0 %2324 }
 0x2a9   :  { %v2339_v19 = vsel %vm230_vm0, %v2327_v34, %v2329_v33  ;;  %v2338_v60 = vsel %vm230_vm0, %v2325_v26, %v2327_v34  ;;  %v2354_v18 = vsel %vm230_vm0, %v2323_v59, %v2325_v26 }
 0x2aa   :  { %v2358_v27 = vunpack.c.l.bf16 %v2339_v19  ;;  %v2356_v32 = vunpack.c.l.bf16 %v2354_v18  ;;  %v2357_v4 = vunpack.c.l.bf16 %v2338_v60 }
 0x2ac   :  { %v2366_v35 = vmul.f32 %v2358_v27, %v6414_v10  ;;  %v2364_v1 = vmul.f32 %v2356_v32, %v6407_v57  ;;  %v2365_v0 = vmul.f32 %v2357_v4, %v6381_v25 }
 0x2ad   :  { %3195 = vrot.lane.b32.xlu2 %v7223_v37, %s6198_s21 }
 0x2ae   :  { %v2374_v36 = vpack.c.bf16 %v2366_v35, %v2366_v35  ;;  %v2372_v2 = vpack.c.bf16 %v2364_v1, %v2364_v1  ;;  %v2373_v28 = vpack.c.bf16 %v2365_v0, %v2365_v0  ;;  %3386 = vrot.lane.b32.xlu1 %v7196_v63, %s6199_s24  ;;  %3589 = vrot.lane.b32.xlu0 %v7208_v56, %s6200_s27 }
 0x2af   :  { %v2337_v12 = vpop.permute.xlu2 %2336 }
 0x2b0   :  { %v2344_v7 = vsel %vm230_vm0, %v2337_v12, %v2323_v59  ;;  %v2331_v58 = vpop.permute.xlu1 %2330  ;;  %v2268_v20 = vpop.permute.xlu0 %2267  ;;  %v2388_v55 = vsel %vm2386_vm11, %v2372_v2, 0  ;;  %v2391_v8 = vsel %vm2386_vm11, %v2373_v28, 0  ;;  %v2394_v51 = vsel %vm2386_vm11, %v2374_v36, 0 }
 0x2b1   :  { %v2363_v42 = vunpack.c.l.bf16 %v2344_v7  ;;  %v2340_v15 = vsel %vm230_vm0, %v2329_v33, %v2331_v58  ;;  %2418 = vmatpush.bf16.msra.mxu0 %v2388_v55  ;;  %2431 = vmatpush.bf16.msra.mxu1 %v2391_v8 }
 0x2b2   :  { %v2359_v17 = vunpack.c.l.bf16 %v2340_v15  ;;  %2444 = vmatpush.bf16.msra.mxu2 %v2394_v51 }
 0x2b3   :  { %v2371_v3 = vmul.f32 %v2363_v42, %v6455_v6 }
 0x2b4   :  { %v2367_v24 = vmul.f32 %v2359_v17, %v6416_v11  ;;  %5963 = vmatmul.msk.bf16.vlgmr.msra.gmra.mxu0 %vm2382_vm12, %v7325_v48  ;;  %5964 = vmatmul.msk.bf16.vlgmr.msra.gmra.mxu1 %vm2382_vm12, %v7325_v48 }
 0x2b5   :  { %v2379_v54 = vpack.c.bf16 %v2371_v3, %v2371_v3  ;;  %5965 = vmatmul.msk.bf16.vlgmr.msra.gmra.mxu2 %vm2382_vm12, %v7325_v48  ;;  %3392 = vrot.lane.b32.xlu2 %v7221_v62, %s6199_s24 }
 0x2b6   :  { %v2375_v22 = vpack.c.bf16 %v2367_v24, %v2367_v24  ;;  %3394 = vrot.lane.b32.xlu1 %v7223_v37, %s6199_s24  ;;  %3585 = vrot.lane.b32.xlu0 %v7196_v63, %s6200_s27 }
 0x2b7   :  { %v2272_v38 = vpop.permute.xlu2 %2271  ;;  %v2409_v18 = vsel %vm2386_vm11, %v2379_v54, 0 }
 0x2b8   :  { %v2335_v33 = vpop.permute.xlu1 %2334  ;;  %v2333_v59 = vpop.permute.xlu0 %2332  ;;  %v2397_v34 = vsel %vm2386_vm11, %v2375_v22, 0 }
 0x2b9   :  { %v2343_v26 = vsel %vm230_vm0, %v2335_v33, %v2337_v12  ;;  %v2341_v19 = vsel %vm230_vm0, %v2331_v58, %v2333_v59  ;;  %v2342_v60 = vsel %vm230_vm0, %v2333_v59, %v2335_v33  ;;  %2457 = vmatpush.bf16.msra.mxu3 %v2397_v34 }
 0x2ba   :  { %v2362_v27 = vunpack.c.l.bf16 %v2343_v26  ;;  %v2360_v32 = vunpack.c.l.bf16 %v2341_v19  ;;  %v2361_v4 = vunpack.c.l.bf16 %v2342_v60 }
 0x2bc   :  { %v2370_v35 = vmul.f32 %v2362_v27, %v6444_v49  ;;  %v2368_v1 = vmul.f32 %v2360_v32, %v6405_v53  ;;  %v2369_v0 = vmul.f32 %v2361_v4, %v6369_v13  ;;  %5966 = vmatmul.msk.bf16.vlgmr.msra.gmra.mxu3 %vm2382_vm12, %v7325_v48 }
 0x2bd   :  { %2509 = vmatpush.bf16.msrb.mxu3 %v2409_v18  ;;  %3396 = vrot.lane.b32.xlu2 %v7237_v52, %s6199_s24 }
 0x2be   :  { %v2378_v36 = vpack.c.bf16 %v2370_v35, %v2370_v35  ;;  %v2376_v2 = vpack.c.bf16 %v2368_v1, %v2368_v1  ;;  %v2377_v28 = vpack.c.bf16 %v2369_v0, %v2369_v0  ;;  %3591 = vrot.lane.b32.xlu1 %v7221_v62, %s6200_s27  ;;  %3593 = vrot.lane.b32.xlu0 %v7223_v37, %s6200_s27 }
 0x2bf   :  { %v2266_v12 = vpop.permute.xlu2 %2265 }
 0x2c0   :  { %v2279_v7 = vsel %vm85_vm4, %v2266_v12, %v2268_v20  ;;  %v2270_v58 = vpop.permute.xlu1 %2269  ;;  %v2276_v55 = vpop.permute.xlu0 %2275  ;;  %v2400_v8 = vsel %vm2386_vm11, %v2376_v2, 0  ;;  %v2403_v51 = vsel %vm2386_vm11, %v2377_v28, 0  ;;  %v2406_v42 = vsel %vm2386_vm11, %v2378_v36, 0 }
 0x2c1   :  { %v2298_v15 = vunpack.c.l.bf16 %v2279_v7  ;;  %v2280_v17 = vsel %vm85_vm4, %v2268_v20, %v2270_v58  ;;  %v2281_v3 = vsel %vm85_vm4, %v2270_v58, %v2272_v38  ;;  %2470 = vmatpush.bf16.msrb.mxu0 %v2400_v8  ;;  %2483 = vmatpush.bf16.msrb.mxu1 %v2403_v51  ;;  %v8650_v58 = vld [vmem:[#allocation6_spill] sm:$0xff] }
 0x2c2   :  { %v2299_v24 = vunpack.c.l.bf16 %v2280_v17  ;;  %v2300_v54 = vunpack.c.l.bf16 %v2281_v3  ;;  %2496 = vmatpush.bf16.msrb.mxu2 %v2406_v42 }
 0x2c3   :  { %v2306_v22 = vmul.f32 %v2298_v15, %v6517_v41 }
 0x2c4   :  { %v2307_v33 = vmul.f32 %v2299_v24, %v6490_v40  ;;  %v2308_v59 = vmul.f32 %v2300_v54, %v6488_v39  ;;  %5967 = vmatmul.msk.bf16.vlgmr.msrb.gmra.mxu0 %vm2382_vm12, %v7325_v48  ;;  %5968 = vmatmul.msk.bf16.vlgmr.msrb.gmra.mxu1 %vm2382_vm12, %v7325_v48 }
 0x2c5   :  { %v2314_v20 = vpack.c.bf16 %v2306_v22, %v2306_v22  ;;  %5969 = vmatmul.msk.bf16.vlgmr.msrb.gmra.mxu2 %vm2382_vm12, %v7325_v48  ;;  %3587 = vrot.lane.b32.xlu2 %v7204_v44, %s6200_s27 }
 0x2c6   :  { %v2315_v34 = vpack.c.bf16 %v2307_v33, %v2307_v33  ;;  %v2316_v26 = vpack.c.bf16 %v2308_v59, %v2308_v59  ;;  %3595 = vrot.lane.b32.xlu1 %v7237_v52, %s6200_s27  ;;  %3790 = vrot.lane.b32.xlu0 %v7221_v62, %s6201_s30  ;;  %v7407_v59 = vld [vmem:[%s8505_s4] sm:$0xf] }
 0x2c7   :  { %v2274_v19 = vpop.permute.xlu2 %2273  ;;  %v2522_v60 = vsel %vm2386_vm11, %v2314_v20, 0 }
 0x2c8   :  { %v2282_v18 = vsel %vm85_vm4, %v2272_v38, %v2274_v19  ;;  %v2283_v27 = vsel %vm85_vm4, %v2274_v19, %v2276_v55  ;;  %2562 = vmatpush.bf16.msra.mxu1 %v2522_v60  ;;  %v2247_v32 = vpop.permute.xlu1 %2246  ;;  %v7381_v4 = vpop.permute.xlu0 %2650  ;;  %v2525_v35 = vsel %vm2386_vm11, %v2315_v34, 0  ;;  %v2528_v1 = vsel %vm2386_vm11, %v2316_v26, 0  ;;  %v3981_v26 = vld [vmem:[%s8506_s5] sm:$0xff] }
 0x2c9   :  { %v2301_v0 = vunpack.c.l.bf16 %v2282_v18  ;;  %v2302_v36 = vunpack.c.l.bf16 %v2283_v27  ;;  %v2295_v2 = vsel %vm85_vm4, %v2247_v32, %v2266_v12  ;;  %2575 = vmatpush.bf16.msra.mxu2 %v2525_v35  ;;  %2588 = vmatpush.bf16.msra.mxu3 %v2528_v1  ;;  %v8651_v19 = vld [vmem:[#allocation7_spill] sm:$0xff] }
 0x2ca   :  { %v2297_v28 = vunpack.c.l.bf16 %v2295_v2 }
 0x2cb   :  { %v2309_v7 = vmul.f32 %v2301_v0, %v6507_v29  ;;  %v2310_v38 = vmul.f32 %v2302_v36, %v6509_v21 }
 0x2cc   :  { %v2305_v8 = vmul.f32 %v2297_v28, %v8650_v58  ;;  %5970 = vmatmul.msk.bf16.vlgmr.msrb.gmra.mxu3 %vm2382_vm12, %v7325_v48 }
 0x2cd   :  { %v2317_v51 = vpack.c.bf16 %v2309_v7, %v2309_v7  ;;  %v2318_v42 = vpack.c.bf16 %v2310_v38, %v2310_v38  ;;  %3583 = vrot.lane.b32.xlu2 %v7194_v43, %s6200_s27 }
 0x2ce   :  { %v2313_v15 = vpack.c.bf16 %v2305_v8, %v2305_v8  ;;  %3786 = vrot.lane.b32.xlu1 %v7204_v44, %s6201_s30  ;;  %3794 = vrot.lane.b32.xlu0 %v7237_v52, %s6201_s30 }
 0x2cf   :  { %v7397_v12 = vpop.permute.xlu2 %2654  ;;  %v2534_v17 = vsel %vm2386_vm11, %v2318_v42, 0  ;;  %v2531_v33 = vsel %vm2386_vm11, %v2317_v51, 0 }
 0x2d0   :  { %2614 = vmatpush.bf16.msrb.mxu1 %v2534_v17  ;;  %v2278_v3 = vpop.permute.xlu1 %2277  ;;  %v2647_v24 = vpop.permute.xlu0 %2646  ;;  %v2519_v48 = vsel %vm2386_vm11, %v2313_v15, 0  ;;  %v8653_v15 = vld [vmem:[#allocation10_spill] sm:$0xff] }
 0x2d1   :  { %v2284_v54 = vsel %vm85_vm4, %v2276_v55, %v2278_v3  ;;  %v2285_v22 = vsel %vm85_vm4, %v2278_v3, %v2247_v32  ;;  %2549 = vmatpush.bf16.msra.mxu0 %v2519_v48  ;;  %v8652_v55 = vld [vmem:[#allocation8_spill] sm:$0xff]  ;;  %v8654_v3 = vld [vmem:[#allocation9_spill] sm:$0xff] }
 0x2d2   :  { %v2303_v20 = vunpack.c.l.bf16 %v2284_v54  ;;  %v2304_v34 = vunpack.c.l.bf16 %v2285_v22  ;;  %v8655_v22 = vld [vmem:[#allocation15_spill] sm:$0xff] }
 0x2d4   :  { %v2311_v60 = vmul.f32 %v2303_v20, %v8651_v19  ;;  %v2312_v18 = vmul.f32 %v2304_v34, %v8652_v55  ;;  %5971 = vmatmul.msk.bf16.vlgmr.msra.gmra.mxu0 %vm2382_vm12, %v7407_v59  ;;  %5972 = vmatmul.msk.bf16.vlgmr.msra.gmra.mxu1 %vm2382_vm12, %v7407_v59 }
 0x2d5   :  { %2601 = vmatpush.bf16.msrb.mxu0 %v2531_v33  ;;  %3597 = vrot.lane.b32.xlu2 %v7229_v61, %s6200_s27 }
 0x2d6   :  { %5973 = vmatmul.msk.bf16.vlgmr.msra.gmra.mxu2 %vm2382_vm12, %v7407_v59  ;;  %v2319_v27 = vpack.c.bf16 %v2311_v60, %v2311_v60  ;;  %v2320_v32 = vpack.c.bf16 %v2312_v18, %v2312_v18  ;;  %3782 = vrot.lane.b32.xlu1 %v7194_v43, %s6201_s30 }
 0x2d7   :  { %3984 = vperm.xlu0 %6133, %v3981_v26   ;;  %v2659_v35 = vpop.permute.xlu2 %2658 }
 0x2d8   :  { %v2653_v1 = vpop.permute.xlu1 %2652  ;;  %v2661_v0 = vpop.permute.xlu0 %2660  ;;  %v2537_v36 = vsel %vm2386_vm11, %v2319_v27, 0  ;;  %v2540_v2 = vsel %vm2386_vm11, %v2320_v32, 0 }
 0x2d9   :  { %v2663_v28 = vsel %vm623_vm5, %v7381_v4, %v2653_v1  ;;  %v2664_v7 = vsel %vm623_vm5, %v2653_v1, %v7397_v12  ;;  %v2667_v38 = vsel %vm623_vm5, %v2659_v35, %v2661_v0  ;;  %2627 = vmatpush.bf16.msrb.mxu2 %v2537_v36  ;;  %2640 = vmatpush.bf16.msrb.mxu3 %v2540_v2 }
 0x2da   :  { %v2682_v8 = vunpack.c.l.bf16 %v2663_v28  ;;  %v2683_v51 = vunpack.c.l.bf16 %v2664_v7  ;;  %v2686_v42 = vunpack.c.l.bf16 %v2667_v38  ;;  %v2668_v54 = vsel %vm623_vm5, %v2661_v0, %v2647_v24  ;;  %v8656_v38 = vld [vmem:[#allocation16_spill] sm:$0xff] }
 0x2db   :  { %v2687_v60 = vunpack.c.l.bf16 %v2668_v54 }
 0x2dc   :  { %v2690_v17 = vmul.f32 %v2682_v8, %v8653_v15  ;;  %v2691_v48 = vmul.f32 %v2683_v51, %v8654_v3  ;;  %5974 = vmatmul.msk.bf16.vlgmr.msra.gmra.mxu3 %vm2382_vm12, %v7407_v59  ;;  %v2694_v33 = vmul.f32 %v2686_v42, %v8655_v22  ;;  %v8657_v51 = vld [vmem:[#allocation14_spill] sm:$0xff]  ;;  %v8660_v22 = vld [vmem:[#allocation11_spill] sm:$0xff] }
 0x2dd   :  { %3788 = vrot.lane.b32.xlu2 %v7208_v56, %s6201_s30  ;;  %v2695_v8 = vmul.f32 %v2687_v60, %v8656_v38 }
 0x2de   :  { %v2698_v20 = vpack.c.bf16 %v2690_v17, %v2690_v17  ;;  %v2699_v34 = vpack.c.bf16 %v2691_v48, %v2691_v48  ;;  %3796 = vrot.lane.b32.xlu1 %v7229_v61, %s6201_s30  ;;  %v2702_v36 = vpack.c.bf16 %v2694_v33, %v2694_v33  ;;  %v8658_v17 = vld [vmem:[#allocation13_spill] sm:$0xff] }
 0x2df   :  { %v2850_v26 = vpop.permute.xlu2 %2849 }
 0x2e0   :  { %v2649_v18 = vpop.permute.xlu1 %2648  ;;  %v2852_v27 = vpop.permute.xlu0 %2851  ;;  %v2716_v32 = vsel %vm2386_vm11, %v2698_v20, 0  ;;  %v2719_v1 = vsel %vm2386_vm11, %v2699_v34, 0  ;;  %v2703_v34 = vpack.c.bf16 %v2695_v8, %v2695_v8 }
 0x2e1   :  { %v2662_v0 = vsel %vm623_vm5, %v2649_v18, %v7381_v4  ;;  %v2678_v2 = vsel %vm623_vm5, %v2647_v24, %v2649_v18  ;;  %2766 = vmatpush.bf16.msra.mxu2 %v2716_v32  ;;  %2779 = vmatpush.bf16.msra.mxu3 %v2719_v1  ;;  %v2862_v4 = vsel %vm864_vm6, %v2850_v26, %v2852_v27  ;;  %v2728_v24 = vsel %vm2386_vm11, %v2702_v36, 0 }
 0x2e2   :  { %v2680_v28 = vunpack.c.l.bf16 %v2678_v2  ;;  %v2681_v7 = vunpack.c.l.bf16 %v2662_v0  ;;  %v2881_v60 = vunpack.c.l.bf16 %v2862_v4 }
 0x2e4   :  { %v2688_v42 = vmul.f32 %v2680_v28, %v8657_v51  ;;  %v2689_v48 = vmul.f32 %v2681_v7, %v8658_v17  ;;  %5975 = vmatmul.msk.bf16.vlgmr.msrb.gmra.mxu0 %vm2382_vm12, %v7407_v59  ;;  %5976 = vmatmul.msk.bf16.vlgmr.msrb.gmra.mxu1 %vm2382_vm12, %v7407_v59 }
 0x2e5   :  { %3784 = vrot.lane.b32.xlu2 %v7196_v63, %s6201_s30 }
 0x2e6   :  { %5977 = vmatmul.msk.bf16.vlgmr.msrb.gmra.mxu2 %vm2382_vm12, %v7407_v59  ;;  %v2696_v54 = vpack.c.bf16 %v2688_v42, %v2688_v42  ;;  %v2697_v33 = vpack.c.bf16 %v2689_v48, %v2689_v48 }
 0x2e7   :  { %2818 = vmatpush.bf16.msrb.mxu2 %v2728_v24  ;;  %v7459_v20 = vpop.permute.xlu2 %2845  ;;  %v8659_v24 = vld [vmem:[#allocation12_spill] sm:$0xff] }
 0x2e8   :  { %v2657_v18 = vpop.permute.xlu1 %2656  ;;  %v2848_v32 = vpop.permute.xlu0 %2847  ;;  %v2710_v1 = vsel %vm2386_vm11, %v2696_v54, 0  ;;  %v2713_v0 = vsel %vm2386_vm11, %v2697_v33, 0 }
 0x2e9   :  { %v2665_v2 = vsel %vm623_vm5, %v7397_v12, %v2657_v18  ;;  %v2666_v28 = vsel %vm623_vm5, %v2657_v18, %v2659_v35  ;;  %v2861_v36 = vsel %vm864_vm6, %v2848_v32, %v2850_v26  ;;  %v2877_v7 = vsel %vm864_vm6, %v7459_v20, %v2848_v32  ;;  %2740 = vmatpush.bf16.msra.mxu0 %v2710_v1  ;;  %v8661_v35 = vld [vmem:[#allocation18_spill] sm:$0xff] }
 0x2ea   :  { %v2684_v42 = vunpack.c.l.bf16 %v2665_v2  ;;  %v2685_v8 = vunpack.c.l.bf16 %v2666_v28  ;;  %v2879_v48 = vunpack.c.l.bf16 %v2877_v7  ;;  %v2880_v4 = vunpack.c.l.bf16 %v2861_v36  ;;  %2753 = vmatpush.bf16.msra.mxu1 %v2713_v0 }
 0x2eb   :  { %v2731_v12 = vsel %vm2386_vm11, %v2703_v34, 0  ;;  %v2889_v26 = vmul.f32 %v2881_v60, %v8661_v35  ;;  %v5979_v60 = vld [vmem:[%s8505_s4 + $0x8] sm:$0xf] }
 0x2ec   :  { %v2692_v54 = vmul.f32 %v2684_v42, %v8659_v24  ;;  %v2693_v33 = vmul.f32 %v2685_v8, %v8660_v22  ;;  %v2887_v38 = vmul.f32 %v2879_v48, %v6687_v30  ;;  %5978 = vmatmul.msk.bf16.vlgmr.msrb.gmra.mxu3 %vm2382_vm12, %v7407_v59  ;;  %v2888_v18 = vmul.f32 %v2880_v4, %v6685_v47  ;;  %v8662_v48 = vld [vmem:[#allocation17_spill] sm:$0xff] }
 0x2ed   :  { %3792 = vrot.lane.b32.xlu2 %v7223_v37, %s6201_s30  ;;  %2831 = vmatpush.bf16.msrb.mxu3 %v2731_v12  ;;  %v2897_v7 = vpack.c.bf16 %v2889_v26, %v2889_v26 }
 0x2ee   :  { %v2700_v32 = vpack.c.bf16 %v2692_v54, %v2692_v54  ;;  %v2701_v1 = vpack.c.bf16 %v2693_v33, %v2693_v33  ;;  %v2895_v0 = vpack.c.bf16 %v2887_v38, %v2887_v38  ;;  %v2896_v59 = vpack.c.bf16 %v2888_v18, %v2888_v18 }
 0x2ef   :  { %v2915_v33 = vsel %vm2386_vm11, %v2897_v7, 0  ;;  %v2860_v12 = vpop.permute.xlu2 %2859 }
 0x2f0   :  { %v2854_v2 = vpop.permute.xlu1 %2853  ;;  %v2722_v28 = vsel %vm2386_vm11, %v2700_v32, 0  ;;  %v2725_v36 = vsel %vm2386_vm11, %v2701_v1, 0  ;;  %v2856_v8 = vpop.permute.xlu0 %2855  ;;  %v2909_v38 = vsel %vm2386_vm11, %v2895_v0, 0  ;;  %v2867_v7 = vsel %vm864_vm6, %v2860_v12, %v7459_v20 }
 0x2f1   :  { %v2863_v34 = vsel %vm864_vm6, %v2852_v27, %v2854_v2  ;;  %2792 = vmatpush.bf16.msrb.mxu0 %v2722_v28  ;;  %2805 = vmatpush.bf16.msrb.mxu1 %v2725_v36  ;;  %v2864_v54 = vsel %vm864_vm6, %v2854_v2, %v2856_v8  ;;  %v2912_v27 = vsel %vm2386_vm11, %v2896_v59, 0 }
 0x2f2   :  { %v2882_v42 = vunpack.c.l.bf16 %v2863_v34  ;;  %v2883_v18 = vunpack.c.l.bf16 %v2864_v54 }
 0x2f4   :  { %v2890_v4 = vmul.f32 %v2882_v42, %v8662_v48  ;;  %5980 = vmatmul.msk.bf16.vlgmr.msra.gmra.mxu0 %vm2382_vm12, %v5979_v60  ;;  %5981 = vmatmul.msk.bf16.vlgmr.msra.gmra.mxu1 %vm2382_vm12, %v5979_v60  ;;  %v2891_v2 = vmul.f32 %v2883_v18, %v6705_v14 }
 0x2f5   :  { %2939 = vmatpush.bf16.msra.mxu0 %v2909_v38  ;;  %2952 = vmatpush.bf16.msra.mxu1 %v2912_v27 }
 0x2f6   :  { %5982 = vmatmul.msk.bf16.vlgmr.msra.gmra.mxu2 %vm2382_vm12, %v5979_v60  ;;  %v2898_v26 = vpack.c.bf16 %v2890_v4, %v2890_v4  ;;  %v2886_v4 = vunpack.c.l.bf16 %v2867_v7  ;;  %v3065_v7 = vsel %vm2386_vm11, %v7223_v37, 0  ;;  %v3071_v37 = vsel %vm2386_vm11, %v7229_v61, 0  ;;  %v7552_v61 = vld [vmem:[%s8505_s4 + $0x10] sm:$0xf] }
 0x2f7   :  { %2965 = vmatpush.bf16.msra.mxu2 %v2915_v33 }
 0x2f8   :  { %v2858_v32 = vpop.permute.xlu1 %2857  ;;  %v2918_v59 = vsel %vm2386_vm11, %v2898_v26, 0  ;;  %v2894_v27 = vmul.f32 %v2886_v4, %v6714_v23 }
 0x2f9   :  { %v2865_v1 = vsel %vm864_vm6, %v2856_v8, %v2858_v32  ;;  %v2866_v28 = vsel %vm864_vm6, %v2858_v32, %v2860_v12  ;;  %v2899_v8 = vpack.c.bf16 %v2891_v2, %v2891_v2  ;;  %v5988_v32 = vld [vmem:[%s8505_s4 + $0xc] sm:$0xf]  ;;  %v3059_v2 = vsel %vm2386_vm11, %v7208_v56, 0 }
 0x2fa   :  { %v2884_v0 = vunpack.c.l.bf16 %v2865_v1  ;;  %v2885_v36 = vunpack.c.l.bf16 %v2866_v28  ;;  %v2902_v26 = vpack.c.bf16 %v2894_v27, %v2894_v27  ;;  %v3050_v1 = vsel %vm2386_vm11, %v7194_v43, 0 }
 0x2fb   :  { %v2921_v33 = vsel %vm2386_vm11, %v2899_v8, 0  ;;  %v3056_v28 = vsel %vm2386_vm11, %v7204_v44, 0  ;;  %v3068_v56 = vsel %vm2386_vm11, %v7237_v52, 0  ;;  %v8663_v52 = vld [vmem:[#allocation24_spill] sm:$0xff] }
 0x2fc   :  { %5983 = vmatmul.msk.bf16.vlgmr.msra.gmra.mxu3 %vm2382_vm12, %v5979_v60  ;;  %v2892_v34 = vmul.f32 %v2884_v0, %v6679_v5  ;;  %v2893_v42 = vmul.f32 %v2885_v36, %v6712_v45  ;;  %v2930_v18 = vsel %vm2386_vm11, %v2902_v26, 0  ;;  %v3192_v36 = vpop.permute.xlu2 %3191 }
 0x2fd   :  { %2978 = vmatpush.bf16.msra.mxu3 %v2918_v59 }
 0x2fe   :  { %v2900_v38 = vpack.c.bf16 %v2892_v34, %v2892_v34  ;;  %v2901_v54 = vpack.c.bf16 %v2893_v42, %v2893_v42  ;;  %v3194_v34 = vpop.permute.xlu0 %3193 }
 0x2ff   :  { %v3204_v27 = vsel %vm1244_vm7, %v3192_v36, %v3194_v34 }
 0x300   :  { %v2924_v20 = vsel %vm2386_vm11, %v2900_v38, 0  ;;  %v2927_v12 = vsel %vm2386_vm11, %v2901_v54, 0  ;;  %v3190_v0 = vpop.permute.xlu1 %3189 }
 0x301   :  { %v3203_v4 = vsel %vm1244_vm7, %v3190_v0, %v3192_v36  ;;  %v8665_v36 = vld [vmem:[#allocation25_spill] sm:$0xff] }
 0x302   :  { %v3221_v38 = vunpack.c.l.bf16 %v3203_v4 }
 0x304   :  { %5984 = vmatmul.msk.bf16.vlgmr.msrb.gmra.mxu0 %vm2382_vm12, %v5979_v60  ;;  %5985 = vmatmul.msk.bf16.vlgmr.msrb.gmra.mxu1 %vm2382_vm12, %v5979_v60  ;;  %v3188_v59 = vpop.permute.xlu2 %3187 }
 0x305   :  { %2991 = vmatpush.bf16.msrb.mxu0 %v2921_v33  ;;  %3004 = vmatpush.bf16.msrb.mxu1 %v2924_v20  ;;  %v3202_v42 = vsel %vm1244_vm7, %v3188_v59, %v3190_v0  ;;  %v8664_v20 = vld [vmem:[#allocation26_spill] sm:$0xff] }
 0x306   :  { %5986 = vmatmul.msk.bf16.vlgmr.msrb.gmra.mxu2 %vm2382_vm12, %v5979_v60 }
 0x307   :  { %3017 = vmatpush.bf16.msrb.mxu2 %v2927_v12  ;;  %v3229_v12 = vmul.f32 %v3221_v38, %v8664_v20 }
 0x308   :  { %v3186_v43 = vpop.permute.xlu1 %3185 }
 0x309   :  { %v3201_v44 = vsel %vm1244_vm7, %v3186_v43, %v3188_v59  ;;  %v3237_v0 = vpack.c.bf16 %v3229_v12, %v3229_v12 }
 0x30a   :  { %v3219_v8 = vunpack.c.l.bf16 %v3201_v44 }
 0x30c   :  { %5987 = vmatmul.msk.bf16.vlgmr.msrb.gmra.mxu3 %vm2382_vm12, %v5979_v60  ;;  %v3053_v60 = vsel %vm2386_vm11, %v7196_v63, 0  ;;  %v3062_v63 = vsel %vm2386_vm11, %v7221_v62, 0  ;;  %v3220_v62 = vunpack.c.l.bf16 %v3202_v42  ;;  %v3227_v54 = vmul.f32 %v3219_v8, %v6796_v50 }
 0x30d   :  { %3030 = vmatpush.bf16.msrb.mxu3 %v2930_v18  ;;  %v3222_v18 = vunpack.c.l.bf16 %v3204_v27  ;;  %v3255_v42 = vsel %vm2386_vm11, %v3237_v0, 0 }
 0x30e   :  { %v3228_v33 = vmul.f32 %v3220_v62, %v8663_v52  ;;  %v8670_v52 = vld [vmem:[#allocation35_spill] sm:$0xff] }
 0x310   :  { %v3200_v26 = vpop.permute.xlu1 %3199 }
 0x314   :  { %5989 = vmatmul.msk.bf16.vlgmr.msra.gmra.mxu0 %vm2382_vm12, %v5988_v32  ;;  %5990 = vmatmul.msk.bf16.vlgmr.msra.gmra.mxu1 %vm2382_vm12, %v5988_v32 }
 0x315   :  { %3080 = vmatpush.bf16.msra.mxu0 %v3050_v1  ;;  %3093 = vmatpush.bf16.msra.mxu1 %v3053_v60  ;;  %v3198_v1 = vpop.permute.xlu0 %3197  ;;  %v3235_v60 = vpack.c.bf16 %v3227_v54, %v3227_v54 }
 0x316   :  { %5991 = vmatmul.msk.bf16.vlgmr.msra.gmra.mxu2 %vm2382_vm12, %v5988_v32  ;;  %v3207_v8 = vsel %vm1244_vm7, %v3198_v1, %v3200_v26 }
 0x317   :  { %3106 = vmatpush.bf16.msra.mxu2 %v3056_v28  ;;  %v3236_v28 = vpack.c.bf16 %v3228_v33, %v3228_v33  ;;  %v3249_v44 = vsel %vm2386_vm11, %v3235_v60, 0  ;;  %v3225_v27 = vunpack.c.l.bf16 %v3207_v8  ;;  %v8666_v60 = vld [vmem:[#allocation29_spill] sm:$0xff] }
 0x318   :  { %v3391_v54 = vpop.permute.xlu1 %3390 }
 0x31c   :  { %5992 = vmatmul.msk.bf16.vlgmr.msra.gmra.mxu3 %vm2382_vm12, %v5988_v32 }
 0x31d   :  { %3119 = vmatpush.bf16.msra.mxu3 %v3059_v2  ;;  %v3389_v12 = vpop.permute.xlu0 %3388 }
 0x324   :  { %5993 = vmatmul.msk.bf16.vlgmr.msrb.gmra.mxu0 %vm2382_vm12, %v5988_v32  ;;  %5994 = vmatmul.msk.bf16.vlgmr.msrb.gmra.mxu1 %vm2382_vm12, %v5988_v32 }
 0x325   :  { %3132 = vmatpush.bf16.msrb.mxu0 %v3062_v63  ;;  %3145 = vmatpush.bf16.msrb.mxu1 %v3065_v7  ;;  %v3230_v63 = vmul.f32 %v3222_v18, %v8665_v36 }
 0x326   :  { %5995 = vmatmul.msk.bf16.vlgmr.msrb.gmra.mxu2 %vm2382_vm12, %v5988_v32 }
 0x327   :  { %3158 = vmatpush.bf16.msrb.mxu2 %v3068_v56  ;;  %v3252_v56 = vsel %vm2386_vm11, %v3236_v28, 0  ;;  %v3238_v62 = vpack.c.bf16 %v3230_v63, %v3230_v63  ;;  %v3217_v63 = vsel %vm1244_vm7, %v3200_v26, %v3186_v43 }
 0x329   :  { %v3258_v0 = vsel %vm2386_vm11, %v3238_v62, 0  ;;  %v8669_v62 = vld [vmem:[#allocation31_spill] sm:$0xff] }
 0x32c   :  { %5996 = vmatmul.msk.bf16.vlgmr.msrb.gmra.mxu3 %vm2382_vm12, %v5988_v32  ;;  %v3196_v32 = vpop.permute.xlu2 %3195 }
 0x32d   :  { %3171 = vmatpush.bf16.msrb.mxu3 %v3071_v37  ;;  %v3205_v7 = vsel %vm1244_vm7, %v3194_v34, %v3196_v32  ;;  %v3206_v4 = vsel %vm1244_vm7, %v3196_v32, %v3198_v1  ;;  %v8667_v1 = vld [vmem:[#allocation28_spill] sm:$0xff] }
 0x32e   :  { %v3223_v38 = vunpack.c.l.bf16 %v3205_v7  ;;  %v3224_v34 = vunpack.c.l.bf16 %v3206_v4  ;;  %v3226_v4 = vunpack.c.l.bf16 %v3217_v63 }
 0x330   :  { %v3231_v28 = vmul.f32 %v3223_v38, %v8666_v60  ;;  %v3232_v32 = vmul.f32 %v3224_v34, %v8667_v1  ;;  %v3387_v60 = vpop.permute.xlu1 %3386  ;;  %v3234_v36 = vmul.f32 %v3226_v4, %v8669_v62  ;;  %v7583_v34 = vpop.permute.xlu0 %3384 }
 0x331   :  { %v7545_v2 = vpop.f32.mrf.mxu0  ;;  %v7547_v59 = vpop.f32.mrf.mxu1  ;;  %v3400_v26 = vsel %vm1485_vm8, %v7583_v34, %v3387_v60  ;;  %v3401_v63 = vsel %vm1485_vm8, %v3387_v60, %v3389_v12  ;;  %v8671_v60 = vld [vmem:[#allocation33_spill] sm:$0xff] }
 0x332   :  { %v3418_v4 = vunpack.c.l.bf16 %v3400_v26  ;;  %v3419_v1 = vunpack.c.l.bf16 %v3401_v63 }
 0x334   :  { %5998 = vmatmul.msk.bf16.vlgmr.msra.gmra.mxu0 %vm2382_vm12, %v7552_v61  ;;  %5999 = vmatmul.msk.bf16.vlgmr.msra.gmra.mxu1 %vm2382_vm12, %v7552_v61 }
 0x335   :  { %3279 = vmatpush.bf16.msra.mxu0 %v3249_v44  ;;  %3292 = vmatpush.bf16.msra.mxu1 %v3252_v56  ;;  %v8668_v44 = vld [vmem:[#allocation30_spill] sm:$0xff] }
 0x336   :  { %6000 = vmatmul.msk.bf16.vlgmr.msra.gmra.mxu2 %vm2382_vm12, %v7552_v61  ;;  %v3233_v7 = vmul.f32 %v3225_v27, %v8668_v44 }
 0x337   :  { %3305 = vmatpush.bf16.msra.mxu2 %v3255_v42  ;;  %v3239_v42 = vpack.c.bf16 %v3231_v28, %v3231_v28 }
 0x338   :  { %v7567_v37 = vpop.f32.mrf.mxu2  ;;  %v3399_v26 = vpop.permute.xlu0 %3398 }
 0x339   :  { %v2422_v33 = vpop.f32.mrf.mxu0  ;;  %v2435_v18 = vpop.f32.mrf.mxu1  ;;  %v3261_v43 = vsel %vm2386_vm11, %v3239_v42, 0  ;;  %v3242_v42 = vpack.c.bf16 %v3234_v36, %v3234_v36 }
 0x33a   :  { %v3240_v33 = vpack.c.bf16 %v3232_v32, %v3232_v32  ;;  %v3241_v18 = vpack.c.bf16 %v3233_v7, %v3233_v7  ;;  %v3402_v32 = vsel %vm1485_vm8, %v3389_v12, %v3391_v54 }
 0x33b   :  { %v3420_v62 = vunpack.c.l.bf16 %v3402_v32 }
 0x33c   :  { %6001 = vmatmul.msk.bf16.vlgmr.msra.gmra.mxu3 %vm2382_vm12, %v7552_v61  ;;  %v3264_v27 = vsel %vm2386_vm11, %v3240_v33, 0  ;;  %v3267_v28 = vsel %vm2386_vm11, %v3241_v18, 0  ;;  %v3426_v33 = vmul.f32 %v3418_v4, %v8670_v52  ;;  %v3270_v18 = vsel %vm2386_vm11, %v3242_v42, 0 }
 0x33d   :  { %3318 = vmatpush.bf16.msra.mxu3 %v3258_v0  ;;  %v3393_v0 = vpop.permute.xlu2 %3392 }
 0x33e   :  { %v3403_v12 = vsel %vm1485_vm8, %v3391_v54, %v3393_v0  ;;  %v3434_v63 = vpack.c.bf16 %v3426_v33, %v3426_v33  ;;  %v3395_v54 = vpop.permute.xlu1 %3394 }
 0x33f   :  { %v7576_v56 = vpop.f32.mrf.mxu3 }
 0x340   :  { %v2448_v8 = vpop.f32.mrf.mxu2  ;;  %v3448_v33 = vsel %vm2386_vm11, %v3434_v63, 0 }
 0x341   :  { %v7578_v38 = vpop.f32.mrf.mxu0  ;;  %v7580_v50 = vpop.f32.mrf.mxu1 }
 0x344   :  { %6002 = vmatmul.msk.bf16.vlgmr.msrb.gmra.mxu0 %vm2382_vm12, %v7552_v61  ;;  %6003 = vmatmul.msk.bf16.vlgmr.msrb.gmra.mxu1 %vm2382_vm12, %v7552_v61 }
 0x345   :  { %3331 = vmatpush.bf16.msrb.mxu0 %v3261_v43  ;;  %3344 = vmatpush.bf16.msrb.mxu1 %v3264_v27  ;;  %v3428_v27 = vmul.f32 %v3420_v62, %v8671_v60  ;;  %v3397_v32 = vpop.permute.xlu2 %3396 }
 0x346   :  { %6004 = vmatmul.msk.bf16.vlgmr.msrb.gmra.mxu2 %vm2382_vm12, %v7552_v61 }
 0x347   :  { %3357 = vmatpush.bf16.msrb.mxu2 %v3267_v28  ;;  %v2461_v7 = vpop.f32.mrf.mxu3  ;;  %v8672_v28 = vld [vmem:[#allocation32_spill] sm:$0xff]  ;;  %v3436_v4 = vpack.c.bf16 %v3428_v27, %v3428_v27  ;;  %v3404_v27 = vsel %vm1485_vm8, %v3393_v0, %v3395_v54 }
 0x348   :  { %v7598_v8 = vpop.f32.mrf.mxu2  ;;  %v3427_v36 = vmul.f32 %v3419_v1, %v8672_v28  ;;  %v3422_v63 = vunpack.c.l.bf16 %v3404_v27 }
 0x349   :  { %v2474_v44 = vpop.f32.mrf.mxu0  ;;  %v2487_v43 = vpop.f32.mrf.mxu1 }
 0x34a   :  { %v3421_v44 = vunpack.c.l.bf16 %v3403_v12  ;;  %v3435_v52 = vpack.c.bf16 %v3427_v36, %v3427_v36  ;;  %v3405_v36 = vsel %vm1485_vm8, %v3395_v54, %v3397_v32  ;;  %v3416_v54 = vsel %vm1485_vm8, %v3399_v26, %v7583_v34 }
 0x34b   :  { %v3423_v28 = vunpack.c.l.bf16 %v3405_v36 }
 0x34c   :  { %6005 = vmatmul.msk.bf16.vlgmr.msrb.gmra.mxu3 %vm2382_vm12, %v7552_v61  ;;  %v7612_v61 = vld [vmem:[%s8505_s4 + $0x14] sm:$0xf] }
 0x34d   :  { %3370 = vmatpush.bf16.msrb.mxu3 %v3270_v18  ;;  %v8673_v18 = vld [vmem:[#allocation34_spill] sm:$0xff]  ;;  %v3431_v27 = vmul.f32 %v3423_v28, %v6910_v46 }
 0x34e   :  { %v3429_v12 = vmul.f32 %v3421_v44, %v8673_v18 }
 0x34f   :  { %v7607_v7 = vpop.f32.mrf.mxu3  ;;  %v3439_v36 = vpack.c.bf16 %v3431_v27, %v3431_v27 }
 0x350   :  { %v2500_v43 = vpop.f32.mrf.mxu2 }
 0x351   :  { %v2551_v20 = vpop.f32.mrf.mxu0  ;;  %v2564_v1 = vpop.f32.mrf.mxu1  ;;  %v3437_v43 = vpack.c.bf16 %v3429_v12, %v3429_v12 }
 0x352   :  { %v7615_v62 = vadd.f32 %v2551_v20, %v7545_v2  ;;  %v7618_v42 = vadd.f32 %v2564_v1, %v7547_v59  ;;  %v3451_v20 = vsel %vm2386_vm11, %v3435_v52, 0  ;;  %v3454_v2 = vsel %vm2386_vm11, %v3436_v4, 0  ;;  %v3590_v1 = vpop.permute.xlu0 %3589  ;;  %v3588_v52 = vpop.permute.xlu2 %3587 }
 0x353   :  { %v3406_v59 = vsel %vm1485_vm8, %v3397_v32, %v3399_v26  ;;  %v3430_v4 = vmul.f32 %v3422_v63, %v6931_v9  ;;  %v3457_v32 = vsel %vm2386_vm11, %v3437_v43, 0 }
 0x354   :  { %6007 = vmatmul.msk.bf16.vlgmr.msra.gmra.mxu0 %vm2382_vm12, %v7612_v61  ;;  %6008 = vmatmul.msk.bf16.vlgmr.msra.gmra.mxu1 %vm2382_vm12, %v7612_v61  ;;  %v3424_v0 = vunpack.c.l.bf16 %v3406_v59 }
 0x355   :  { %3478 = vmatpush.bf16.msra.mxu0 %v3448_v33  ;;  %3491 = vmatpush.bf16.msra.mxu1 %v3451_v20  ;;  %v3438_v20 = vpack.c.bf16 %v3430_v4, %v3430_v4 }
 0x356   :  { %6009 = vmatmul.msk.bf16.vlgmr.msra.gmra.mxu2 %vm2382_vm12, %v7612_v61  ;;  %v3432_v12 = vmul.f32 %v3424_v0, %v6937_v16 }
 0x357   :  { %3504 = vmatpush.bf16.msra.mxu2 %v3454_v2  ;;  %v2513_v44 = vpop.f32.mrf.mxu3 }
 0x358   :  { %v3440_v59 = vpack.c.bf16 %v3432_v12, %v3432_v12 }
 0x359   :  { %v2577_v18 = vpop.f32.mrf.mxu2  ;;  %v2553_v33 = vpop.f32.mrf.mxu0 }
 0x35a   :  { %v7634_v60 = vadd.f32 %v2577_v18, %v7567_v37  ;;  %v2566_v14 = vpop.f32.mrf.mxu1  ;;  %v3425_v18 = vunpack.c.l.bf16 %v3416_v54  ;;  %v3586_v63 = vpop.permute.xlu0 %3585  ;;  %v3466_v4 = vsel %vm2386_vm11, %v3440_v59, 0  ;;  %v8675_v59 = vld [vmem:[#allocation41_spill] sm:$0xff] }
 0x35b   :  { %v7654_v0 = vpop.permute.xlu2 %3583  ;;  %v3592_v33 = vpop.permute.xlu1 %3591  ;;  %v3600_v54 = vsel %vm1726_vm9, %v3586_v63, %v3588_v52 }
 0x35c   :  { %6010 = vmatmul.msk.bf16.vlgmr.msra.gmra.mxu3 %vm2382_vm12, %v7612_v61  ;;  %v3433_v28 = vmul.f32 %v3425_v18, %v6935_v31 }
 0x35d   :  { %3517 = vmatpush.bf16.msra.mxu3 %v3457_v32  ;;  %v3601_v32 = vsel %vm1726_vm9, %v3588_v52, %v3590_v1 }
 0x35e   :  { %v3441_v27 = vpack.c.bf16 %v3433_v28, %v3433_v28 }
 0x35f   :  { %v2590_v37 = vpop.f32.mrf.mxu3 }
 0x360   :  { %v7645_v14 = vadd.f32 %v2590_v37, %v7576_v56  ;;  %v3460_v56 = vsel %vm2386_vm11, %v3438_v20, 0  ;;  %v3619_v20 = vunpack.c.l.bf16 %v3601_v32  ;;  %v3469_v52 = vsel %vm2386_vm11, %v3441_v27, 0  ;;  %v7685_v27 = vld [vmem:[%s8505_s4 + $0x18] sm:$0xf] }
 0x361   :  { %v2579_v2 = vpop.f32.mrf.mxu2  ;;  %v2603_v44 = vpop.f32.mrf.mxu0 }
 0x362   :  { %v7648_v43 = vadd.f32 %v2603_v44, %v7578_v38  ;;  %v2616_v34 = vpop.f32.mrf.mxu1  ;;  %v3599_v38 = vsel %vm1726_vm9, %v7654_v0, %v3586_v63  ;;  %v3618_v2 = vunpack.c.l.bf16 %v3600_v54  ;;  %v3627_v63 = vmul.f32 %v3619_v20, %v8675_v59  ;;  %v3594_v20 = vpop.permute.xlu0 %3593 }
 0x363   :  { %v7651_v26 = vadd.f32 %v2616_v34, %v7580_v50  ;;  %v3463_v50 = vsel %vm2386_vm11, %v3439_v36, 0  ;;  %v3617_v37 = vunpack.c.l.bf16 %v3599_v38  ;;  %v8674_v36 = vld [vmem:[#allocation43_spill] sm:$0xff]  ;;  %v3602_v38 = vsel %vm1726_vm9, %v3590_v1, %v3592_v33  ;;  %v3598_v54 = vpop.permute.xlu2 %3597 }
 0x364   :  { %6011 = vmatmul.msk.bf16.vlgmr.msrb.gmra.mxu0 %vm2382_vm12, %v7612_v61  ;;  %6012 = vmatmul.msk.bf16.vlgmr.msrb.gmra.mxu1 %vm2382_vm12, %v7612_v61 }
 0x365   :  { %3530 = vmatpush.bf16.msrb.mxu0 %v3460_v56  ;;  %3543 = vmatpush.bf16.msrb.mxu1 %v3463_v50  ;;  %v3625_v9 = vmul.f32 %v3617_v37, %v8674_v36  ;;  %v8676_v50 = vld [vmem:[#allocation40_spill] sm:$0xff] }
 0x366   :  { %6013 = vmatmul.msk.bf16.vlgmr.msrb.gmra.mxu2 %vm2382_vm12, %v7612_v61  ;;  %v3626_v28 = vmul.f32 %v3618_v2, %v8676_v50 }
 0x367   :  { %3556 = vmatpush.bf16.msrb.mxu2 %v3466_v4  ;;  %v2592_v12 = vpop.f32.mrf.mxu3  ;;  %v3596_v4 = vpop.permute.xlu1 %3595 }
 0x368   :  { %v3620_v12 = vunpack.c.l.bf16 %v3602_v38 }
 0x369   :  { %v2629_v18 = vpop.f32.mrf.mxu2  ;;  %v2605_v34 = vpop.f32.mrf.mxu0 }
 0x36a   :  { %v7670_v44 = vadd.f32 %v2629_v18, %v7598_v8  ;;  %v2618_v56 = vpop.f32.mrf.mxu1  ;;  %v3633_v8 = vpack.c.bf16 %v3625_v9, %v3625_v9  ;;  %v3635_v34 = vpack.c.bf16 %v3627_v63, %v3627_v63  ;;  %v3603_v63 = vsel %vm1726_vm9, %v3592_v33, %v3594_v20 }
 0x36c   :  { %6014 = vmatmul.msk.bf16.vlgmr.msrb.gmra.mxu3 %vm2382_vm12, %v7612_v61  ;;  %v3634_v61 = vpack.c.bf16 %v3626_v28, %v3626_v28  ;;  %v3604_v28 = vsel %vm1726_vm9, %v3594_v20, %v3596_v4  ;;  %v3615_v20 = vsel %vm1726_vm9, %v3598_v54, %v7654_v0 }
 0x36d   :  { %3569 = vmatpush.bf16.msrb.mxu3 %v3469_v52  ;;  %v8677_v52 = vld [vmem:[#allocation42_spill] sm:$0xff]  ;;  %v3622_v33 = vunpack.c.l.bf16 %v3604_v28  ;;  %v3624_v28 = vunpack.c.l.bf16 %v3615_v20 }
 0x36e   :  { %v3628_v38 = vmul.f32 %v3620_v12, %v8677_v52 }
 0x36f   :  { %v2642_v32 = vpop.f32.mrf.mxu3 }
 0x370   :  { %v7680_v37 = vadd.f32 %v2642_v32, %v7607_v7  ;;  %v3647_v7 = vsel %vm2386_vm11, %v3633_v8, 0  ;;  %v3605_v32 = vsel %vm1726_vm9, %v3596_v4, %v3598_v54  ;;  %v3787_v8 = vpop.permute.xlu1 %3786 }
 0x371   :  { %v2631_v18 = vpop.f32.mrf.mxu2  ;;  %v2742_v56 = vpop.f32.mrf.mxu0  ;;  %v3623_v36 = vunpack.c.l.bf16 %v3605_v32 }
 0x372   :  { %v7688_v1 = vadd.f32 %v2742_v56, %v7615_v62  ;;  %v2755_v2 = vpop.f32.mrf.mxu1  ;;  %v3650_v62 = vsel %vm2386_vm11, %v3634_v61, 0  ;;  %v3636_v18 = vpack.c.bf16 %v3628_v38, %v3628_v38  ;;  %v3621_v56 = vunpack.c.l.bf16 %v3603_v63  ;;  %v3789_v61 = vpop.permute.xlu2 %3788  ;;  %v8679_v38 = vld [vmem:[#allocation44_spill] sm:$0xff] }
 0x373   :  { %v7691_v9 = vadd.f32 %v2755_v2, %v7618_v42  ;;  %v3653_v42 = vsel %vm2386_vm11, %v3635_v34, 0  ;;  %v8678_v34 = vld [vmem:[#allocation45_spill] sm:$0xff]  ;;  %v3630_v63 = vmul.f32 %v3622_v33, %v8679_v38 }
 0x374   :  { %6016 = vmatmul.msk.bf16.vlgmr.msra.gmra.mxu0 %vm2382_vm12, %v7685_v27  ;;  %6017 = vmatmul.msk.bf16.vlgmr.msra.gmra.mxu1 %vm2382_vm12, %v7685_v27  ;;  %v3629_v50 = vmul.f32 %v3621_v56, %v8678_v34  ;;  %v3656_v4 = vsel %vm2386_vm11, %v3636_v18, 0 }
 0x375   :  { %3677 = vmatpush.bf16.msra.mxu0 %v3647_v7  ;;  %3690 = vmatpush.bf16.msra.mxu1 %v3650_v62  ;;  %v8680_v62 = vld [vmem:[#allocation46_spill] sm:$0xff]  ;;  %v3638_v56 = vpack.c.bf16 %v3630_v63, %v3630_v63  ;;  %v3800_v63 = vsel %vm1967_vm10, %v3787_v8, %v3789_v61 }
 0x376   :  { %6018 = vmatmul.msk.bf16.vlgmr.msra.gmra.mxu2 %vm2382_vm12, %v7685_v27  ;;  %v3637_v32 = vpack.c.bf16 %v3629_v50, %v3629_v50 }
 0x377   :  { %3703 = vmatpush.bf16.msra.mxu2 %v3653_v42  ;;  %v2644_v12 = vpop.f32.mrf.mxu3  ;;  %v3631_v42 = vmul.f32 %v3623_v36, %v8680_v62  ;;  %v8681_v36 = vld [vmem:[#allocation47_spill] sm:$0xff] }
 0x378   :  { %v7720_v34 = vpop.permute.xlu1 %3782  ;;  %v3632_v33 = vmul.f32 %v3624_v28, %v8681_v36  ;;  %v3791_v36 = vpop.permute.xlu0 %3790  ;;  %v8682_v62 = vld [vmem:[#allocation51_spill] sm:$0xff] }
 0x379   :  { %v2768_v2 = vpop.f32.mrf.mxu2  ;;  %v2744_v7 = vpop.f32.mrf.mxu0 }
 0x37a   :  { %v7707_v52 = vadd.f32 %v2768_v2, %v7634_v60  ;;  %v2757_v59 = vpop.f32.mrf.mxu1  ;;  %v3639_v2 = vpack.c.bf16 %v3631_v42, %v3631_v42 }
 0x37c   :  { %6019 = vmatmul.msk.bf16.vlgmr.msra.gmra.mxu3 %vm2382_vm12, %v7685_v27 }
 0x37d   :  { %3716 = vmatpush.bf16.msra.mxu3 %v3656_v4  ;;  %v3785_v4 = vpop.permute.xlu2 %3784 }
 0x37e   :  { %v3798_v50 = vsel %vm1967_vm10, %v7720_v34, %v3785_v4  ;;  %v3799_v20 = vsel %vm1967_vm10, %v3785_v4, %v3787_v8  ;;  %v3801_v4 = vsel %vm1967_vm10, %v3789_v61, %v3791_v36 }
 0x37f   :  { %v2781_v60 = vpop.f32.mrf.mxu3  ;;  %v3816_v28 = vunpack.c.l.bf16 %v3798_v50 }
 0x380   :  { %v7718_v59 = vadd.f32 %v2781_v60, %v7645_v14  ;;  %v3659_v14 = vsel %vm2386_vm11, %v3637_v32, 0  ;;  %v3640_v60 = vpack.c.bf16 %v3632_v33, %v3632_v33  ;;  %v8683_v33 = vld [vmem:[#allocation48_spill] sm:$0xff] }
 0x381   :  { %v2770_v12 = vpop.f32.mrf.mxu2  ;;  %v2794_v7 = vpop.f32.mrf.mxu0 }
 0x382   :  { %v7723_v18 = vadd.f32 %v2794_v7, %v7648_v43  ;;  %v2807_v0 = vpop.f32.mrf.mxu1  ;;  %v3662_v43 = vsel %vm2386_vm11, %v3638_v56, 0  ;;  %v3817_v12 = vunpack.c.l.bf16 %v3799_v20  ;;  %v3818_v7 = vunpack.c.l.bf16 %v3800_v63 }
 0x383   :  { %v7726_v54 = vadd.f32 %v2807_v0, %v7651_v26  ;;  %v3665_v26 = vsel %vm2386_vm11, %v3639_v2, 0  ;;  %v3824_v2 = vmul.f32 %v3816_v28, %v8682_v62  ;;  %v3668_v8 = vsel %vm2386_vm11, %v3640_v60, 0 }
 0x384   :  { %6020 = vmatmul.msk.bf16.vlgmr.msrb.gmra.mxu0 %vm2382_vm12, %v7685_v27  ;;  %6021 = vmatmul.msk.bf16.vlgmr.msrb.gmra.mxu1 %vm2382_vm12, %v7685_v27  ;;  %v3825_v50 = vmul.f32 %v3817_v12, %v8683_v33 }
 0x385   :  { %3729 = vmatpush.bf16.msrb.mxu0 %v3659_v14  ;;  %3742 = vmatpush.bf16.msrb.mxu1 %v3662_v43  ;;  %v8684_v43 = vld [vmem:[#allocation49_spill] sm:$0xff]  ;;  %v3832_v63 = vpack.c.bf16 %v3824_v2, %v3824_v2  ;;  %v3793_v61 = vpop.permute.xlu2 %3792 }
 0x386   :  { %6022 = vmatmul.msk.bf16.vlgmr.msrb.gmra.mxu2 %vm2382_vm12, %v7685_v27  ;;  %v3833_v28 = vpack.c.bf16 %v3825_v50, %v3825_v50  ;;  %v3795_v50 = vpop.permute.xlu0 %3794 }
 0x387   :  { %3755 = vmatpush.bf16.msrb.mxu2 %v3665_v26  ;;  %v2783_v42 = vpop.f32.mrf.mxu3  ;;  %v3826_v26 = vmul.f32 %v3818_v7, %v8684_v43  ;;  %v3797_v7 = vpop.permute.xlu1 %3796  ;;  %v8686_v43 = vld [vmem:[#allocation53_spill] sm:$0xff] }
 0x389   :  { %v2820_v32 = vpop.f32.mrf.mxu2  ;;  %v2796_v14 = vpop.f32.mrf.mxu0 }
 0x38a   :  { %v7743_v0 = vadd.f32 %v2820_v32, %v7670_v44  ;;  %v2809_v56 = vpop.f32.mrf.mxu1  ;;  %v3819_v44 = vunpack.c.l.bf16 %v3801_v4  ;;  %v3834_v14 = vpack.c.bf16 %v3826_v26, %v3826_v26  ;;  %v3846_v4 = vsel %vm2386_vm11, %v3832_v63, 0 }
 0x38b   :  { %v3802_v26 = vsel %vm1967_vm10, %v3791_v36, %v3793_v61 }
 0x38c   :  { %6023 = vmatmul.msk.bf16.vlgmr.msrb.gmra.mxu3 %vm2382_vm12, %v7685_v27  ;;  %v7758_v27 = vld [vmem:[%s8505_s4 + $0x1c] sm:$0xf]  ;;  %v3820_v63 = vunpack.c.l.bf16 %v3802_v26  ;;  %v8688_v26 = vld [vmem:[#allocation54_spill] sm:$0xff] }
 0x38d   :  { %3768 = vmatpush.bf16.msrb.mxu3 %v3668_v8  ;;  %v8685_v8 = vld [vmem:[#allocation50_spill] sm:$0xff] }
 0x38e   :  { %v3985_v46 = vpop.permute.xlu0 %3984 }
 0x38f   :  { %v2833_v20 = vpop.f32.mrf.mxu3 }
 0x390   :  { %v7753_v32 = vadd.f32 %v2833_v20, %v7680_v37  ;;  %v3827_v37 = vmul.f32 %v3819_v44, %v8685_v8  ;;  %v3803_v20 = vsel %vm1967_vm10, %v3793_v61, %v3795_v50  ;;  %v3804_v44 = vsel %vm1967_vm10, %v3795_v50, %v3797_v7  ;;  %v8687_v61 = vld [vmem:[#allocation52_spill] sm:$0xff] }
 0x391   :  { %v2822_v42 = vpop.f32.mrf.mxu2  ;;  %v2941_v56 = vpop.f32.mrf.mxu0  ;;  %v3821_v62 = vunpack.c.l.bf16 %v3803_v20  ;;  %v3822_v36 = vunpack.c.l.bf16 %v3804_v44 }
 0x392   :  { %v7761_v60 = vadd.f32 %v2941_v56, %v7688_v1  ;;  %v2954_v12 = vpop.f32.mrf.mxu1  ;;  %v3849_v1 = vsel %vm2386_vm11, %v3833_v28, 0  ;;  %v3835_v56 = vpack.c.bf16 %v3827_v37, %v3827_v37  ;;  %v3828_v28 = vmul.f32 %v3820_v63, %v8686_v43  ;;  %v8689_v43 = vld [vmem:[#allocation55_spill] sm:$0xff] }
 0x393   :  { %v7764_v2 = vadd.f32 %v2954_v12, %v7691_v9  ;;  %v3852_v9 = vsel %vm2386_vm11, %v3834_v14, 0  ;;  %v3829_v50 = vmul.f32 %v3821_v62, %v8687_v61  ;;  %v3814_v37 = vsel %vm1967_vm10, %v3797_v7, %v7720_v34 }
 0x394   :  { %6025 = vmatmul.msk.bf16.vlgmr.msra.gmra.mxu0 %vm2382_vm12, %v7758_v27  ;;  %6026 = vmatmul.msk.bf16.vlgmr.msra.gmra.mxu1 %vm2382_vm12, %v7758_v27  ;;  %v3855_v14 = vsel %vm2386_vm11, %v3835_v56, 0  ;;  %v3836_v20 = vpack.c.bf16 %v3828_v28, %v3828_v28 }
 0x395   :  { %3876 = vmatpush.bf16.msra.mxu0 %v3846_v4  ;;  %3889 = vmatpush.bf16.msra.mxu1 %v3849_v1  ;;  %v3830_v1 = vmul.f32 %v3822_v36, %v8688_v26 }
 0x396   :  { %6027 = vmatmul.msk.bf16.vlgmr.msra.gmra.mxu2 %vm2382_vm12, %v7758_v27  ;;  %v3858_v34 = vsel %vm2386_vm11, %v3836_v20, 0 }
 0x397   :  { %3902 = vmatpush.bf16.msra.mxu2 %v3852_v9  ;;  %v2835_v42 = vpop.f32.mrf.mxu3  ;;  %v3838_v63 = vpack.c.bf16 %v3830_v1, %v3830_v1 }
 0x398   :  { %v3837_v42 = vpack.c.bf16 %v3829_v50, %v3829_v50 }
 0x399   :  { %v2967_v12 = vpop.f32.mrf.mxu2  ;;  %v2943_v33 = vpop.f32.mrf.mxu0 }
 0x39a   :  { %v3038_v8 = vadd.f32 %v2967_v12, %v7707_v52  ;;  %v2956_v4 = vpop.f32.mrf.mxu1  ;;  %v3823_v52 = vunpack.c.l.bf16 %v3814_v37 }
 0x39c   :  { %6028 = vmatmul.msk.bf16.vlgmr.msra.gmra.mxu3 %vm2382_vm12, %v7758_v27  ;;  %v3831_v61 = vmul.f32 %v3823_v52, %v8689_v43 }
 0x39d   :  { %3915 = vmatpush.bf16.msra.mxu3 %v3855_v14 }
 0x39e   :  { %v3839_v7 = vpack.c.bf16 %v3831_v61, %v3831_v61  ;;  %v6033_v61 = vld [vmem:[%s8505_s4 + $0x20] sm:$0xf] }
 0x39f   :  { %v2980_v9 = vpop.f32.mrf.mxu3 }
 0x3a0   :  { %v3039_v44 = vadd.f32 %v2980_v9, %v7718_v59  ;;  %v3861_v59 = vsel %vm2386_vm11, %v3837_v42, 0  ;;  %v3867_v37 = vsel %vm2386_vm11, %v3839_v7, 0 }
 0x3a1   :  { %v2969_v33 = vpop.f32.mrf.mxu2  ;;  %v2993_v12 = vpop.f32.mrf.mxu0 }
 0x3a2   :  { %v3040_v4 = vadd.f32 %v2993_v12, %v7723_v18  ;;  %v3006_v56 = vpop.f32.mrf.mxu1  ;;  %v3864_v18 = vsel %vm2386_vm11, %v3838_v63, 0 }
 0x3a3   :  { %v3041_v62 = vadd.f32 %v3006_v56, %v7726_v54 }
 0x3a4   :  { %6029 = vmatmul.msk.bf16.vlgmr.msrb.gmra.mxu0 %vm2382_vm12, %v7758_v27  ;;  %6030 = vmatmul.msk.bf16.vlgmr.msrb.gmra.mxu1 %vm2382_vm12, %v7758_v27 }
 0x3a5   :  { %3928 = vmatpush.bf16.msrb.mxu0 %v3858_v34  ;;  %3941 = vmatpush.bf16.msrb.mxu1 %v3861_v59 }
 0x3a6   :  { %6031 = vmatmul.msk.bf16.vlgmr.msrb.gmra.mxu2 %vm2382_vm12, %v7758_v27 }
 0x3a7   :  { %3954 = vmatpush.bf16.msrb.mxu2 %v3864_v18  ;;  %v2982_v54 = vpop.f32.mrf.mxu3 }
 0x3a9   :  { %v3019_v36 = vpop.f32.mrf.mxu2  ;;  %v2995_v14 = vpop.f32.mrf.mxu0 }
 0x3aa   :  { %v3042_v28 = vadd.f32 %v3019_v36, %v7743_v0  ;;  %v3008_v50 = vpop.f32.mrf.mxu1 }
 0x3ac   :  { %6032 = vmatmul.msk.bf16.vlgmr.msrb.gmra.mxu3 %vm2382_vm12, %v7758_v27 }
 0x3ad   :  { %3967 = vmatpush.bf16.msrb.mxu3 %v3867_v37 }
 0x3af   :  { %v3032_v1 = vpop.f32.mrf.mxu3 }
 0x3b0   :  { %v3043_v20 = vadd.f32 %v3032_v1, %v7753_v32 }
 0x3b1   :  { %v3021_v9 = vpop.f32.mrf.mxu2  ;;  %v3082_v52 = vpop.f32.mrf.mxu0 }
 0x3b2   :  { %v3177_v33 = vadd.f32 %v3082_v52, %v7761_v60  ;;  %v3095_v0 = vpop.f32.mrf.mxu1 }
 0x3b3   :  { %v3178_v42 = vadd.f32 %v3095_v0, %v7764_v2 }
 0x3b4   :  { %6034 = vmatmul.msk.bf16.vlgmr.msra.gmra.mxu0 %vm2382_vm12, %v6033_v61  ;;  %6035 = vmatmul.msk.bf16.vlgmr.msra.gmra.mxu1 %vm2382_vm12, %v6033_v61 }
 0x3b6   :  { %6036 = vmatmul.msk.bf16.vlgmr.msra.gmra.mxu2 %vm2382_vm12, %v6033_v61 }
 0x3b7   :  { %v3034_v27 = vpop.f32.mrf.mxu3 }
 0x3b9   :  { %v3108_v63 = vpop.f32.mrf.mxu2  ;;  %v3084_v32 = vpop.f32.mrf.mxu0 }
 0x3ba   :  { %v3179_v12 = vadd.f32 %v3108_v63, %v3038_v8  ;;  %v3097_v56 = vpop.f32.mrf.mxu1 }
 0x3bc   :  { %6037 = vmatmul.msk.bf16.vlgmr.msra.gmra.mxu3 %vm2382_vm12, %v6033_v61 }
 0x3bf   :  { %v3121_v34 = vpop.f32.mrf.mxu3 }
 0x3c0   :  { %v3180_v18 = vadd.f32 %v3121_v34, %v3039_v44 }
 0x3c1   :  { %v3110_v59 = vpop.f32.mrf.mxu2  ;;  %v3134_v60 = vpop.f32.mrf.mxu0 }
 0x3c2   :  { %v3181_v54 = vadd.f32 %v3134_v60, %v3040_v4  ;;  %v3147_v7 = vpop.f32.mrf.mxu1 }
 0x3c3   :  { %v3182_v2 = vadd.f32 %v3147_v7, %v3041_v62 }
 0x3c4   :  { %6038 = vmatmul.msk.bf16.vlgmr.msrb.gmra.mxu0 %vm2382_vm12, %v6033_v61  ;;  %6039 = vmatmul.msk.bf16.vlgmr.msrb.gmra.mxu1 %vm2382_vm12, %v6033_v61 }
 0x3c6   :  { %6040 = vmatmul.msk.bf16.vlgmr.msrb.gmra.mxu2 %vm2382_vm12, %v6033_v61 }
 0x3c7   :  { %v3123_v36 = vpop.f32.mrf.mxu3 }
 0x3c9   :  { %v3160_v14 = vpop.f32.mrf.mxu2  ;;  %v3136_v50 = vpop.f32.mrf.mxu0 }
 0x3ca   :  { %v3183_v8 = vadd.f32 %v3160_v14, %v3042_v28  ;;  %v3149_v37 = vpop.f32.mrf.mxu1 }
 0x3cc   :  { %6041 = vmatmul.msk.bf16.vlgmr.msrb.gmra.mxu3 %vm2382_vm12, %v6033_v61 }
 0x3cf   :  { %v3173_v1 = vpop.f32.mrf.mxu3 }
 0x3d0   :  { %v3184_v44 = vadd.f32 %v3173_v1, %v3043_v20 }
 0x3d1   :  { %v3162_v9 = vpop.f32.mrf.mxu2  ;;  %v3281_v52 = vpop.f32.mrf.mxu0 }
 0x3d2   :  { %v3376_v4 = vadd.f32 %v3281_v52, %v3177_v33  ;;  %v3294_v0 = vpop.f32.mrf.mxu1 }
 0x3d3   :  { %v3377_v62 = vadd.f32 %v3294_v0, %v3178_v42 }
 0x3d7   :  { %v3175_v27 = vpop.f32.mrf.mxu3 }
 0x3d9   :  { %v3307_v63 = vpop.f32.mrf.mxu2  ;;  %v3283_v56 = vpop.f32.mrf.mxu0 }
 0x3da   :  { %v3378_v32 = vadd.f32 %v3307_v63, %v3179_v12  ;;  %v3296_v34 = vpop.f32.mrf.mxu1 }
 0x3df   :  { %v3320_v59 = vpop.f32.mrf.mxu3 }
 0x3e0   :  { %v7819_v7 = vadd.f32 %v3320_v59, %v3180_v18 }
 0x3e1   :  { %v3309_v60 = vpop.f32.mrf.mxu2  ;;  %v3333_v28 = vpop.f32.mrf.mxu0 }
 0x3e2   :  { %v3380_v36 = vadd.f32 %v3333_v28, %v3181_v54  ;;  %v3346_v14 = vpop.f32.mrf.mxu1 }
 0x3e3   :  { %v3381_v61 = vadd.f32 %v3346_v14, %v3182_v2 }
 0x3e7   :  { %v3322_v50 = vpop.f32.mrf.mxu3 }
 0x3e9   :  { %v3359_v37 = vpop.f32.mrf.mxu2  ;;  %v3335_v1 = vpop.f32.mrf.mxu0 }
 0x3ea   :  { %v3382_v20 = vadd.f32 %v3359_v37, %v3183_v8  ;;  %v3348_v33 = vpop.f32.mrf.mxu1 }
 0x3ef   :  { %v3372_v9 = vpop.f32.mrf.mxu3 }
 0x3f0   :  { %v7821_v52 = vadd.f32 %v3372_v9, %v3184_v44 }
 0x3f1   :  { %v3361_v42 = vpop.f32.mrf.mxu2  ;;  %v3480_v12 = vpop.f32.mrf.mxu0 }
 0x3f2   :  { %v3493_v0 = vpop.f32.mrf.mxu1 }
 0x3f7   :  { %v3374_v27 = vpop.f32.mrf.mxu3 }
 0x3f9   :  { %v3506_v63 = vpop.f32.mrf.mxu2  ;;  %v3482_v18 = vpop.f32.mrf.mxu0 }
 0x3fa   :  { %v3577_v56 = vadd.f32 %v3506_v63, %v3378_v32  ;;  %v3495_v34 = vpop.f32.mrf.mxu1 }
 0x3ff   :  { %v3519_v59 = vpop.f32.mrf.mxu3 }
 0x401   :  { %v3508_v54 = vpop.f32.mrf.mxu2  ;;  %v3532_v60 = vpop.f32.mrf.mxu0 }
 0x402   :  { %v3579_v2 = vadd.f32 %v3532_v60, %v3380_v36  ;;  %v3545_v28 = vpop.f32.mrf.mxu1 }
 0x403   :  { %v3580_v14 = vadd.f32 %v3545_v28, %v3381_v61 }
 0x407   :  { %v3521_v8 = vpop.f32.mrf.mxu3 }
 0x409   :  { %v3558_v50 = vpop.f32.mrf.mxu2  ;;  %v3534_v1 = vpop.f32.mrf.mxu0 }
 0x40a   :  { %v7823_v37 = vadd.f32 %v3558_v50, %v3382_v20  ;;  %v3547_v44 = vpop.f32.mrf.mxu1  ;;  %v3575_v50 = vadd.f32 %v3480_v12, %v3376_v4  ;;  %v3576_v1 = vadd.f32 %v3493_v0, %v3377_v62  ;;  %v3578_v12 = vadd.f32 %v3519_v59, %v7819_v7 }
 0x40f   :  { %v7825_v33 = vpop.f32.mrf.mxu3 }
 0x411   :  { %v3560_v9 = vpop.f32.mrf.mxu2  ;;  %v3679_v42 = vpop.f32.mrf.mxu0 }
 0x412   :  { %v3692_v27 = vpop.f32.mrf.mxu1  ;;  %v3774_v26 = vadd.f32 %v3679_v42, %v3575_v50 }
 0x413   :  { %v3775_v9 = vadd.f32 %v3692_v27, %v3576_v1 }
 0x417   :  { %v3573_v32 = vpop.f32.mrf.mxu3 }
 0x419   :  { %v3705_v63 = vpop.f32.mrf.mxu2  ;;  %v3681_v18 = vpop.f32.mrf.mxu0 }
 0x41a   :  { %v3694_v34 = vpop.f32.mrf.mxu1 }
 0x41f   :  { %v3718_v54 = vpop.f32.mrf.mxu3 }
 0x421   :  { %v3707_v43 = vpop.f32.mrf.mxu2  ;;  %v3731_v36 = vpop.f32.mrf.mxu0 }
 0x422   :  { %v3744_v60 = vpop.f32.mrf.mxu1 }
 0x423   :  { %v3779_v27 = vadd.f32 %v3744_v60, %v3580_v14 }
 0x427   :  { %v3720_v61 = vpop.f32.mrf.mxu3 }
 0x429   :  { %v3757_v28 = vpop.f32.mrf.mxu2  ;;  %v3733_v8 = vpop.f32.mrf.mxu0 }
 0x42a   :  { %v3746_v20 = vpop.f32.mrf.mxu1  ;;  %v3780_v14 = vadd.f32 %v3757_v28, %v7823_v37 }
 0x42b   :  { %v3776_v20 = vadd.f32 %v3705_v63, %v3577_v56 }
 0x42f   :  { %v3770_v44 = vpop.f32.mrf.mxu3 }
 0x431   :  { %v3759_v38 = vpop.f32.mrf.mxu2  ;;  %v3878_v31 = vpop.f32.mrf.mxu0 }
 0x432   :  { %v3973_v16 = vadd.f32 %v3878_v31, %v3774_v26  ;;  %v3891_v32 = vpop.f32.mrf.mxu1  ;;  %v3777_v31 = vadd.f32 %v3718_v54, %v3578_v12  ;;  %v3778_v26 = vadd.f32 %v3731_v36, %v3579_v2  ;;  %v3582_v12 = vadd.f32 %v7825_v33, %v7821_v52 }
 0x433   :  { %v3974_v18 = vadd.f32 %v3891_v32, %v3775_v9 }
 0x434   :  { %v3987_v34 = vadd.f32 %v3985_v46, %v3973_v16 }
 0x435   :  { %v3988_v23 = vadd.f32 %v3985_v46, %v3974_v18 }
 0x436   :  { %v3995_v43 = vmax.f32 %v3987_v34, 0.0 }
 0x437   :  { %v3996_v45 = vmax.f32 %v3988_v23, 0.0  ;;  %v3772_v5 = vpop.f32.mrf.mxu3 }
 0x439   :  { %v3904_v61 = vpop.f32.mrf.mxu2  ;;  %v4003_v30 = vpack.c.bf16 %v3996_v45, %v3995_v43  ;;  %v3880_v8 = vpop.f32.mrf.mxu0 }
 0x43a   :  { %v3893_v4 = vpop.f32.mrf.mxu1  ;;  %v3975_v38 = vadd.f32 %v3904_v61, %v3776_v20 }
 0x43b   :  { %v4016_v62 = vunpack.c.h.b16 %v4003_v30 }
 0x43c   :  { %v3989_v42 = vadd.f32 %v3985_v46, %v3975_v38 }
 0x43d   :  { %v7828_v0 = vpack.c.b16 %v4016_v62, %v4016_v62 }
 0x43e   :  { %v3997_v9 = vmax.f32 %v3989_v42, 0.0 }
 0x43f   :  { %4090 = vrot.lane.b32.xlu1 %v7828_v0, %s6193_s0  ;;  %v3917_v16 = vpop.f32.mrf.mxu3 }
 0x440   :  { %v3976_v5 = vadd.f32 %v3917_v16, %v3777_v31  ;;  %v3781_v31 = vadd.f32 %v3770_v44, %v3582_v12  ;;  %v4015_v16 = vunpack.c.l.b16 %v4003_v30 }
 0x441   :  { %v3906_v23 = vpop.f32.mrf.mxu2  ;;  %v3930_v45 = vpop.f32.mrf.mxu0 }
 0x442   :  { %v3990_v50 = vadd.f32 %v3985_v46, %v3976_v5  ;;  %v3977_v56 = vadd.f32 %v3930_v45, %v3778_v26  ;;  %v3943_v63 = vpop.f32.mrf.mxu1  ;;  %v7843_v5 = vpack.c.b16 %v4015_v16, %v4015_v16 }
 0x443   :  { %v3978_v1 = vadd.f32 %v3943_v63, %v3779_v27 }
 0x444   :  { %v3998_v7 = vmax.f32 %v3990_v50, 0.0  ;;  %v3991_v59 = vadd.f32 %v3985_v46, %v3977_v56 }
 0x445   :  { %v3992_v32 = vadd.f32 %v3985_v46, %v3978_v1 }
 0x446   :  { %v4004_v18 = vpack.c.bf16 %v3998_v7, %v3997_v9  ;;  %v3999_v54 = vmax.f32 %v3991_v59, 0.0 }
 0x447   :  { %v4000_v34 = vmax.f32 %v3992_v32, 0.0  ;;  %v3919_v43 = vpop.f32.mrf.mxu3 }
 0x448   :  { %v4017_v61 = vunpack.c.l.b16 %v4004_v18  ;;  %v4018_v8 = vunpack.c.h.b16 %v4004_v18 }
 0x449   :  { %v3956_v2 = vpop.f32.mrf.mxu2  ;;  %v4005_v36 = vpack.c.bf16 %v4000_v34, %v3999_v54  ;;  %v3932_v20 = vpop.f32.mrf.mxu0 }
 0x44a   :  { %v7833_v60 = vpack.c.b16 %v4017_v61, %v4017_v61  ;;  %v7835_v4 = vpack.c.b16 %v4018_v8, %v4018_v8  ;;  %v3945_v62 = vpop.f32.mrf.mxu1  ;;  %v3979_v38 = vadd.f32 %v3956_v2, %v3780_v14 }
 0x44b   :  { %v4020_v26 = vunpack.c.h.b16 %v4005_v36  ;;  %v4019_v30 = vunpack.c.l.b16 %v4005_v36  ;;  %v7938_v62 = vld [vmem:[%s8507_s6 + $0x1] sm:$0x1] }
 0x44c   :  { %4094 = vrot.lane.b32.xlu0 %v7835_v4, %s6193_s0  ;;  %4092 = vrot.lane.b32.xlu2 %v7833_v60, %s6193_s0  ;;  %v3993_v37 = vadd.f32 %v3985_v46, %v3979_v38 }
 0x44d   :  { %v7845_v27 = vpack.c.b16 %v4020_v26, %v4020_v26  ;;  %v7853_v1 = vpack.c.b16 %v4019_v30, %v4019_v30 }
 0x44e   :  { %v4001_v52 = vmax.f32 %v3993_v37, 0.0 }
 0x44f   :  { %v3969_v42 = vpop.f32.mrf.mxu3 }
 0x450   :  { %v3980_v23 = vadd.f32 %v3969_v42, %v3781_v31 }
 0x451   :  { %v3958_v28 = vpop.f32.mrf.mxu2 }
 0x452   :  { %v3994_v45 = vadd.f32 %v3985_v46, %v3980_v23 }
 0x454   :  { %v4002_v33 = vmax.f32 %v3994_v45, 0.0  ;;  %4088 = vrot.lane.b32.xlu2 %v7843_v5, %s6193_s0  ;;  %4098 = vrot.lane.b32.xlu0 %v7845_v27, %s6193_s0 }
 0x456   :  { %v4006_v44 = vpack.c.bf16 %v4002_v33, %v4001_v52 }
 0x457   :  { %v3971_v50 = vpop.f32.mrf.mxu3 }
 0x458   :  { %v4008_v56 = vunpack.c.h.b16 %v4006_v44  ;;  %v4021_v46 = vunpack.c.l.b16 %v4006_v44 }
 0x45a   :  { %v7851_v63 = vpack.c.b16 %v4008_v56, %v4008_v56  ;;  %v7861_v9 = vpack.c.b16 %v4021_v46, %v4021_v46 }
 0x45c   :  { %4086 = vrot.lane.b32.xlu1 %v7851_v63, %s6193_s0  ;;  %4031 = vrot.lane.b32.xlu0 %v7828_v0, %s6194_s7 }
 0x45d   :  { %4096 = vrot.lane.b32.xlu2 %v7853_v1, %s6193_s0 }
 0x464   :  { %4100 = vrot.lane.b32.xlu1 %v7861_v9, %s6193_s0  ;;  %4010 = vrot.lane.b32.xlu0 %v7851_v63, %s6194_s7 }
 0x465   :  { %4035 = vrot.lane.b32.xlu2 %v7835_v4, %s6194_s7 }
 0x46c   :  { %4033 = vrot.lane.b32.xlu1 %v7833_v60, %s6194_s7  ;;  %4041 = vrot.lane.b32.xlu0 %v7861_v9, %s6194_s7 }
 0x46d   :  { %4039 = vrot.lane.b32.xlu2 %v7845_v27, %s6194_s7 }
 0x474   :  { %4029 = vrot.lane.b32.xlu1 %v7843_v5, %s6194_s7  ;;  %4414 = vrot.lane.b32.xlu0 %v7833_v60, %s6195_s11 }
 0x475   :  { %4412 = vrot.lane.b32.xlu2 %v7828_v0, %s6195_s11 }
 0x47c   :  { %4410 = vrot.lane.b32.xlu0 %v7843_v5, %s6195_s11  ;;  %4037 = vrot.lane.b32.xlu1 %v7853_v1, %s6194_s7 }
 0x47d   :  { %4408 = vrot.lane.b32.xlu2 %v7851_v63, %s6195_s11 }
 0x484   :  { %4418 = vrot.lane.b32.xlu0 %v7853_v1, %s6195_s11  ;;  %4416 = vrot.lane.b32.xlu1 %v7835_v4, %s6195_s11 }
 0x485   :  { %4422 = vrot.lane.b32.xlu2 %v7861_v9, %s6195_s11 }
 0x48c   :  { %4615 = vrot.lane.b32.xlu0 %v7835_v4, %s6196_s12  ;;  %4420 = vrot.lane.b32.xlu1 %v7845_v27, %s6195_s11 }
 0x48d   :  { %4613 = vrot.lane.b32.xlu2 %v7833_v60, %s6196_s12 }
 0x494   :  { %4619 = vrot.lane.b32.xlu0 %v7845_v27, %s6196_s12  ;;  %4611 = vrot.lane.b32.xlu1 %v7828_v0, %s6196_s12 }
 0x495   :  { %4609 = vrot.lane.b32.xlu2 %v7843_v5, %s6196_s12 }
 0x49c   :  { %4951 = vrot.lane.b32.xlu0 %v7833_v60, %s6198_s21  ;;  %4607 = vrot.lane.b32.xlu1 %v7851_v63, %s6196_s12 }
 0x49d   :  { %4617 = vrot.lane.b32.xlu2 %v7853_v1, %s6196_s12 }
 0x4a4   :  { %4947 = vrot.lane.b32.xlu0 %v7843_v5, %s6198_s21  ;;  %4621 = vrot.lane.b32.xlu1 %v7861_v9, %s6196_s12 }
 0x4a5   :  { %4955 = vrot.lane.b32.xlu2 %v7853_v1, %s6198_s21 }
 0x4a6   :  { %v4093_v7 = vpop.permute.xlu2 %4092 }
 0x4ac   :  { %4961 = vrot.lane.b32.xlu0 %v7851_v63, %s6198_s21  ;;  %4953 = vrot.lane.b32.xlu1 %v7835_v4, %s6198_s21 }
 0x4ad   :  { %4959 = vrot.lane.b32.xlu2 %v7861_v9, %s6198_s21 }
 0x4ae   :  { %v4089_v59 = vpop.permute.xlu2 %4088 }
 0x4b1   :  { %v4091_v32 = vpop.permute.xlu1 %4090 }
 0x4b2   :  { %v4102_v18 = vsel %vm230_vm0, %v4089_v59, %v4091_v32  ;;  %v4103_v54 = vsel %vm230_vm0, %v4091_v32, %v4093_v7 }
 0x4b3   :  { %v4121_v34 = vunpack.c.l.bf16 %v4102_v18  ;;  %v4122_v43 = vunpack.c.l.bf16 %v4103_v54 }
 0x4b4   :  { %5152 = vrot.lane.b32.xlu0 %v7835_v4, %s6199_s24  ;;  %4949 = vrot.lane.b32.xlu1 %v7828_v0, %s6198_s21 }
 0x4b5   :  { %v4129_v61 = vmul.f32 %v4121_v34, %v6381_v25  ;;  %v4130_v8 = vmul.f32 %v4122_v43, %v6414_v10  ;;  %5150 = vrot.lane.b32.xlu2 %v7833_v60, %s6199_s24 }
 0x4b7   :  { %v4137_v2 = vpack.c.bf16 %v4129_v61, %v4129_v61  ;;  %v4138_v36 = vpack.c.bf16 %v4130_v8, %v4130_v8  ;;  %v4097_v10 = vpop.permute.xlu2 %4096 }
 0x4b9   :  { %v4153_v20 = vsel %vm2386_vm11, %v4137_v2, 0  ;;  %v4156_v14 = vsel %vm2386_vm11, %v4138_v36, 0 }
 0x4ba   :  { %4193 = vmatpush.bf16.msra.mxu1 %v4153_v20  ;;  %4206 = vmatpush.bf16.msra.mxu2 %v4156_v14 }
 0x4bc   :  { %5148 = vrot.lane.b32.xlu0 %v7828_v0, %s6199_s24  ;;  %4957 = vrot.lane.b32.xlu1 %v7845_v27, %s6198_s21 }
 0x4bd   :  { %5146 = vrot.lane.b32.xlu2 %v7843_v5, %s6199_s24  ;;  %6044 = vmatmul.msk.bf16.vlgmr.msra.gmra.mxu1 %vm2382_vm12, %v7938_v62 }
 0x4be   :  { %v4095_v25 = vpop.permute.xlu0 %4094  ;;  %6045 = vmatmul.msk.bf16.vlgmr.msra.gmra.mxu2 %vm2382_vm12, %v7938_v62 }
 0x4bf   :  { %v4104_v12 = vsel %vm230_vm0, %v4093_v7, %v4095_v25  ;;  %v4105_v28 = vsel %vm230_vm0, %v4095_v25, %v4097_v10 }
 0x4c0   :  { %v4123_v38 = vunpack.c.l.bf16 %v4104_v12  ;;  %v4124_v52 = vunpack.c.l.bf16 %v4105_v28 }
 0x4c2   :  { %v4131_v31 = vmul.f32 %v4123_v38, %v6416_v11  ;;  %v7961_v11 = vpop.permute.xlu2 %4035 }
 0x4c4   :  { %v4139_v16 = vpack.c.bf16 %v4131_v31, %v4131_v31  ;;  %5156 = vrot.lane.b32.xlu0 %v7845_v27, %s6199_s24  ;;  %5154 = vrot.lane.b32.xlu1 %v7853_v1, %s6199_s24 }
 0x4c5   :  { %5160 = vrot.lane.b32.xlu2 %v7851_v63, %s6199_s24 }
 0x4c6   :  { %v4099_v26 = vpop.permute.xlu0 %4098  ;;  %v4159_v42 = vsel %vm2386_vm11, %v4139_v16, 0 }
 0x4c7   :  { %v4106_v37 = vsel %vm230_vm0, %v4097_v10, %v4099_v26  ;;  %4219 = vmatpush.bf16.msra.mxu3 %v4159_v42 }
 0x4c8   :  { %v4125_v23 = vunpack.c.l.bf16 %v4106_v37 }
 0x4ca   :  { %v4133_v45 = vmul.f32 %v4125_v23, %v6369_v13  ;;  %6046 = vmatmul.msk.bf16.vlgmr.msra.gmra.mxu3 %vm2382_vm12, %v7938_v62  ;;  %v4132_v13 = vmul.f32 %v4124_v52, %v6405_v53  ;;  %v7980_v18 = vpop.permute.xlu2 %4039 }
 0x4cc   :  { %v4141_v33 = vpack.c.bf16 %v4133_v45, %v4133_v45  ;;  %5353 = vrot.lane.b32.xlu0 %v7853_v1, %s6200_s27  ;;  %5158 = vrot.lane.b32.xlu1 %v7861_v9, %s6199_s24  ;;  %v4140_v32 = vpack.c.bf16 %v4132_v13, %v4132_v13 }
 0x4cd   :  { %5351 = vrot.lane.b32.xlu2 %v7835_v4, %s6200_s27 }
 0x4ce   :  { %v4087_v44 = vpop.permute.xlu1 %4086  ;;  %v7972_v30 = vpop.permute.xlu0 %4031  ;;  %v4165_v50 = vsel %vm2386_vm11, %v4141_v33, 0  ;;  %v4162_v61 = vsel %vm2386_vm11, %v4140_v32, 0 }
 0x4cf   :  { %v4118_v56 = vsel %vm230_vm0, %v4087_v44, %v4089_v59  ;;  %4245 = vmatpush.bf16.msrb.mxu1 %v4165_v50 }
 0x4d0   :  { %v4120_v46 = vunpack.c.l.bf16 %v4118_v56 }
 0x4d2   :  { %v4128_v7 = vmul.f32 %v4120_v46, %v6407_v57  ;;  %6048 = vmatmul.msk.bf16.vlgmr.msrb.gmra.mxu1 %vm2382_vm12, %v7938_v62  ;;  %v4413_v10 = vpop.permute.xlu2 %4412 }
 0x4d4   :  { %v4136_v54 = vpack.c.bf16 %v4128_v7, %v4128_v7  ;;  %5357 = vrot.lane.b32.xlu0 %v7861_v9, %s6200_s27  ;;  %5349 = vrot.lane.b32.xlu1 %v7833_v60, %s6200_s27 }
 0x4d5   :  { %5347 = vrot.lane.b32.xlu2 %v7828_v0, %s6200_s27 }
 0x4d6   :  { %v4101_v53 = vpop.permute.xlu1 %4100  ;;  %v4011_v59 = vpop.permute.xlu0 %4010  ;;  %v4150_v57 = vsel %vm2386_vm11, %v4136_v54, 0 }
 0x4d7   :  { %v4107_v34 = vsel %vm230_vm0, %v4099_v26, %v4101_v53  ;;  %v4108_v43 = vsel %vm230_vm0, %v4101_v53, %v4087_v44  ;;  %4180 = vmatpush.bf16.msra.mxu0 %v4150_v57  ;;  %vm5861_vm0 = vcmask 1045508  }
 0x4d8   :  { %v4126_v8 = vunpack.c.l.bf16 %v4107_v34  ;;  %v4127_v2 = vunpack.c.l.bf16 %v4108_v43 }
 0x4da   :  { %v4134_v36 = vmul.f32 %v4126_v8, %v6444_v49  ;;  %v4135_v20 = vmul.f32 %v4127_v2, %v6455_v6  ;;  %6043 = vmatmul.msk.bf16.vlgmr.msra.gmra.mxu0 %vm2382_vm12, %v7938_v62  ;;  %v4409_v53 = vpop.permute.xlu2 %4408 }
 0x4db   :  { %4232 = vmatpush.bf16.msrb.mxu0 %v4162_v61 }
 0x4dc   :  { %v4142_v14 = vpack.c.bf16 %v4134_v36, %v4134_v36  ;;  %v4143_v25 = vpack.c.bf16 %v4135_v20, %v4135_v20  ;;  %5548 = vrot.lane.b32.xlu0 %v7833_v60, %s6201_s30  ;;  %5345 = vrot.lane.b32.xlu1 %v7843_v5, %s6200_s27 }
 0x4dd   :  { %5355 = vrot.lane.b32.xlu2 %v7845_v27, %s6200_s27 }
 0x4de   :  { %v4034_v12 = vpop.permute.xlu1 %4033  ;;  %v4042_v38 = vpop.permute.xlu0 %4041  ;;  %v4168_v49 = vsel %vm2386_vm11, %v4142_v14, 0  ;;  %v4171_v6 = vsel %vm2386_vm11, %v4143_v25, 0 }
 0x4df   :  { %v4044_v31 = vsel %vm85_vm4, %v7972_v30, %v4034_v12  ;;  %v4045_v16 = vsel %vm85_vm4, %v4034_v12, %v7961_v11  ;;  %v4048_v26 = vsel %vm85_vm4, %v7980_v18, %v4042_v38  ;;  %v4049_v42 = vsel %vm85_vm4, %v4042_v38, %v4011_v59  ;;  %4258 = vmatpush.bf16.msrb.mxu2 %v4168_v49 }
 0x4e0   :  { %v4063_v37 = vunpack.c.l.bf16 %v4044_v31  ;;  %v4064_v28 = vunpack.c.l.bf16 %v4045_v16  ;;  %v4067_v23 = vunpack.c.l.bf16 %v4048_v26  ;;  %v4068_v45 = vunpack.c.l.bf16 %v4049_v42  ;;  %4271 = vmatpush.bf16.msrb.mxu3 %v4171_v6  ;;  %v8058_v31 = vld [vmem:[%s8507_s6] sm:$0x1] }
 0x4e2   :  { %v4071_v52 = vmul.f32 %v4063_v37, %v6490_v40  ;;  %v4072_v33 = vmul.f32 %v4064_v28, %v6488_v39  ;;  %v4075_v44 = vmul.f32 %v4067_v23, %v8651_v19  ;;  %v4076_v50 = vmul.f32 %v4068_v45, %v8652_v55  ;;  %6049 = vmatmul.msk.bf16.vlgmr.msrb.gmra.mxu2 %vm2382_vm12, %v7938_v62 }
 0x4e3   :  { %6050 = vmatmul.msk.bf16.vlgmr.msrb.gmra.mxu3 %vm2382_vm12, %v7938_v62 }
 0x4e4   :  { %v4079_v13 = vpack.c.bf16 %v4071_v52, %v4071_v52  ;;  %v4080_v56 = vpack.c.bf16 %v4072_v33, %v4072_v33  ;;  %v4083_v46 = vpack.c.bf16 %v4075_v44, %v4075_v44  ;;  %v4084_v7 = vpack.c.bf16 %v4076_v50, %v4076_v50  ;;  %5544 = vrot.lane.b32.xlu0 %v7843_v5, %s6201_s30 }
 0x4e5   :  { %5359 = vrot.lane.b32.xlu1 %v7851_v63, %s6200_s27  ;;  %5552 = vrot.lane.b32.xlu2 %v7853_v1, %s6201_s30 }
 0x4e6   :  { %v4030_v39 = vpop.permute.xlu1 %4029  ;;  %v8025_v40 = vpop.permute.xlu0 %4414  ;;  %v4287_v19 = vsel %vm2386_vm11, %v4079_v13, 0  ;;  %v4290_v55 = vsel %vm2386_vm11, %v4080_v56, 0  ;;  %v4299_v32 = vsel %vm2386_vm11, %v4083_v46, 0  ;;  %v4302_v54 = vsel %vm2386_vm11, %v4084_v7, 0 }
 0x4e7   :  { %v4043_v57 = vsel %vm85_vm4, %v4030_v39, %v7972_v30  ;;  %v4059_v34 = vsel %vm85_vm4, %v4011_v59, %v4030_v39  ;;  %v4425_v43 = vsel %vm623_vm5, %v4413_v10, %v8025_v40  ;;  %4337 = vmatpush.bf16.msra.mxu2 %v4287_v19  ;;  %4350 = vmatpush.bf16.msra.mxu3 %v4290_v55 }
 0x4e8   :  { %v4061_v61 = vunpack.c.l.bf16 %v4059_v34  ;;  %v4062_v8 = vunpack.c.l.bf16 %v4043_v57  ;;  %v4444_v2 = vunpack.c.l.bf16 %v4425_v43 }
 0x4ea   :  { %v4069_v36 = vmul.f32 %v4061_v61, %v8650_v58  ;;  %v4070_v20 = vmul.f32 %v4062_v8, %v6517_v41  ;;  %v4452_v14 = vmul.f32 %v4444_v2, %v8653_v15  ;;  %6047 = vmatmul.msk.bf16.vlgmr.msrb.gmra.mxu0 %vm2382_vm12, %v7938_v62 }
 0x4eb   :  { %4389 = vmatpush.bf16.msrb.mxu2 %v4299_v32  ;;  %4402 = vmatpush.bf16.msrb.mxu3 %v4302_v54  ;;  %v8690_v32 = vld [vmem:[#allocation16_spill] sm:$0xff] }
 0x4ec   :  { %v4077_v30 = vpack.c.bf16 %v4069_v36, %v4069_v36  ;;  %v4078_v59 = vpack.c.bf16 %v4070_v20, %v4070_v20  ;;  %5558 = vrot.lane.b32.xlu0 %v7851_v63, %s6201_s30  ;;  %v4460_v25 = vpack.c.bf16 %v4452_v14, %v4452_v14 }
 0x4ed   :  { %5550 = vrot.lane.b32.xlu1 %v7835_v4, %s6201_s30  ;;  %5556 = vrot.lane.b32.xlu2 %v7861_v9, %s6201_s30 }
 0x4ee   :  { %v4411_v58 = vpop.permute.xlu0 %4410  ;;  %v4038_v12 = vpop.permute.xlu1 %4037  ;;  %v4281_v41 = vsel %vm2386_vm11, %v4077_v30, 0  ;;  %v4284_v15 = vsel %vm2386_vm11, %v4078_v59, 0  ;;  %v4478_v45 = vsel %vm2386_vm11, %v4460_v25, 0  ;;  %v8691_v25 = vld [vmem:[#allocation15_spill] sm:$0xff] }
 0x4ef   :  { %v4424_v62 = vsel %vm623_vm5, %v4411_v58, %v4413_v10  ;;  %v4440_v38 = vsel %vm623_vm5, %v4409_v53, %v4411_v58  ;;  %v4046_v49 = vsel %vm85_vm4, %v7961_v11, %v4038_v12  ;;  %v4047_v6 = vsel %vm85_vm4, %v4038_v12, %v7980_v18  ;;  %4311 = vmatpush.bf16.msra.mxu0 %v4281_v41  ;;  %v4423_v10 = vpop.permute.xlu2 %4422 }
 0x4f0   :  { %v4442_v16 = vunpack.c.l.bf16 %v4440_v38  ;;  %v4443_v26 = vunpack.c.l.bf16 %v4424_v62  ;;  %v4065_v42 = vunpack.c.l.bf16 %v4046_v49  ;;  %v4066_v37 = vunpack.c.l.bf16 %v4047_v6  ;;  %4324 = vmatpush.bf16.msra.mxu1 %v4284_v15 }
 0x4f1   :  { %v4430_v52 = vsel %vm623_vm5, %v4423_v10, %v4409_v53 }
 0x4f2   :  { %v4450_v28 = vmul.f32 %v4442_v16, %v8657_v51  ;;  %v4451_v23 = vmul.f32 %v4443_v26, %v8658_v17  ;;  %v4073_v11 = vmul.f32 %v4065_v42, %v6507_v29  ;;  %v4074_v18 = vmul.f32 %v4066_v37, %v6509_v21  ;;  %6053 = vmatmul.msk.bf16.vlgmr.msra.gmra.mxu2 %vm2382_vm12, %v8058_v31 }
 0x4f3   :  { %6052 = vmatmul.msk.bf16.vlgmr.msra.gmra.mxu1 %vm2382_vm12, %v8058_v31  ;;  %6054 = vmatmul.msk.bf16.vlgmr.msra.gmra.mxu3 %vm2382_vm12, %v8058_v31  ;;  %v4449_v56 = vunpack.c.l.bf16 %v4430_v52 }
 0x4f4   :  { %v4459_v51 = vpack.c.bf16 %v4451_v23, %v4451_v23  ;;  %v4081_v33 = vpack.c.bf16 %v4073_v11, %v4073_v11  ;;  %v4082_v17 = vpack.c.bf16 %v4074_v18, %v4074_v18  ;;  %4528 = vmatpush.bf16.msra.mxu2 %v4478_v45  ;;  %v4458_v29 = vpack.c.bf16 %v4450_v28, %v4450_v28 }
 0x4f5   :  { %5546 = vrot.lane.b32.xlu1 %v7828_v0, %s6201_s30  ;;  %v4457_v54 = vmul.f32 %v4449_v56, %v8690_v32 }
 0x4f6   :  { %v4417_v21 = vpop.permute.xlu1 %4416  ;;  %v4293_v44 = vsel %vm2386_vm11, %v4081_v33, 0  ;;  %v4296_v50 = vsel %vm2386_vm11, %v4082_v17, 0  ;;  %v4475_v13 = vsel %vm2386_vm11, %v4459_v51, 0  ;;  %v4419_v7 = vpop.permute.xlu0 %4418  ;;  %v4472_v55 = vsel %vm2386_vm11, %v4458_v29, 0  ;;  %v6059_v17 = vld [vmem:[%s8507_s6 + $0x2] sm:$0x1] }
 0x4f7   :  { %v4426_v46 = vsel %vm623_vm5, %v8025_v40, %v4417_v21  ;;  %4363 = vmatpush.bf16.msrb.mxu0 %v4293_v44  ;;  %4376 = vmatpush.bf16.msrb.mxu1 %v4296_v50  ;;  %v4427_v53 = vsel %vm623_vm5, %v4417_v21, %v4419_v7  ;;  %v4614_v57 = vpop.permute.xlu2 %4613  ;;  %v8692_v44 = vld [vmem:[#allocation20_spill] sm:$0xff] }
 0x4f8   :  { %v4445_v39 = vunpack.c.l.bf16 %v4426_v46  ;;  %v4446_v40 = vunpack.c.l.bf16 %v4427_v53 }
 0x4fa   :  { %v4453_v19 = vmul.f32 %v4445_v39, %v8654_v3  ;;  %6051 = vmatmul.msk.bf16.vlgmr.msra.gmra.mxu0 %vm2382_vm12, %v8058_v31  ;;  %v4465_v3 = vpack.c.bf16 %v4457_v54, %v4457_v54  ;;  %v4454_v14 = vmul.f32 %v4446_v40, %v8659_v24 }
 0x4fb   :  { %4515 = vmatpush.bf16.msra.mxu1 %v4475_v13  ;;  %4502 = vmatpush.bf16.msra.mxu0 %v4472_v55 }
 0x4fc   :  { %v4461_v34 = vpack.c.bf16 %v4453_v19, %v4453_v19  ;;  %v4493_v12 = vsel %vm2386_vm11, %v4465_v3, 0  ;;  %v8695_v3 = vld [vmem:[#allocation23_spill] sm:$0xff] }
 0x4fd   :  { %5554 = vrot.lane.b32.xlu1 %v7845_v27, %s6201_s30 }
 0x4fe   :  { %v4421_v43 = vpop.permute.xlu1 %4420  ;;  %v4481_v61 = vsel %vm2386_vm11, %v4461_v34, 0  ;;  %v4616_v30 = vpop.permute.xlu0 %4615  ;;  %v8693_v34 = vld [vmem:[#allocation19_spill] sm:$0xff] }
 0x4ff   :  { %v4428_v8 = vsel %vm623_vm5, %v4419_v7, %v4421_v43  ;;  %v4429_v2 = vsel %vm623_vm5, %v4421_v43, %v4423_v10  ;;  %4541 = vmatpush.bf16.msra.mxu3 %v4481_v61  ;;  %v4625_v24 = vsel %vm864_vm6, %v4614_v57, %v4616_v30  ;;  %v4610_v62 = vpop.permute.xlu2 %4609  ;;  %v8694_v43 = vld [vmem:[#allocation22_spill] sm:$0xff] }
 0x500   :  { %v4447_v36 = vunpack.c.l.bf16 %v4428_v8  ;;  %v4448_v20 = vunpack.c.l.bf16 %v4429_v2  ;;  %v4644_v42 = vunpack.c.l.bf16 %v4625_v24  ;;  %v6068_v24 = vld [vmem:[%s8507_s6 + $0x3] sm:$0x1] }
 0x502   :  { %v4455_v59 = vmul.f32 %v4447_v36, %v8660_v22  ;;  %v4456_v58 = vmul.f32 %v4448_v20, %v8691_v25  ;;  %6057 = vmatmul.msk.bf16.vlgmr.msrb.gmra.mxu2 %vm2382_vm12, %v8058_v31  ;;  %v4462_v22 = vpack.c.bf16 %v4454_v14, %v4454_v14  ;;  %v4652_v18 = vmul.f32 %v4644_v42, %v8662_v48 }
 0x503   :  { %6056 = vmatmul.msk.bf16.vlgmr.msrb.gmra.mxu1 %vm2382_vm12, %v8058_v31  ;;  %6058 = vmatmul.msk.bf16.vlgmr.msrb.gmra.mxu3 %vm2382_vm12, %v8058_v31 }
 0x504   :  { %v4463_v41 = vpack.c.bf16 %v4455_v59, %v4455_v59  ;;  %v4464_v15 = vpack.c.bf16 %v4456_v58, %v4456_v58  ;;  %4593 = vmatpush.bf16.msrb.mxu3 %v4493_v12  ;;  %v4484_v28 = vsel %vm2386_vm11, %v4462_v22, 0  ;;  %v4660_v29 = vpack.c.bf16 %v4652_v18, %v4652_v18  ;;  %v8696_v59 = vld [vmem:[#allocation21_spill] sm:$0xff] }
 0x505   :  { %v4818_v22 = vsel %vm2386_vm11, %v7833_v60, 0 }
 0x506   :  { %v4612_v38 = vpop.permute.xlu1 %4611  ;;  %v4487_v49 = vsel %vm2386_vm11, %v4463_v41, 0  ;;  %v4490_v6 = vsel %vm2386_vm11, %v4464_v15, 0  ;;  %v4620_v21 = vpop.permute.xlu0 %4619  ;;  %v4680_v56 = vsel %vm2386_vm11, %v4660_v29, 0 }
 0x507   :  { %v4623_v16 = vsel %vm864_vm6, %v4610_v62, %v4612_v38  ;;  %v4624_v26 = vsel %vm864_vm6, %v4612_v38, %v4614_v57  ;;  %4567 = vmatpush.bf16.msrb.mxu1 %v4487_v49  ;;  %4580 = vmatpush.bf16.msrb.mxu2 %v4490_v6  ;;  %v4821_v38 = vsel %vm2386_vm11, %v7835_v4, 0  ;;  %v4827_v4 = vsel %vm2386_vm11, %v7845_v27, 0 }
 0x508   :  { %v4642_v37 = vunpack.c.l.bf16 %v4623_v16  ;;  %v4643_v10 = vunpack.c.l.bf16 %v4624_v26  ;;  %v4812_v16 = vsel %vm2386_vm11, %v7843_v5, 0 }
 0x50a   :  { %6055 = vmatmul.msk.bf16.vlgmr.msrb.gmra.mxu0 %vm2382_vm12, %v8058_v31  ;;  %v4650_v23 = vmul.f32 %v4642_v37, %v6685_v47  ;;  %v4651_v11 = vmul.f32 %v4643_v10, %v8661_v35  ;;  %v4618_v47 = vpop.permute.xlu2 %4617 }
 0x50b   :  { %4554 = vmatpush.bf16.msrb.mxu0 %v4484_v28  ;;  %v4627_v13 = vsel %vm864_vm6, %v4618_v47, %v4620_v21  ;;  %v4626_v57 = vsel %vm864_vm6, %v4616_v30, %v4618_v47 }
 0x50c   :  { %v4658_v52 = vpack.c.bf16 %v4650_v23, %v4650_v23  ;;  %v4659_v51 = vpack.c.bf16 %v4651_v11, %v4651_v11  ;;  %v4646_v39 = vunpack.c.l.bf16 %v4627_v13  ;;  %v4645_v2 = vunpack.c.l.bf16 %v4626_v57 }
 0x50d   :  { %v4830_v23 = vsel %vm2386_vm11, %v7861_v9, 0  ;;  %v4833_v11 = vsel %vm2386_vm11, %v7851_v63, 0  ;;  %v8699_v63 = vld [vmem:[#allocation25_spill] sm:$0xff] }
 0x50e   :  { %v4608_v45 = vpop.permute.xlu1 %4607  ;;  %v4674_v35 = vsel %vm2386_vm11, %v4658_v52, 0  ;;  %v4677_v48 = vsel %vm2386_vm11, %v4659_v51, 0  ;;  %v4654_v40 = vmul.f32 %v4646_v39, %v8693_v34  ;;  %v4653_v25 = vmul.f32 %v4645_v2, %v8696_v59  ;;  %v4952_v6 = vpop.permute.xlu0 %4951 }
 0x50f   :  { %v4639_v33 = vsel %vm864_vm6, %v4608_v45, %v4610_v62  ;;  %v4815_v62 = vsel %vm2386_vm11, %v7828_v0, 0 }
 0x510   :  { %v4641_v31 = vunpack.c.l.bf16 %v4639_v33  ;;  %v4662_v36 = vpack.c.bf16 %v4654_v40, %v4654_v40  ;;  %v4661_v41 = vpack.c.bf16 %v4653_v25, %v4653_v25  ;;  %v4824_v33 = vsel %vm2386_vm11, %v7853_v1, 0 }
 0x512   :  { %v4649_v50 = vmul.f32 %v4641_v31, %v8692_v44  ;;  %6062 = vmatmul.msk.bf16.vlgmr.msra.gmra.mxu2 %vm2382_vm12, %v6059_v17  ;;  %v4686_v30 = vsel %vm2386_vm11, %v4662_v36, 0  ;;  %v4683_v15 = vsel %vm2386_vm11, %v4661_v41, 0  ;;  %v4956_v10 = vpop.permute.xlu2 %4955  ;;  %v8698_v31 = vld [vmem:[#allocation24_spill] sm:$0xff] }
 0x513   :  { %6061 = vmatmul.msk.bf16.vlgmr.msra.gmra.mxu1 %vm2382_vm12, %v6059_v17  ;;  %6063 = vmatmul.msk.bf16.vlgmr.msra.gmra.mxu3 %vm2382_vm12, %v6059_v17  ;;  %v8702_v41 = vld [vmem:[#allocation28_spill] sm:$0xff] }
 0x514   :  { %4714 = vmatpush.bf16.msra.mxu1 %v4674_v35  ;;  %4727 = vmatpush.bf16.msra.mxu2 %v4677_v48  ;;  %v4657_v46 = vpack.c.bf16 %v4649_v50, %v4649_v50 }
 0x515   :  { %4740 = vmatpush.bf16.msra.mxu3 %v4680_v56  ;;  %v6077_v56 = vld [vmem:[%s8507_s6 + $0x4] sm:$0x1] }
 0x516   :  { %v4622_v7 = vpop.permute.xlu1 %4621  ;;  %v4671_v53 = vsel %vm2386_vm11, %v4657_v46, 0  ;;  %v4948_v37 = vpop.permute.xlu0 %4947 }
 0x517   :  { %v4628_v19 = vsel %vm864_vm6, %v4620_v21, %v4622_v7  ;;  %v4629_v55 = vsel %vm864_vm6, %v4622_v7, %v4608_v45 }
 0x518   :  { %v4647_v32 = vunpack.c.l.bf16 %v4628_v19  ;;  %v4648_v54 = vunpack.c.l.bf16 %v4629_v55  ;;  %v8700_v19 = vld [vmem:[#allocation27_spill] sm:$0xff] }
 0x51a   :  { %6060 = vmatmul.msk.bf16.vlgmr.msra.gmra.mxu0 %vm2382_vm12, %v6059_v17  ;;  %v4655_v61 = vmul.f32 %v4647_v32, %v8694_v43  ;;  %v4656_v8 = vmul.f32 %v4648_v54, %v8695_v3  ;;  %v4960_v46 = vpop.permute.xlu2 %4959 }
 0x51b   :  { %4701 = vmatpush.bf16.msra.mxu0 %v4671_v53 }
 0x51c   :  { %v4663_v20 = vpack.c.bf16 %v4655_v61, %v4655_v61  ;;  %v4664_v14 = vpack.c.bf16 %v4656_v8, %v4656_v8 }
 0x51e   :  { %v4689_v58 = vsel %vm2386_vm11, %v4663_v20, 0  ;;  %v4692_v12 = vsel %vm2386_vm11, %v4664_v14, 0  ;;  %v4954_v49 = vpop.permute.xlu1 %4953  ;;  %v4962_v50 = vpop.permute.xlu0 %4961 }
 0x51f   :  { %v4965_v5 = vsel %vm1244_vm7, %v4952_v6, %v4954_v49  ;;  %v4966_v18 = vsel %vm1244_vm7, %v4954_v49, %v4956_v10  ;;  %v4969_v53 = vsel %vm1244_vm7, %v4960_v46, %v4962_v50  ;;  %v4979_v40 = vsel %vm1244_vm7, %v4962_v50, %v4948_v37  ;;  %v8706_v50 = vld [vmem:[#allocation32_spill] sm:$0xff] }
 0x520   :  { %v4983_v45 = vunpack.c.l.bf16 %v4965_v5  ;;  %v4984_v51 = vunpack.c.l.bf16 %v4966_v18  ;;  %v4987_v3 = vunpack.c.l.bf16 %v4969_v53  ;;  %v4988_v20 = vunpack.c.l.bf16 %v4979_v40 }
 0x522   :  { %6066 = vmatmul.msk.bf16.vlgmr.msrb.gmra.mxu2 %vm2382_vm12, %v6059_v17  ;;  %v4992_v44 = vmul.f32 %v4984_v51, %v8699_v63  ;;  %v5151_v59 = vpop.permute.xlu2 %5150 }
 0x523   :  { %6065 = vmatmul.msk.bf16.vlgmr.msrb.gmra.mxu1 %vm2382_vm12, %v6059_v17  ;;  %6067 = vmatmul.msk.bf16.vlgmr.msrb.gmra.mxu3 %vm2382_vm12, %v6059_v17 }
 0x524   :  { %4766 = vmatpush.bf16.msrb.mxu1 %v4686_v30  ;;  %4779 = vmatpush.bf16.msrb.mxu2 %v4689_v58  ;;  %v5000_v7 = vpack.c.bf16 %v4992_v44, %v4992_v44  ;;  %v8701_v30 = vld [vmem:[#allocation30_spill] sm:$0xff] }
 0x525   :  { %4792 = vmatpush.bf16.msrb.mxu3 %v4692_v12  ;;  %v4995_v58 = vmul.f32 %v4987_v3, %v8701_v30 }
 0x526   :  { %v4950_v0 = vpop.permute.xlu1 %4949  ;;  %v5020_v34 = vsel %vm2386_vm11, %v5000_v7, 0  ;;  %v5153_v8 = vpop.permute.xlu0 %5152 }
 0x527   :  { %v4964_v28 = vsel %vm1244_vm7, %v4950_v0, %v4952_v6  ;;  %v4963_v9 = vsel %vm1244_vm7, %v4948_v37, %v4950_v0 }
 0x528   :  { %v4982_v52 = vunpack.c.l.bf16 %v4964_v28  ;;  %v4981_v35 = vunpack.c.l.bf16 %v4963_v9 }
 0x52a   :  { %6064 = vmatmul.msk.bf16.vlgmr.msrb.gmra.mxu0 %vm2382_vm12, %v6059_v17  ;;  %v8697_v17 = vld [vmem:[#allocation26_spill] sm:$0xff]  ;;  %v4990_v21 = vmul.f32 %v4982_v52, %v8698_v31  ;;  %v4989_v55 = vmul.f32 %v4981_v35, %v8700_v19  ;;  %v5147_v28 = vpop.permute.xlu2 %5146 }
 0x52b   :  { %4753 = vmatpush.bf16.msrb.mxu0 %v4683_v15  ;;  %v4991_v29 = vmul.f32 %v4983_v45, %v8697_v17 }
 0x52c   :  { %v4998_v13 = vpack.c.bf16 %v4990_v21, %v4990_v21  ;;  %v4997_v61 = vpack.c.bf16 %v4989_v55, %v4989_v55  ;;  %v8705_v21 = vld [vmem:[#allocation33_spill] sm:$0xff] }
 0x52d   :  { %v4999_v48 = vpack.c.bf16 %v4991_v29, %v4991_v29 }
 0x52e   :  { %v4958_v39 = vpop.permute.xlu1 %4957  ;;  %v5014_v32 = vsel %vm2386_vm11, %v4998_v13, 0  ;;  %v5011_v25 = vsel %vm2386_vm11, %v4997_v61, 0  ;;  %v5149_v0 = vpop.permute.xlu0 %5148 }
 0x52f   :  { %v5017_v54 = vsel %vm2386_vm11, %v4999_v48, 0  ;;  %v4968_v57 = vsel %vm1244_vm7, %v4958_v39, %v4960_v46  ;;  %v4967_v12 = vsel %vm1244_vm7, %v4956_v10, %v4958_v39  ;;  %v5162_v44 = vsel %vm1485_vm8, %v5147_v28, %v5149_v0  ;;  %v8707_v48 = vld [vmem:[#allocation34_spill] sm:$0xff] }
 0x530   :  { %v4986_v2 = vunpack.c.l.bf16 %v4968_v57  ;;  %v5180_v39 = vunpack.c.l.bf16 %v5162_v44 }
 0x532   :  { %6071 = vmatmul.msk.bf16.vlgmr.msra.gmra.mxu2 %vm2382_vm12, %v6068_v24  ;;  %v4994_v15 = vmul.f32 %v4986_v2, %v8702_v41  ;;  %v5161_v7 = vpop.permute.xlu2 %5160 }
 0x533   :  { %6070 = vmatmul.msk.bf16.vlgmr.msra.gmra.mxu1 %vm2382_vm12, %v6068_v24  ;;  %6072 = vmatmul.msk.bf16.vlgmr.msra.gmra.mxu3 %vm2382_vm12, %v6068_v24 }
 0x534   :  { %4855 = vmatpush.bf16.msra.mxu1 %v4815_v62  ;;  %4868 = vmatpush.bf16.msra.mxu2 %v4818_v22  ;;  %v4985_v22 = vunpack.c.l.bf16 %v4967_v12  ;;  %v5002_v49 = vpack.c.bf16 %v4994_v15, %v4994_v15 }
 0x535   :  { %4881 = vmatpush.bf16.msra.mxu3 %v4821_v38  ;;  %v5003_v38 = vpack.c.bf16 %v4995_v58, %v4995_v58 }
 0x536   :  { %v5026_v10 = vsel %vm2386_vm11, %v5002_v49, 0  ;;  %v5157_v3 = vpop.permute.xlu0 %5156 }
 0x537   :  { %v5029_v5 = vsel %vm2386_vm11, %v5003_v38, 0 }
 0x53a   :  { %6069 = vmatmul.msk.bf16.vlgmr.msra.gmra.mxu0 %vm2382_vm12, %v6068_v24  ;;  %v8155_v26 = vpop.f32.mrf.mxu1 }
 0x53b   :  { %4842 = vmatpush.bf16.msra.mxu0 %v4812_v16 }
 0x541   :  { %v8157_v42 = vpop.f32.mrf.mxu2 }
 0x542   :  { %6075 = vmatmul.msk.bf16.vlgmr.msrb.gmra.mxu2 %vm2382_vm12, %v6068_v24  ;;  %v4197_v60 = vpop.f32.mrf.mxu1 }
 0x543   :  { %6074 = vmatmul.msk.bf16.vlgmr.msrb.gmra.mxu1 %vm2382_vm12, %v6068_v24  ;;  %6076 = vmatmul.msk.bf16.vlgmr.msrb.gmra.mxu3 %vm2382_vm12, %v6068_v24  ;;  %v8704_v60 = vld [vmem:[#allocation29_spill] sm:$0xff] }
 0x544   :  { %4907 = vmatpush.bf16.msrb.mxu1 %v4827_v4  ;;  %4920 = vmatpush.bf16.msrb.mxu2 %v4830_v23  ;;  %v4993_v37 = vmul.f32 %v4985_v22, %v8704_v60  ;;  %v8204_v4 = vpop.permute.xlu1 %5154  ;;  %v5164_v23 = vsel %vm1485_vm8, %v5151_v59, %v5153_v8  ;;  %v8709_v60 = vld [vmem:[#allocation36_spill] sm:$0xff] }
 0x545   :  { %4933 = vmatpush.bf16.msrb.mxu3 %v4833_v11  ;;  %v5163_v11 = vsel %vm1485_vm8, %v5149_v0, %v5151_v59  ;;  %v5165_v45 = vsel %vm1485_vm8, %v5153_v8, %v8204_v4  ;;  %v5178_v59 = vsel %vm1485_vm8, %v5161_v7, %v5147_v28  ;;  %v5166_v0 = vsel %vm1485_vm8, %v8204_v4, %v5157_v3 }
 0x546   :  { %v5001_v51 = vpack.c.bf16 %v4993_v37, %v4993_v37  ;;  %v5181_v17 = vunpack.c.l.bf16 %v5163_v11  ;;  %v5183_v9 = vunpack.c.l.bf16 %v5165_v45  ;;  %v5187_v22 = vunpack.c.l.bf16 %v5178_v59 }
 0x548   :  { %v5023_v31 = vsel %vm2386_vm11, %v5001_v51, 0  ;;  %v5189_v35 = vmul.f32 %v5181_v17, %v8706_v50  ;;  %v5191_v13 = vmul.f32 %v5183_v9, %v8707_v48 }
 0x549   :  { %v4210_v27 = vpop.f32.mrf.mxu2 }
 0x54a   :  { %6073 = vmatmul.msk.bf16.vlgmr.msrb.gmra.mxu0 %vm2382_vm12, %v6068_v24  ;;  %v8703_v24 = vld [vmem:[#allocation31_spill] sm:$0xff]  ;;  %v5199_v57 = vpack.c.bf16 %v5191_v13, %v5191_v13 }
 0x54b   :  { %4894 = vmatpush.bf16.msrb.mxu0 %v4824_v33  ;;  %v4996_v62 = vmul.f32 %v4988_v20, %v8703_v24  ;;  %v5182_v33 = vunpack.c.l.bf16 %v5164_v23  ;;  %v5184_v23 = vunpack.c.l.bf16 %v5166_v0 }
 0x54d   :  { %v8178_v47 = vpop.f32.mrf.mxu3  ;;  %v5004_v16 = vpack.c.bf16 %v4996_v62, %v4996_v62  ;;  %v5190_v63 = vmul.f32 %v5182_v33, %v8705_v21  ;;  %v8270_v21 = vpop.permute.xlu0 %5353 }
 0x54f   :  { %v8183_v1 = vpop.f32.mrf.mxu1  ;;  %v5032_v18 = vsel %vm2386_vm11, %v5004_v16, 0  ;;  %v5198_v55 = vpack.c.bf16 %v5190_v63, %v5190_v63 }
 0x551   :  { %v5216_v2 = vsel %vm2386_vm11, %v5198_v55, 0 }
 0x552   :  { %6080 = vmatmul.msk.bf16.vlgmr.msra.gmra.mxu2 %vm2382_vm12, %v6077_v56 }
 0x553   :  { %6079 = vmatmul.msk.bf16.vlgmr.msra.gmra.mxu1 %vm2382_vm12, %v6077_v56  ;;  %6081 = vmatmul.msk.bf16.vlgmr.msra.gmra.mxu3 %vm2382_vm12, %v6077_v56 }
 0x554   :  { %5054 = vmatpush.bf16.msra.mxu1 %v5014_v32  ;;  %5067 = vmatpush.bf16.msra.mxu2 %v5017_v54  ;;  %v5197_v32 = vpack.c.bf16 %v5189_v35, %v5189_v35  ;;  %v5159_v54 = vpop.permute.xlu1 %5158 }
 0x555   :  { %5080 = vmatpush.bf16.msra.mxu3 %v5020_v34  ;;  %v4223_v43 = vpop.f32.mrf.mxu3  ;;  %v5167_v20 = vsel %vm1485_vm8, %v5157_v3, %v5159_v54 }
 0x556   :  { %v8708_v43 = vld [vmem:[#allocation35_spill] sm:$0xff]  ;;  %v5213_v8 = vsel %vm2386_vm11, %v5197_v32, 0  ;;  %v5185_v41 = vunpack.c.l.bf16 %v5167_v20 }
 0x557   :  { %v8195_v36 = vpop.f32.mrf.mxu0  ;;  %v4249_v14 = vpop.f32.mrf.mxu1  ;;  %v5188_v61 = vmul.f32 %v5180_v39, %v8708_v43 }
 0x558   :  { %v5219_v14 = vsel %vm2386_vm11, %v5199_v57, 0  ;;  %v5193_v37 = vmul.f32 %v5185_v41, %v8709_v60 }
 0x559   :  { %v5196_v30 = vpack.c.bf16 %v5188_v61, %v5188_v61 }
 0x55a   :  { %6078 = vmatmul.msk.bf16.vlgmr.msra.gmra.mxu0 %vm2382_vm12, %v6077_v56 }
 0x55b   :  { %5041 = vmatpush.bf16.msra.mxu0 %v5011_v25 }
 0x55c   :  { %v5350_v16 = vpop.permute.xlu1 %5349 }
 0x55f   :  { %v4184_v6 = vpop.f32.mrf.mxu0 }
 0x560   :  { %v5352_v6 = vpop.permute.xlu2 %5351 }
 0x561   :  { %v5363_v48 = vsel %vm1726_vm9, %v5350_v16, %v5352_v6 }
 0x562   :  { %6084 = vmatmul.msk.bf16.vlgmr.msrb.gmra.mxu2 %vm2382_vm12, %v6077_v56 }
 0x563   :  { %6083 = vmatmul.msk.bf16.vlgmr.msrb.gmra.mxu1 %vm2382_vm12, %v6077_v56  ;;  %6085 = vmatmul.msk.bf16.vlgmr.msrb.gmra.mxu3 %vm2382_vm12, %v6077_v56 }
 0x564   :  { %5106 = vmatpush.bf16.msrb.mxu1 %v5026_v10  ;;  %5119 = vmatpush.bf16.msrb.mxu2 %v5029_v5  ;;  %v8711_v5 = vld [vmem:[#allocation38_spill] sm:$0xff]  ;;  %v5346_v44 = vpop.permute.xlu1 %5345 }
 0x565   :  { %5132 = vmatpush.bf16.msrb.mxu3 %v5032_v18  ;;  %v8216_v52 = vpop.f32.mrf.mxu2  ;;  %v5195_v28 = vmul.f32 %v5187_v22, %v8711_v5  ;;  %v5201_v18 = vpack.c.bf16 %v5193_v37, %v5193_v37 }
 0x566   :  { %v8218_v27 = vpop.f32.mrf.mxu3 }
 0x567   :  { %v8220_v29 = vpop.f32.mrf.mxu0  ;;  %v5203_v33 = vpack.c.bf16 %v5195_v28, %v5195_v28  ;;  %v5225_v50 = vsel %vm2386_vm11, %v5201_v18, 0 }
 0x568   :  { %v5348_v63 = vpop.permute.xlu2 %5347 }
 0x569   :  { %v5362_v35 = vsel %vm1726_vm9, %v5348_v63, %v5350_v16  ;;  %v5231_v13 = vsel %vm2386_vm11, %v5203_v33, 0  ;;  %v8716_v16 = vld [vmem:[#allocation43_spill] sm:$0xff] }
 0x56a   :  { %6082 = vmatmul.msk.bf16.vlgmr.msrb.gmra.mxu0 %vm2382_vm12, %v6077_v56  ;;  %v8231_v56 = vld [vmem:[%s8507_s6 + $0x5] sm:$0x1]  ;;  %v5380_v32 = vunpack.c.l.bf16 %v5362_v35  ;;  %v8718_v35 = vld [vmem:[#allocation46_spill] sm:$0xff] }
 0x56b   :  { %5093 = vmatpush.bf16.msrb.mxu0 %v5023_v31  ;;  %v8712_v31 = vld [vmem:[#allocation37_spill] sm:$0xff] }
 0x56c   :  { %v5192_v4 = vmul.f32 %v5184_v23, %v8712_v31  ;;  %v5360_v59 = vpop.permute.xlu1 %5359 }
 0x56d   :  { %v4262_v46 = vpop.f32.mrf.mxu2  ;;  %v5377_v5 = vsel %vm1726_vm9, %v5360_v59, %v5346_v44 }
 0x56e   :  { %v4275_v19 = vpop.f32.mrf.mxu3  ;;  %v5364_v46 = vsel %vm1726_vm9, %v5352_v6, %v8270_v21  ;;  %v5200_v39 = vpack.c.bf16 %v5192_v4, %v5192_v4  ;;  %v5386_v31 = vunpack.c.l.bf16 %v5377_v5 }
 0x56f   :  { %v4236_v53 = vpop.f32.mrf.mxu0 }
 0x570   :  { %v4326_v34 = vpop.f32.mrf.mxu1  ;;  %v5222_v3 = vsel %vm2386_vm11, %v5200_v39, 0  ;;  %v5356_v0 = vpop.permute.xlu2 %5355 }
 0x571   :  { %v8234_v40 = vadd.f32 %v4326_v34, %v8155_v26  ;;  %v5168_v26 = vsel %vm1485_vm8, %v5159_v54, %v5161_v7  ;;  %v5381_v54 = vunpack.c.l.bf16 %v5363_v48  ;;  %v5382_v34 = vunpack.c.l.bf16 %v5364_v46 }
 0x572   :  { %6089 = vmatmul.msk.bf16.vlgmr.msra.gmra.mxu2 %vm2382_vm12, %v8231_v56  ;;  %v5186_v15 = vunpack.c.l.bf16 %v5168_v26  ;;  %v5361_v26 = vsel %vm1726_vm9, %v5346_v44, %v5348_v63 }
 0x573   :  { %6088 = vmatmul.msk.bf16.vlgmr.msra.gmra.mxu1 %vm2382_vm12, %v8231_v56  ;;  %6090 = vmatmul.msk.bf16.vlgmr.msra.gmra.mxu3 %vm2382_vm12, %v8231_v56 }
 0x574   :  { %5253 = vmatpush.bf16.msra.mxu1 %v5213_v8  ;;  %5266 = vmatpush.bf16.msra.mxu2 %v5216_v2  ;;  %v8713_v8 = vld [vmem:[#allocation40_spill] sm:$0xff]  ;;  %v8714_v2 = vld [vmem:[#allocation41_spill] sm:$0xff] }
 0x575   :  { %5279 = vmatpush.bf16.msra.mxu3 %v5219_v14  ;;  %v4339_v25 = vpop.f32.mrf.mxu2  ;;  %v5389_v20 = vmul.f32 %v5381_v54, %v8714_v2 }
 0x576   :  { %v8250_v58 = vadd.f32 %v4339_v25, %v8157_v42  ;;  %v4352_v12 = vpop.f32.mrf.mxu3  ;;  %v5210_v42 = vsel %vm2386_vm11, %v5196_v30, 0  ;;  %v5379_v30 = vunpack.c.l.bf16 %v5361_v26 }
 0x577   :  { %v8253_v24 = vadd.f32 %v4352_v12, %v8178_v47  ;;  %v4313_v62 = vpop.f32.mrf.mxu0  ;;  %v8710_v47 = vld [vmem:[#allocation39_spill] sm:$0xff]  ;;  %v5397_v41 = vpack.c.bf16 %v5389_v20, %v5389_v20 }
 0x578   :  { %v8256_v38 = vadd.f32 %v4313_v62, %v8195_v36  ;;  %v4328_v49 = vpop.f32.mrf.mxu1  ;;  %v5194_v10 = vmul.f32 %v5186_v15, %v8710_v47  ;;  %v8351_v20 = vpop.permute.xlu2 %5552 }
 0x579   :  { %v5358_v49 = vpop.permute.xlu0 %5357  ;;  %v5415_v37 = vsel %vm2386_vm11, %v5397_v41, 0 }
 0x57a   :  { %6087 = vmatmul.msk.bf16.vlgmr.msra.gmra.mxu0 %vm2382_vm12, %v8231_v56  ;;  %v5202_v45 = vpack.c.bf16 %v5194_v10, %v5194_v10  ;;  %v5366_v47 = vsel %vm1726_vm9, %v5356_v0, %v5358_v49 }
 0x57b   :  { %5240 = vmatpush.bf16.msra.mxu0 %v5210_v42  ;;  %v5387_v42 = vmul.f32 %v5379_v30, %v8716_v16  ;;  %v5384_v18 = vunpack.c.l.bf16 %v5366_v47  ;;  %v8722_v47 = vld [vmem:[#allocation48_spill] sm:$0xff] }
 0x57d   :  { %v4341_v36 = vpop.f32.mrf.mxu2 }
 0x57e   :  { %v4354_v11 = vpop.f32.mrf.mxu3  ;;  %v5395_v36 = vpack.c.bf16 %v5387_v42, %v5387_v42 }
 0x57f   :  { %v4315_v51 = vpop.f32.mrf.mxu0 }
 0x580   :  { %v4378_v17 = vpop.f32.mrf.mxu1  ;;  %v5551_v51 = vpop.permute.xlu1 %5550  ;;  %v5409_v44 = vsel %vm2386_vm11, %v5395_v36, 0 }
 0x581   :  { %v8267_v9 = vadd.f32 %v4378_v17, %v8183_v1  ;;  %v5228_v1 = vsel %vm2386_vm11, %v5202_v45, 0  ;;  %v5549_v46 = vpop.permute.xlu0 %5548 }
 0x582   :  { %6093 = vmatmul.msk.bf16.vlgmr.msrb.gmra.mxu2 %vm2382_vm12, %v8231_v56 }
 0x583   :  { %6092 = vmatmul.msk.bf16.vlgmr.msrb.gmra.mxu1 %vm2382_vm12, %v8231_v56  ;;  %6094 = vmatmul.msk.bf16.vlgmr.msrb.gmra.mxu3 %vm2382_vm12, %v8231_v56 }
 0x584   :  { %5305 = vmatpush.bf16.msrb.mxu1 %v5225_v50  ;;  %5318 = vmatpush.bf16.msrb.mxu2 %v5228_v1  ;;  %v8717_v50 = vld [vmem:[#allocation44_spill] sm:$0xff] }
 0x585   :  { %5331 = vmatpush.bf16.msrb.mxu3 %v5231_v13  ;;  %v4391_v7 = vpop.f32.mrf.mxu2  ;;  %v5392_v1 = vmul.f32 %v5384_v18, %v8717_v50  ;;  %v5557_v50 = vpop.permute.xlu2 %5556 }
 0x586   :  { %v8286_v19 = vadd.f32 %v4391_v7, %v8216_v52  ;;  %v4404_v55 = vpop.f32.mrf.mxu3  ;;  %v5388_v52 = vmul.f32 %v5380_v32, %v8713_v8 }
 0x587   :  { %v8289_v53 = vadd.f32 %v4404_v55, %v8218_v27  ;;  %v4365_v57 = vpop.f32.mrf.mxu0  ;;  %v8715_v27 = vld [vmem:[#allocation42_spill] sm:$0xff]  ;;  %v5400_v55 = vpack.c.bf16 %v5392_v1, %v5392_v1 }
 0x588   :  { %v8292_v43 = vadd.f32 %v4365_v57, %v8220_v29  ;;  %v4380_v61 = vpop.f32.mrf.mxu1  ;;  %v5390_v14 = vmul.f32 %v5382_v34, %v8715_v27  ;;  %v5396_v12 = vpack.c.bf16 %v5388_v52, %v5388_v52 }
 0x589   :  { %v5547_v61 = vpop.permute.xlu1 %5546  ;;  %v5424_v52 = vsel %vm2386_vm11, %v5400_v55, 0 }
 0x58a   :  { %6091 = vmatmul.msk.bf16.vlgmr.msrb.gmra.mxu0 %vm2382_vm12, %v8231_v56  ;;  %v8304_v56 = vld [vmem:[%s8507_s6 + $0x6] sm:$0x1]  ;;  %v5398_v62 = vpack.c.bf16 %v5390_v14, %v5390_v14  ;;  %v5412_v60 = vsel %vm2386_vm11, %v5396_v12, 0  ;;  %v5561_v26 = vsel %vm1967_vm10, %v5547_v61, %v5549_v46  ;;  %v5563_v14 = vsel %vm1967_vm10, %v5551_v51, %v8351_v20  ;;  %v5545_v12 = vpop.permute.xlu0 %5544 }
 0x58b   :  { %5292 = vmatpush.bf16.msrb.mxu0 %v5222_v3 }
 0x58c   :  { %v5418_v10 = vsel %vm2386_vm11, %v5398_v62, 0 }
 0x58d   :  { %v4393_v25 = vpop.f32.mrf.mxu2 }
 0x58e   :  { %v4406_v29 = vpop.f32.mrf.mxu3 }
 0x58f   :  { %v4367_v15 = vpop.f32.mrf.mxu0 }
 0x590   :  { %v4517_v22 = vpop.f32.mrf.mxu1  ;;  %v5579_v15 = vunpack.c.l.bf16 %v5561_v26 }
 0x591   :  { %v8307_v6 = vadd.f32 %v4517_v22, %v8234_v40  ;;  %v5367_v40 = vsel %vm1726_vm9, %v5358_v49, %v5360_v59  ;;  %v5581_v49 = vunpack.c.l.bf16 %v5563_v14 }
 0x592   :  { %6098 = vmatmul.msk.bf16.vlgmr.msra.gmra.mxu2 %vm2382_vm12, %v8304_v56  ;;  %v5385_v45 = vunpack.c.l.bf16 %v5367_v40  ;;  %v5587_v40 = vmul.f32 %v5579_v15, %v8722_v47 }
 0x593   :  { %6097 = vmatmul.msk.bf16.vlgmr.msra.gmra.mxu1 %vm2382_vm12, %v8304_v56  ;;  %6099 = vmatmul.msk.bf16.vlgmr.msra.gmra.mxu3 %vm2382_vm12, %v8304_v56 }
 0x594   :  { %5452 = vmatpush.bf16.msra.mxu1 %v5412_v60  ;;  %5465 = vmatpush.bf16.msra.mxu2 %v5415_v37  ;;  %v5393_v48 = vmul.f32 %v5385_v45, %v8718_v35  ;;  %v5560_v37 = vsel %vm1967_vm10, %v5545_v12, %v5547_v61 }
 0x595   :  { %5478 = vmatpush.bf16.msra.mxu3 %v5418_v10  ;;  %v4530_v28 = vpop.f32.mrf.mxu2 }
 0x596   :  { %v8323_v23 = vadd.f32 %v4530_v28, %v8250_v58  ;;  %v4543_v11 = vpop.f32.mrf.mxu3  ;;  %v5365_v58 = vsel %vm1726_vm9, %v8270_v21, %v5356_v0  ;;  %v5401_v32 = vpack.c.bf16 %v5393_v48, %v5393_v48  ;;  %v8720_v21 = vld [vmem:[#allocation45_spill] sm:$0xff]  ;;  %v5578_v28 = vunpack.c.l.bf16 %v5560_v37 }
 0x597   :  { %v8326_v33 = vadd.f32 %v4543_v11, %v8253_v24  ;;  %v4504_v17 = vpop.f32.mrf.mxu0  ;;  %v8719_v24 = vld [vmem:[#allocation47_spill] sm:$0xff]  ;;  %v5595_v11 = vpack.c.bf16 %v5587_v40, %v5587_v40 }
 0x598   :  { %v8329_v4 = vadd.f32 %v4504_v17, %v8256_v38  ;;  %v4519_v63 = vpop.f32.mrf.mxu1  ;;  %v5394_v13 = vmul.f32 %v5386_v31, %v8719_v24  ;;  %v5383_v38 = vunpack.c.l.bf16 %v5365_v58  ;;  %v5427_v2 = vsel %vm2386_vm11, %v5401_v32, 0  ;;  %v5559_v17 = vpop.permute.xlu0 %5558 }
 0x599   :  { %v5555_v31 = vpop.permute.xlu1 %5554  ;;  %v5611_v1 = vsel %vm2386_vm11, %v5595_v11, 0  ;;  %v5566_v48 = vsel %vm1967_vm10, %v5557_v50, %v5559_v17 }
 0x59a   :  { %6096 = vmatmul.msk.bf16.vlgmr.msra.gmra.mxu0 %vm2382_vm12, %v8304_v56  ;;  %v5402_v57 = vpack.c.bf16 %v5394_v13, %v5394_v13  ;;  %v5391_v8 = vmul.f32 %v5383_v38, %v8720_v21  ;;  %v5576_v13 = vsel %vm1967_vm10, %v5559_v17, %v5545_v12  ;;  %v5584_v55 = vunpack.c.l.bf16 %v5566_v48 }
 0x59b   :  { %5439 = vmatpush.bf16.msra.mxu0 %v5409_v44  ;;  %v8724_v44 = vld [vmem:[#allocation51_spill] sm:$0xff] }
 0x59c   :  { %v5430_v27 = vsel %vm2386_vm11, %v5402_v57, 0  ;;  %v5399_v25 = vpack.c.bf16 %v5391_v8, %v5391_v8  ;;  %v5586_v58 = vmul.f32 %v5578_v28, %v8724_v44 }
 0x59d   :  { %v4532_v7 = vpop.f32.mrf.mxu2 }
 0x59e   :  { %v4545_v39 = vpop.f32.mrf.mxu3  ;;  %v5421_v0 = vsel %vm2386_vm11, %v5399_v25, 0  ;;  %v5594_v7 = vpack.c.bf16 %v5586_v58, %v5586_v58 }
 0x59f   :  { %v4506_v54 = vpop.f32.mrf.mxu0 }
 0x5a0   :  { %v4569_v34 = vpop.f32.mrf.mxu1  ;;  %v5608_v8 = vsel %vm2386_vm11, %v5594_v7, 0 }
 0x5a1   :  { %v8340_v3 = vadd.f32 %v4569_v34, %v8267_v9  ;;  %v5562_v9 = vsel %vm1967_vm10, %v5549_v46, %v5551_v51  ;;  %v5585_v34 = vunpack.c.l.bf16 %v5576_v13 }
 0x5a2   :  { %6102 = vmatmul.msk.bf16.vlgmr.msrb.gmra.mxu2 %vm2382_vm12, %v8304_v56  ;;  %v5580_v41 = vunpack.c.l.bf16 %v5562_v9  ;;  %v8726_v9 = vld [vmem:[#allocation52_spill] sm:$0xff] }
 0x5a3   :  { %6101 = vmatmul.msk.bf16.vlgmr.msrb.gmra.mxu1 %vm2382_vm12, %v8304_v56  ;;  %6103 = vmatmul.msk.bf16.vlgmr.msrb.gmra.mxu3 %vm2382_vm12, %v8304_v56 }
 0x5a4   :  { %5504 = vmatpush.bf16.msrb.mxu1 %v5424_v52  ;;  %5517 = vmatpush.bf16.msrb.mxu2 %v5427_v2  ;;  %v8725_v52 = vld [vmem:[#allocation54_spill] sm:$0xff] }
 0x5a5   :  { %5530 = vmatpush.bf16.msrb.mxu3 %v5430_v27  ;;  %v4582_v59 = vpop.f32.mrf.mxu2  ;;  %v5592_v2 = vmul.f32 %v5584_v55, %v8725_v52  ;;  %v8727_v27 = vld [vmem:[#allocation55_spill] sm:$0xff] }
 0x5a6   :  { %v8359_v30 = vadd.f32 %v4582_v59, %v8286_v19  ;;  %v4595_v29 = vpop.f32.mrf.mxu3  ;;  %v8721_v19 = vld [vmem:[#allocation49_spill] sm:$0xff] }
 0x5a7   :  { %v8362_v62 = vadd.f32 %v4595_v29, %v8289_v53  ;;  %v4556_v22 = vpop.f32.mrf.mxu0  ;;  %v5588_v60 = vmul.f32 %v5580_v41, %v8721_v19  ;;  %v8723_v53 = vld [vmem:[#allocation50_spill] sm:$0xff] }
 0x5a8   :  { %v8365_v16 = vadd.f32 %v4556_v22, %v8292_v43  ;;  %v4571_v42 = vpop.f32.mrf.mxu1  ;;  %v5589_v10 = vmul.f32 %v5581_v49, %v8723_v53  ;;  %v8728_v49 = vld [vmem:[#allocation53_spill] sm:$0xff] }
 0x5a9   :  { %v5596_v43 = vpack.c.bf16 %v5588_v60, %v5588_v60 }
 0x5aa   :  { %6100 = vmatmul.msk.bf16.vlgmr.msrb.gmra.mxu0 %vm2382_vm12, %v8304_v56  ;;  %v8377_v56 = vld [vmem:[%s8507_s6 + $0x7] sm:$0x1]  ;;  %v5597_v45 = vpack.c.bf16 %v5589_v10, %v5589_v10 }
 0x5ab   :  { %5491 = vmatpush.bf16.msrb.mxu0 %v5421_v0  ;;  %v5614_v35 = vsel %vm2386_vm11, %v5596_v43, 0 }
 0x5ac   :  { %v5617_v24 = vsel %vm2386_vm11, %v5597_v45, 0  ;;  %v5743_v45 = vld [vmem:[#allocation2] sm:$0x1] }
 0x5ad   :  { %v4584_v5 = vpop.f32.mrf.mxu2  ;;  %5746 = vperm.xlu2 %6134, %v5743_v45  }
 0x5ae   :  { %v4597_v36 = vpop.f32.mrf.mxu3 }
 0x5af   :  { %v4558_v18 = vpop.f32.mrf.mxu0 }
 0x5b0   :  { %v4716_v51 = vpop.f32.mrf.mxu1 }
 0x5b1   :  { %v8380_v63 = vadd.f32 %v4716_v51, %v8307_v6  ;;  %v5565_v6 = vsel %vm1967_vm10, %v5555_v31, %v5557_v50 }
 0x5b2   :  { %6107 = vmatmul.msk.bf16.vlgmr.msra.gmra.mxu2 %vm2382_vm12, %v8377_v56  ;;  %v5583_v32 = vunpack.c.l.bf16 %v5565_v6 }
 0x5b3   :  { %6106 = vmatmul.msk.bf16.vlgmr.msra.gmra.mxu1 %vm2382_vm12, %v8377_v56  ;;  %6108 = vmatmul.msk.bf16.vlgmr.msra.gmra.mxu3 %vm2382_vm12, %v8377_v56 }
 0x5b4   :  { %5651 = vmatpush.bf16.msra.mxu1 %v5611_v1  ;;  %5664 = vmatpush.bf16.msra.mxu2 %v5614_v35  ;;  %v5591_v26 = vmul.f32 %v5583_v32, %v8726_v9 }
 0x5b5   :  { %5677 = vmatpush.bf16.msra.mxu3 %v5617_v24  ;;  %v4729_v46 = vpop.f32.mrf.mxu2 }
 0x5b6   :  { %v4800_v38 = vadd.f32 %v4729_v46, %v8323_v23  ;;  %v4742_v39 = vpop.f32.mrf.mxu3  ;;  %v5564_v23 = vsel %vm1967_vm10, %v8351_v20, %v5555_v31  ;;  %v5599_v29 = vpack.c.bf16 %v5591_v26, %v5591_v26 }
 0x5b7   :  { %v4801_v54 = vadd.f32 %v4742_v39, %v8326_v33  ;;  %v4703_v57 = vpop.f32.mrf.mxu0  ;;  %v5593_v33 = vmul.f32 %v5585_v34, %v8727_v27  ;;  %v5582_v59 = vunpack.c.l.bf16 %v5564_v23 }
 0x5b8   :  { %v4798_v61 = vadd.f32 %v4703_v57, %v8329_v4  ;;  %v4718_v21 = vpop.f32.mrf.mxu1  ;;  %v5600_v4 = vpack.c.bf16 %v5592_v2, %v5592_v2  ;;  %v5623_v20 = vsel %vm2386_vm11, %v5599_v29, 0 }
 0x5b9   :  { %v5601_v41 = vpack.c.bf16 %v5593_v33, %v5593_v33  ;;  %v5590_v42 = vmul.f32 %v5582_v59, %v8728_v49 }
 0x5ba   :  { %6105 = vmatmul.msk.bf16.vlgmr.msra.gmra.mxu0 %vm2382_vm12, %v8377_v56  ;;  %v5626_v0 = vsel %vm2386_vm11, %v5600_v4, 0 }
 0x5bb   :  { %5638 = vmatpush.bf16.msra.mxu0 %v5608_v8  ;;  %v5629_v19 = vsel %vm2386_vm11, %v5601_v41, 0  ;;  %v5598_v60 = vpack.c.bf16 %v5590_v42, %v5590_v42 }
 0x5bd   :  { %v4731_v14 = vpop.f32.mrf.mxu2  ;;  %v5620_v28 = vsel %vm2386_vm11, %v5598_v60, 0 }
 0x5be   :  { %v4744_v25 = vpop.f32.mrf.mxu3 }
 0x5bf   :  { %v4705_v12 = vpop.f32.mrf.mxu0 }
 0x5c0   :  { %v4768_v15 = vpop.f32.mrf.mxu1 }
 0x5c1   :  { %v4803_v22 = vadd.f32 %v4768_v15, %v8340_v3 }
 0x5c2   :  { %6111 = vmatmul.msk.bf16.vlgmr.msrb.gmra.mxu2 %vm2382_vm12, %v8377_v56 }
 0x5c3   :  { %6110 = vmatmul.msk.bf16.vlgmr.msrb.gmra.mxu1 %vm2382_vm12, %v8377_v56  ;;  %6112 = vmatmul.msk.bf16.vlgmr.msrb.gmra.mxu3 %vm2382_vm12, %v8377_v56 }
 0x5c4   :  { %5703 = vmatpush.bf16.msrb.mxu1 %v5623_v20  ;;  %5716 = vmatpush.bf16.msrb.mxu2 %v5626_v0 }
 0x5c5   :  { %5729 = vmatpush.bf16.msrb.mxu3 %v5629_v19  ;;  %v4781_v3 = vpop.f32.mrf.mxu2 }
 0x5c6   :  { %v4804_v37 = vadd.f32 %v4781_v3, %v8359_v30  ;;  %v4794_v47 = vpop.f32.mrf.mxu3  ;;  %v6113_v30 = vld [vmem:[%s8507_s6 + $0x8] sm:$0x1]  ;;  %s6203_s6 = smov [#allocation3]  }
 0x5c7   :  { %v4805_v40 = vadd.f32 %v4794_v47, %v8362_v62  ;;  %v4755_v53 = vpop.f32.mrf.mxu0  ;;  %s5871_s23 = sshll.u32 %s6203_s6, 4  ;;  %s5872_s23 = int_to_ptr.vmem [resolvable:$true] %s5871_s23 }
 0x5c8   :  { %v4802_v10 = vadd.f32 %v4755_v53, %v8365_v16  ;;  %v4770_v5 = vpop.f32.mrf.mxu1 }
 0x5ca   :  { %6109 = vmatmul.msk.bf16.vlgmr.msrb.gmra.mxu0 %vm2382_vm12, %v8377_v56 }
 0x5cb   :  { %5690 = vmatpush.bf16.msrb.mxu0 %v5620_v28 }
 0x5cd   :  { %v4783_v36 = vpop.f32.mrf.mxu2 }
 0x5ce   :  { %v4796_v43 = vpop.f32.mrf.mxu3 }
 0x5cf   :  { %v4757_v11 = vpop.f32.mrf.mxu0 }
 0x5d0   :  { %v4857_v18 = vpop.f32.mrf.mxu1 }
 0x5d1   :  { %v4940_v62 = vadd.f32 %v4857_v18, %v8380_v63 }
 0x5d2   :  { %6116 = vmatmul.msk.bf16.vlgmr.msra.gmra.mxu2 %vm2382_vm12, %v6113_v30 }
 0x5d3   :  { %6115 = vmatmul.msk.bf16.vlgmr.msra.gmra.mxu1 %vm2382_vm12, %v6113_v30  ;;  %6117 = vmatmul.msk.bf16.vlgmr.msra.gmra.mxu3 %vm2382_vm12, %v6113_v30 }
 0x5d5   :  { %v4870_v16 = vpop.f32.mrf.mxu2 }
 0x5d6   :  { %v4941_v56 = vadd.f32 %v4870_v16, %v4800_v38  ;;  %v4883_v51 = vpop.f32.mrf.mxu3 }
 0x5d7   :  { %v4942_v17 = vadd.f32 %v4883_v51, %v4801_v54  ;;  %v4844_v31 = vpop.f32.mrf.mxu0 }
 0x5d8   :  { %v4939_v44 = vadd.f32 %v4844_v31, %v4798_v61  ;;  %v4859_v58 = vpop.f32.mrf.mxu1 }
 0x5da   :  { %6114 = vmatmul.msk.bf16.vlgmr.msra.gmra.mxu0 %vm2382_vm12, %v6113_v30 }
 0x5dd   :  { %v4872_v50 = vpop.f32.mrf.mxu2 }
 0x5de   :  { %v4885_v1 = vpop.f32.mrf.mxu3 }
 0x5df   :  { %v4846_v63 = vpop.f32.mrf.mxu0 }
 0x5e0   :  { %v4909_v35 = vpop.f32.mrf.mxu1 }
 0x5e1   :  { %v4944_v48 = vadd.f32 %v4909_v35, %v4803_v22 }
 0x5e2   :  { %6120 = vmatmul.msk.bf16.vlgmr.msrb.gmra.mxu2 %vm2382_vm12, %v6113_v30 }
 0x5e3   :  { %6119 = vmatmul.msk.bf16.vlgmr.msrb.gmra.mxu1 %vm2382_vm12, %v6113_v30  ;;  %6121 = vmatmul.msk.bf16.vlgmr.msrb.gmra.mxu3 %vm2382_vm12, %v6113_v30 }
 0x5e5   :  { %v4922_v6 = vpop.f32.mrf.mxu2 }
 0x5e6   :  { %v4945_v24 = vadd.f32 %v4922_v6, %v4804_v37  ;;  %v4935_v13 = vpop.f32.mrf.mxu3 }
 0x5e7   :  { %v4946_v46 = vadd.f32 %v4935_v13, %v4805_v40  ;;  %v4896_v7 = vpop.f32.mrf.mxu0 }
 0x5e8   :  { %v4943_v38 = vadd.f32 %v4896_v7, %v4802_v10  ;;  %v4911_v39 = vpop.f32.mrf.mxu1 }
 0x5ea   :  { %6118 = vmatmul.msk.bf16.vlgmr.msrb.gmra.mxu0 %vm2382_vm12, %v6113_v30 }
 0x5ed   :  { %v4924_v55 = vpop.f32.mrf.mxu2 }
 0x5ee   :  { %v4937_v32 = vpop.f32.mrf.mxu3 }
 0x5ef   :  { %v4898_v54 = vpop.f32.mrf.mxu0 }
 0x5f0   :  { %v5056_v57 = vpop.f32.mrf.mxu1 }
 0x5f1   :  { %v5139_v34 = vadd.f32 %v5056_v57, %v4940_v62 }
 0x5f5   :  { %v5069_v61 = vpop.f32.mrf.mxu2 }
 0x5f6   :  { %v5140_v21 = vadd.f32 %v5069_v61, %v4941_v56  ;;  %v5082_v8 = vpop.f32.mrf.mxu3 }
 0x5f7   :  { %v5141_v52 = vadd.f32 %v5082_v8, %v4942_v17  ;;  %v5043_v2 = vpop.f32.mrf.mxu0 }
 0x5f8   :  { %v5138_v23 = vadd.f32 %v5043_v2, %v4939_v44  ;;  %v5058_v9 = vpop.f32.mrf.mxu1 }
 0x5fd   :  { %v5071_v26 = vpop.f32.mrf.mxu2 }
 0x5fe   :  { %v5084_v27 = vpop.f32.mrf.mxu3 }
 0x5ff   :  { %v5045_v33 = vpop.f32.mrf.mxu0 }
 0x600   :  { %v5108_v14 = vpop.f32.mrf.mxu1 }
 0x601   :  { %v5143_v59 = vadd.f32 %v5108_v14, %v4944_v48 }
 0x605   :  { %v5121_v25 = vpop.f32.mrf.mxu2 }
 0x606   :  { %v8435_v4 = vadd.f32 %v5121_v25, %v4945_v24  ;;  %v5134_v29 = vpop.f32.mrf.mxu3 }
 0x607   :  { %v8437_v12 = vadd.f32 %v5134_v29, %v4946_v46  ;;  %v5095_v41 = vpop.f32.mrf.mxu0  ;;  %v5747_v7 = vpop.permute.xlu2 %5746 }
 0x608   :  { %v8439_v15 = vadd.f32 %v5095_v41, %v4943_v38  ;;  %v5110_v22 = vpop.f32.mrf.mxu1  ;;  %v8447_v32 = vperm.slane %v5747_v7, 0 }
 0x60d   :  { %v5123_v49 = vpop.f32.mrf.mxu2 }
 0x60e   :  { %v5136_v42 = vpop.f32.mrf.mxu3 }
 0x60f   :  { %v5097_v20 = vpop.f32.mrf.mxu0 }
 0x610   :  { %v5255_v0 = vpop.f32.mrf.mxu1 }
 0x611   :  { %v5338_v19 = vadd.f32 %v5255_v0, %v5139_v34 }
 0x615   :  { %v5268_v3 = vpop.f32.mrf.mxu2 }
 0x616   :  { %v5339_v60 = vadd.f32 %v5268_v3, %v5140_v21  ;;  %v5281_v37 = vpop.f32.mrf.mxu3 }
 0x617   :  { %v5340_v47 = vadd.f32 %v5281_v37, %v5141_v52  ;;  %v5242_v40 = vpop.f32.mrf.mxu0 }
 0x618   :  { %v5337_v53 = vadd.f32 %v5242_v40, %v5138_v23  ;;  %v5257_v10 = vpop.f32.mrf.mxu1 }
 0x61d   :  { %v5270_v5 = vpop.f32.mrf.mxu2 }
 0x61e   :  { %v5283_v28 = vpop.f32.mrf.mxu3 }
 0x61f   :  { %v5244_v36 = vpop.f32.mrf.mxu0 }
 0x620   :  { %v5307_v43 = vpop.f32.mrf.mxu1 }
 0x621   :  { %v5342_v11 = vadd.f32 %v5307_v43, %v5143_v59 }
 0x625   :  { %v8441_v30 = vpop.f32.mrf.mxu2 }
 0x626   :  { %v8443_v18 = vpop.f32.mrf.mxu3 }
 0x627   :  { %v8445_v62 = vpop.f32.mrf.mxu0 }
 0x628   :  { %v5309_v45 = vpop.f32.mrf.mxu1 }
 0x62d   :  { %v5322_v16 = vpop.f32.mrf.mxu2 }
 0x62e   :  { %v5335_v56 = vpop.f32.mrf.mxu3  ;;  %v5343_v16 = vadd.f32 %v8441_v30, %v8435_v4 }
 0x62f   :  { %v5296_v51 = vpop.f32.mrf.mxu0 }
 0x630   :  { %v5454_v17 = vpop.f32.mrf.mxu1  ;;  %v5344_v51 = vadd.f32 %v8443_v18, %v8437_v12 }
 0x631   :  { %v5537_v55 = vadd.f32 %v5454_v17, %v5338_v19 }
 0x635   :  { %v5467_v31 = vpop.f32.mrf.mxu2 }
 0x636   :  { %v5480_v44 = vpop.f32.mrf.mxu3  ;;  %v5538_v21 = vadd.f32 %v5467_v31, %v5339_v60 }
 0x637   :  { %v5441_v58 = vpop.f32.mrf.mxu0  ;;  %v5539_v8 = vadd.f32 %v5480_v44, %v5340_v47 }
 0x638   :  { %v5456_v50 = vpop.f32.mrf.mxu1  ;;  %v5536_v23 = vadd.f32 %v5441_v58, %v5337_v53 }
 0x63d   :  { %v5469_v1 = vpop.f32.mrf.mxu2 }
 0x63e   :  { %v5482_v63 = vpop.f32.mrf.mxu3 }
 0x63f   :  { %v5443_v35 = vpop.f32.mrf.mxu0 }
 0x640   :  { %v5506_v48 = vpop.f32.mrf.mxu1 }
 0x641   :  { %v5541_v53 = vadd.f32 %v5506_v48, %v5342_v11  ;;  %v5341_v11 = vadd.f32 %v8445_v62, %v8439_v15 }
 0x645   :  { %v5519_v6 = vpop.f32.mrf.mxu2 }
 0x646   :  { %v5532_v24 = vpop.f32.mrf.mxu3  ;;  %v5542_v31 = vadd.f32 %v5519_v6, %v5343_v16 }
 0x647   :  { %v5493_v13 = vpop.f32.mrf.mxu0  ;;  %v5543_v44 = vadd.f32 %v5532_v24, %v5344_v51 }
 0x648   :  { %v5508_v46 = vpop.f32.mrf.mxu1  ;;  %v5540_v63 = vadd.f32 %v5493_v13, %v5341_v11 }
 0x64d   :  { %v5521_v38 = vpop.f32.mrf.mxu2 }
 0x64e   :  { %v5534_v39 = vpop.f32.mrf.mxu3 }
 0x64f   :  { %v5495_v54 = vpop.f32.mrf.mxu0 }
 0x650   :  { %v5653_v57 = vpop.f32.mrf.mxu1 }
 0x651   :  { %v5736_v34 = vadd.f32 %v5653_v57, %v5537_v55 }
 0x653   :  { %v8450_v61 = vadd.f32 %v8447_v32, %v5736_v34 }
 0x655   :  { %v5666_v52 = vpop.f32.mrf.mxu2  ;;  %v5767_v2 = vand.u32 2147483647, %v8450_v61 }
 0x656   :  { %v5737_v9 = vadd.f32 %v5666_v52, %v5538_v21  ;;  %v5679_v26 = vpop.f32.mrf.mxu3 }
 0x657   :  { %v5738_v27 = vadd.f32 %v5679_v26, %v5539_v8  ;;  %v5640_v33 = vpop.f32.mrf.mxu0  ;;  %v5775_v14 = vsub.f32 0.0, %v5767_v2  ;;  %v5759_v2 = vmax.f32 %v8450_v61, 0.0 }
 0x658   :  { %v8454_v59 = vadd.f32 %v8447_v32, %v5737_v9  ;;  %v5735_v25 = vadd.f32 %v5640_v33, %v5536_v23  ;;  %v5655_v29 = vpop.f32.mrf.mxu1 }
 0x659   :  { %v8457_v41 = vadd.f32 %v8447_v32, %v5738_v27  ;;  %v5784_v22 = vmul.f32 1.442695, %v5775_v14 }
 0x65a   :  { %v5768_v49 = vand.u32 2147483647, %v8454_v59  ;;  %v8461_v42 = vadd.f32 %v8447_v32, %v5735_v25 }
 0x65b   :  { %v5769_v20 = vand.u32 2147483647, %v8457_v41  ;;  %6135 = vpow2.f32 %v5784_v22 }
 0x65c   :  { %v5776_v0 = vsub.f32 0.0, %v5768_v49  ;;  %v5766_v19 = vand.u32 2147483647, %v8461_v42  ;;  %v5760_v49 = vmax.f32 %v8454_v59, 0.0  ;;  %v5758_v61 = vmax.f32 %v8461_v42, 0.0 }
 0x65d   :  { %v5777_v3 = vsub.f32 0.0, %v5769_v20  ;;  %v5668_v60 = vpop.f32.mrf.mxu2 }
 0x65e   :  { %v5786_v37 = vmul.f32 1.442695, %v5776_v0  ;;  %v5774_v47 = vsub.f32 0.0, %v5766_v19  ;;  %v5681_v40 = vpop.f32.mrf.mxu3 }
 0x65f   :  { %v5788_v10 = vmul.f32 1.442695, %v5777_v3  ;;  %v5642_v5 = vpop.f32.mrf.mxu0  ;;  %v5761_v3 = vmax.f32 %v8457_v41, 0.0 }
 0x660   :  { %6137 = vpow2.f32 %v5786_v37  ;;  %v5782_v28 = vmul.f32 1.442695, %v5774_v47  ;;  %v5705_v36 = vpop.f32.mrf.mxu1 }
 0x661   :  { %v6136_v43 = vpop.eup %6135  ;;  %6139 = vpow2.f32 %v5788_v10  ;;  %v5740_v45 = vadd.f32 %v5705_v36, %v5541_v53 }
 0x662   :  { %6141 = vpow2.f32 %v5782_v28  ;;  %v5799_v56 = vadd.f32 1.0, %v6136_v43 }
 0x663   :  { %v8470_v17 = vadd.f32 %v8447_v32, %v5740_v45 }
 0x664   :  { %6143 = vlog2.f32 %v5799_v56 }
 0x665   :  { %v5771_v58 = vand.u32 2147483647, %v8470_v17  ;;  %v5718_v50 = vpop.f32.mrf.mxu2 }
 0x666   :  { %v6138_v1 = vpop.eup %6137  ;;  %v5741_v4 = vadd.f32 %v5718_v50, %v5542_v31  ;;  %v5731_v30 = vpop.f32.mrf.mxu3 }
 0x667   :  { %v6140_v35 = vpop.eup %6139  ;;  %v5800_v48 = vadd.f32 1.0, %v6138_v1  ;;  %v5779_v46 = vsub.f32 0.0, %v5771_v58  ;;  %v5742_v12 = vadd.f32 %v5731_v30, %v5543_v44  ;;  %v5692_v18 = vpop.f32.mrf.mxu0  ;;  %v5763_v30 = vmax.f32 %v8470_v17, 0.0 }
 0x668   :  { %v6142_v7 = vpop.eup %6141  ;;  %v5801_v38 = vadd.f32 1.0, %v6140_v35  ;;  %v8476_v39 = vadd.f32 %v8447_v32, %v5741_v4  ;;  %v5739_v15 = vadd.f32 %v5692_v18, %v5540_v63  ;;  %v5707_v62 = vpop.f32.mrf.mxu1 }
 0x669   :  { %6145 = vlog2.f32 %v5800_v48  ;;  %v5798_v6 = vadd.f32 1.0, %v6142_v7  ;;  %v5792_v24 = vmul.f32 1.442695, %v5779_v46  ;;  %v8479_v55 = vadd.f32 %v8447_v32, %v5742_v12 }
 0x66a   :  { %v6144_v13 = vpop.eup %6143  ;;  %6147 = vlog2.f32 %v5801_v38  ;;  %v5772_v54 = vand.u32 2147483647, %v8476_v39  ;;  %v8483_v57 = vadd.f32 %v8447_v32, %v5739_v15  ;;  %v5764_v12 = vmax.f32 %v8476_v39, 0.0 }
 0x66b   :  { %6149 = vlog2.f32 %v5798_v6  ;;  %v5773_v34 = vand.u32 2147483647, %v8479_v55  ;;  %v5809_v21 = vmul.f32 0.6931472, %v6144_v13  ;;  %v5765_v38 = vmax.f32 %v8479_v55, 0.0 }
 0x66c   :  { %6151 = vpow2.f32 %v5792_v24  ;;  %v5780_v8 = vsub.f32 0.0, %v5772_v54  ;;  %v5770_v52 = vand.u32 2147483647, %v8483_v57  ;;  %v5762_v6 = vmax.f32 %v8483_v57, 0.0 }
 0x66d   :  { %v5781_v23 = vsub.f32 0.0, %v5773_v34  ;;  %v5720_v9 = vpop.f32.mrf.mxu2  ;;  %v5823_v14 = vadd.f32 %v5809_v21, %v5759_v2 }
 0x66e   :  { %v5794_v26 = vmul.f32 1.442695, %v5780_v8  ;;  %v5778_v27 = vsub.f32 0.0, %v5770_v52  ;;  %v5733_v33 = vpop.f32.mrf.mxu3 }
 0x66f   :  { %v6146_v25 = vpop.eup %6145  ;;  %v5796_v29 = vmul.f32 1.442695, %v5781_v23  ;;  %v5694_v32 = vpop.f32.mrf.mxu0  ;;  %v5831_v53 = vadd.f32 0.01, %v5823_v14 }
 0x670   :  { %v6148_v22 = vpop.eup %6147  ;;  %v5811_v20 = vmul.f32 0.6931472, %v6146_v25  ;;  %6153 = vpow2.f32 %v5794_v26  ;;  %v5790_v0 = vmul.f32 1.442695, %v5778_v27 }
 0x671   :  { %v6150_v19 = vpop.eup %6149  ;;  %v5813_v60 = vmul.f32 0.6931472, %v6148_v22  ;;  %6155 = vpow2.f32 %v5796_v29  ;;  %v5846_v56 = vrot.slane %v5831_v53, 7 }
 0x672   :  { %v6152_v37 = vpop.eup %6151  ;;  %v5824_v47 = vadd.f32 %v5811_v20, %v5760_v49  ;;  %v5807_v40 = vmul.f32 0.6931472, %v6150_v19  ;;  %6157 = vpow2.f32 %v5790_v0 }
 0x673   :  { %v5825_v10 = vadd.f32 %v5813_v60, %v5761_v3  ;;  %v5803_v5 = vadd.f32 1.0, %v6152_v37 }
 0x674   :  { %v5832_v28 = vadd.f32 0.01, %v5824_v47  ;;  %v5822_v36 = vadd.f32 %v5807_v40, %v5758_v61 }
 0x675   :  { %v5833_v59 = vadd.f32 0.01, %v5825_v10  ;;  %6159 = vlog2.f32 %v5803_v5 }
 0x676   :  { %v6154_v43 = vpop.eup %6153  ;;  %v5847_v45 = vrot.slane %v5832_v28, 6  ;;  %v5830_v16 = vadd.f32 0.01, %v5822_v36 }
 0x677   :  { %v6156_v41 = vpop.eup %6155  ;;  %v5848_v51 = vrot.slane %v5833_v59, 5  ;;  %v5804_v42 = vadd.f32 1.0, %v6154_v43 }
 0x678   :  { %v6158_v11 = vpop.eup %6157  ;;  %v5805_v31 = vadd.f32 1.0, %v6156_v41  ;;  %v5853_v44 = vsel %vm320_vm1, %v5830_v16, %v5846_v56 }
 0x679   :  { %6161 = vlog2.f32 %v5804_v42  ;;  %v5802_v58 = vadd.f32 1.0, %v6158_v11  ;;  %v5855_v50 = vsel %vm5854_vm13, %v5847_v45, %v5848_v51 }
 0x67a   :  { %6163 = vlog2.f32 %v5805_v31  ;;  %v5856_v1 = vsel %vm321_vm2, %v5853_v44, %v5855_v50 }
 0x67b   :  { %v6160_v63 = vpop.eup %6159  ;;  %6165 = vlog2.f32 %v5802_v58 }
 0x67c   :  { %v5817_v4 = vmul.f32 0.6931472, %v6160_v63 }
 0x67e   :  { %v5827_v46 = vadd.f32 %v5817_v4, %v5763_v30 }
 0x67f   :  { %v6162_v35 = vpop.eup %6161 }
 0x680   :  { %v6164_v48 = vpop.eup %6163  ;;  %v5819_v18 = vmul.f32 0.6931472, %v6162_v35  ;;  %v5835_v54 = vadd.f32 0.01, %v5827_v46 }
 0x681   :  { %v6166_v7 = vpop.eup %6165  ;;  %v5821_v15 = vmul.f32 0.6931472, %v6164_v48 }
 0x682   :  { %v5828_v62 = vadd.f32 %v5819_v18, %v5764_v12  ;;  %v5815_v24 = vmul.f32 0.6931472, %v6166_v7  ;;  %v5850_v39 = vrot.slane %v5835_v54, 3 }
 0x683   :  { %v5829_v13 = vadd.f32 %v5821_v15, %v5765_v38 }
 0x684   :  { %v5836_v34 = vadd.f32 0.01, %v5828_v62  ;;  %v5826_v21 = vadd.f32 %v5815_v24, %v5762_v6 }
 0x685   :  { %v5837_v8 = vadd.f32 0.01, %v5829_v13 }
 0x686   :  { %v5851_v17 = vrot.slane %v5836_v34, 2  ;;  %v5834_v52 = vadd.f32 0.01, %v5826_v21 }
 0x687   :  { %v5852_v2 = vrot.slane %v5837_v8, 1 }
 0x688   :  { %v5849_v23 = vrot.slane %v5834_v52, 4 }
 0x689   :  { %v5860_v55 = vsel %vm5859_vm14, %v5851_v17, %v5852_v2 }
 0x68a   :  { %v5858_v57 = vsel %vm5857_vm15, %v5849_v23, %v5850_v39 }
 0x68b   :  { %v5862_v9 = vsel %vm5861_vm0, %v5858_v57, %v5860_v55 }
 0x68c   :  { %v5863_v26 = vsel %vm2386_vm11, %v5856_v1, %v5862_v9 }
 0x68d   :  { %5865 = vst [vmem:[#allocation3] sm:$0xff] %v5863_v26 }
 0x68e   :  { %5876 = dma.vmem_to_hbm [thread:$0]  %s5872_s23, 128, %s5874_s28, [#allocation4]  }
 0x68f   :  { %6191 = dma.done.wait [#allocation4], 128  }
 0x690   :  { %6192 = vsyncadd [#allocation4], 4294967168 }
 0x691   :  { %5881 = vsyncpa [#allocation4], 1 }

</bundles_post_ra>
